<compile_context>
chip_gen: v7x
topology: tpu7x:2x2x1
jax: 0.10.0
libtpu: 0.0.40
codegen_flags: <defaults>
</compile_context>

<pallas_src>
import jax
import jax.numpy as jnp
from jax.experimental import pallas as pl
from jax.experimental.pallas import tpu as pltpu


def _round_up(x, m):
    return ((x + m - 1) // m) * m


def _pad_elems(shape):
    """Element count after Mosaic (8, 128) tiling of the last two dims."""
    s = list(shape)
    if len(s) >= 1:
        s[-1] = _round_up(s[-1], 128)
    if len(s) >= 2:
        s[-2] = _round_up(s[-2], 8)
    n = 1
    for d in s:
        n *= d
    return n


def _tpu_vmem_config():
    """Generation-aware (vmem_limit_bytes, per-step block budget, #TensorCores)."""
    capacity = 64 * 1024 * 1024          # conservative default (v7x-sized)
    num_cores = 1
    try:
        info = pltpu.get_tpu_info()
        capacity = int(getattr(info, "vmem_capacity_bytes", capacity) or capacity)
        num_cores = int(getattr(info, "num_cores", num_cores) or num_cores)
    except Exception:
        pass
    if num_cores <= 1:
        try:
            if "v7" in jax.devices()[0].device_kind.lower():
                num_cores = 2
        except Exception:
            pass
    if capacity >= 100 * 1024 * 1024:    # 128 MiB parts (v5e / v6e)
        return 80 * 1024 * 1024, 28 * 1024 * 1024, num_cores
    return 48 * 1024 * 1024, 14 * 1024 * 1024, num_cores   # 64 MiB parts (v7x)


def _choose_blocks(B, N, Ein, E, F, with_dx, *, edge_in_bytes, edge_out_bytes,
                   vmem_budget_bytes, num_cores):
    """Pick (batch_block bt, i-row tile nt).

    The VMEM estimate rounds every block / intermediate to (8,128) tiles and
    double-buffers all pipelined I/O blocks (incl. weights).  On 1-TC parts we
    simply take the largest block that fits; on 2-TC parts (v7x) we also keep
    >= 2 grid blocks so both TensorCores get work.
    """
    f32 = 4

    def divisors(x):
        return [d for d in range(1, x + 1) if x % d == 0]

    def step_bytes(bt, nt):
        rows = nt * N
        ins = (f32 * _pad_elems((bt, nt, N))                  # A (i-tile rows)
               + f32 * _pad_elems((bt, N, F))                 # node_x (all rows)
               + f32 * _pad_elems((bt, nt, F))                # node_sx (i-tile)
               + edge_in_bytes * _pad_elems((bt, rows, Ein))  # edge rows (flat)
               + edge_in_bytes * _pad_elems((Ein, E))         # W_edge
               + f32 * _pad_elems((1, E)))                    # b_edge
        outs = (f32 * _pad_elems((bt, nt, F))                 # node_out
                + edge_out_bytes * _pad_elems((bt, rows, E))  # edge_out
                + (f32 * _pad_elems((bt, nt, N)) if with_dx else 0))
        interm = 3 * f32 * _pad_elems((bt, nt, N, E))         # ex4 / gated chain
        if with_dx:
            interm += f32 * _pad_elems((bt, nt, N, F))        # pairwise diff
        return 2 * (ins + outs) + interm                      # x2 double buffering

    # Row tiles must keep the (8,128) rule on every second-to-last block dim.
    nts = sorted({N} | {d for d in divisors(N) if d % 8 == 0}, reverse=True)
    bdivs = sorted(divisors(B), reverse=True)

    bt_cap = B
    skip_full_rows = False
    if num_cores >= 2:                    # 2-TC part: guarantee >= 2 grid blocks
        if B >= 2:
            bt_cap = max(1, B // 2)
        elif len(nts) > 1:
            skip_full_rows = True         # B == 1: split rows instead

    for nt in nts:                        # prefer full rows (fewest grid steps)
        if skip_full_rows and nt == N:
            continue
        for bt in bdivs:                  # then the largest batch block that fits
            if bt > bt_cap:
                continue
            if step_bytes(bt, nt) <= vmem_budget_bytes:
                return bt, nt
    return 1, nts[-1]                     # minimal blocks fallback


def _make_kernel(with_dx):
    """Kernel body; the d_x path is only traced when with_dx=True (mode 2)."""

    def kernel(a_ref, node_x_ref, node_sx_ref, edge_ref, we_ref, be_ref,
               node_out_ref, edge_out_ref, *maybe_dx_ref):
        bt, nt, n = a_ref.shape
        ein, e = we_ref.shape

        node_x_full = node_x_ref[...]                        # (bt, n, F) f32

        # ---- edge Linear + ReLU (dominant matmul; f32 accumulation) ----------
        ef = edge_ref[...].reshape(bt * nt * n, ein)         # leading-dim merge only
        ex = jnp.dot(ef, we_ref[...],
                     preferred_element_type=jnp.float32) + be_ref[...]
        edge_out_ref[...] = (jnp.maximum(ex, 0.0)
                             .reshape(bt, nt * n, e)
                             .astype(edge_out_ref.dtype))

        # ---- channel-independent adjacency-gated aggregation (fused) ---------
        # new_node[b,i,c] = sum_j A[b,i,j] * edge_x[b,i,j,c] * node_x[b,j,c]
        ex4 = ex.reshape(bt, nt, n, e)
        agg = jnp.sum(a_ref[...][..., None] * ex4 * node_x_full[:, None, :, :],
                      axis=2)                                 # (bt, nt, e)
        node_out_ref[...] = (jnp.maximum(agg, 0.0)
                             + jnp.maximum(node_sx_ref[...], 0.0)
                             ).astype(node_out_ref.dtype)

        # ---- mode 2: d_x = exp(-||x_i - x_j||^2), direct difference ----------
        if with_dx:
            dx_ref = maybe_dx_ref[0]
            if nt == n:
                node_x_tile = node_x_full
            else:
                i0 = pl.multiple_of(pl.program_id(1) * nt, nt)
                node_x_tile = node_x_ref[:, pl.ds(i0, nt), :]
            diff = node_x_tile[:, :, None, :] - node_x_full[:, None, :, :]
            dx_ref[...] = jnp.exp(-jnp.sum(diff * diff, axis=-1)
                                  ).astype(dx_ref.dtype)

    return kernel


def channel_independent_conv(A, emb_node, emb_edge, params, mode=1, *,
                             block_b=None, block_i=None,
                             edge_dtype=None, edge_out_dtype=jnp.float32):
    """Pallas TPU implementation of ChannelIndependentConv.forward.

    edge_dtype:     if set (e.g. jnp.bfloat16) the edge tensor and W_edge are
                    cast in the wrapper; the MXU still accumulates in f32.
    edge_out_dtype: dtype of the edge output (bf16 halves store traffic).
    """
    Wn, bn, Wns, bns, We, be = params
    B, N, Din = emb_node.shape
    Ein = emb_edge.shape[-1]
    F = Wn.shape[1]
    E = We.shape[1]
    assert E == F, "channel-independent conv requires out_edges == out_features"
    assert mode in (1, 2), f"unsupported mode {mode}"
    with_dx = (mode == 2)

    A = A.astype(jnp.float32)

    # Node Linears: one fused XLA matmul in the wrapper (tiny vs. the edge path);
    # avoids re-running the full-row node matmul on every row-tile grid step.
    Wcat = jnp.concatenate([Wn, Wns], axis=1)                # (Din, 2F)
    bcat = jnp.concatenate([bn, bns])                        # (2F,)
    node_cat = emb_node @ Wcat + bcat                        # (B, N, 2F)
    node_x = node_cat[..., :F]                               # (B, N, F)
    node_sx = node_cat[..., F:]                              # (B, N, F)

    # Edge tensor pre-flattened to (B, N*N, Ein); optional bf16 cast in HBM.
    edge_flat = emb_edge.reshape(B, N * N, Ein)
    We_k = We
    if edge_dtype is not None:
        edge_flat = edge_flat.astype(edge_dtype)
        We_k = We.astype(edge_dtype)
    be2 = be.reshape(1, E).astype(jnp.float32)

    edge_in_bytes = jnp.dtype(edge_flat.dtype).itemsize
    edge_out_bytes = jnp.dtype(edge_out_dtype).itemsize

    vmem_limit, block_budget, num_cores = _tpu_vmem_config()
    bt, nt = _choose_blocks(B, N, Ein, E, F, with_dx,
                            edge_in_bytes=edge_in_bytes,
                            edge_out_bytes=edge_out_bytes,
                            vmem_budget_bytes=block_budget,
                            num_cores=num_cores)
    if block_b is not None:
        assert B % block_b == 0
        bt = block_b
    if block_i is not None:
        assert N % block_i == 0 and (block_i == N or block_i % 8 == 0)
        nt = block_i
    grid = (B // bt, N // nt)

    in_specs = [
        pl.BlockSpec((bt, nt, N), lambda b, i: (b, i, 0)),        # A (i-tile rows)
        pl.BlockSpec((bt, N, F), lambda b, i: (b, 0, 0)),         # node_x (all rows)
        pl.BlockSpec((bt, nt, F), lambda b, i: (b, i, 0)),        # node_sx (i-tile)
        pl.BlockSpec((bt, nt * N, Ein), lambda b, i: (b, i, 0)),  # edge rows (flat)
        pl.BlockSpec((Ein, E), lambda b, i: (0, 0)),              # W_edge
        pl.BlockSpec((1, E), lambda b, i: (0, 0)),                # b_edge
    ]
    out_specs = [
        pl.BlockSpec((bt, nt, F), lambda b, i: (b, i, 0)),        # node_x out
        pl.BlockSpec((bt, nt * N, E), lambda b, i: (b, i, 0)),    # edge_x out (flat)
    ]
    out_shape = [
        jax.ShapeDtypeStruct((B, N, F), jnp.float32),
        jax.ShapeDtypeStruct((B, N * N, E), edge_out_dtype),
    ]
    if with_dx:
        out_specs.append(pl.BlockSpec((bt, nt, N), lambda b, i: (b, i, 0)))
        out_shape.append(jax.ShapeDtypeStruct((B, N, N), jnp.float32))

    flops = 2 * B * N * N * Ein * E + 3 * B * N * N * E
    transcendentals = 0
    if with_dx:
        flops += 3 * B * N * N * F
        transcendentals = B * N * N
    bytes_accessed = (4 * (A.size + node_x.size + node_sx.size + be2.size)
                      + edge_in_bytes * (edge_flat.size + We_k.size)
                      + 4 * B * N * F
                      + edge_out_bytes * B * N * N * E
                      + (4 * B * N * N if with_dx else 0))

    outs = pl.pallas_call(
        _make_kernel(with_dx),
        out_shape=tuple(out_shape),
        grid_spec=pltpu.PrefetchScalarGridSpec(
            num_scalar_prefetch=0,
            grid=grid,
            in_specs=in_specs,
            out_specs=tuple(out_specs),
        ),
        compiler_params=pltpu.CompilerParams(
            dimension_semantics=("parallel", "parallel"),
            vmem_limit_bytes=vmem_limit),
        cost_estimate=pl.CostEstimate(flops=flops,
                                      transcendentals=transcendentals,
                                      bytes_accessed=bytes_accessed),
    )(A, node_x, node_sx, edge_flat, We_k, be2)

    node_out = outs[0]
    edge_out = outs[1].reshape(B, N, N, E)      # free: contiguous HBM reshape
    if with_dx:
        return node_out, edge_out, outs[2]
    return node_out, edge_out


def ref_forward(A, emb_node, emb_edge, params, mode=1):
    """Pure-JAX reference mirroring the PyTorch forward."""
    Wn, bn, Wns, bns, We, be = params
    node_x = emb_node @ Wn + bn
    node_sx = emb_node @ Wns + bns
    edge_x = emb_edge @ We + be
    gated = A[..., None] * edge_x
    agg = jnp.einsum('bijc,bjc->bic', gated, node_x)
    node_out = jax.nn.relu(agg) + jax.nn.relu(node_sx)
    edge_out = jax.nn.relu(edge_x)
    if mode == 2:
        diff = node_x[:, :, None, :] - node_x[:, None, :, :]
        dx = jnp.exp(-jnp.sum(diff ** 2, axis=-1))
        return node_out, edge_out, dx
    return node_out, edge_out


def make_params(key, in_features, out_features, in_edges, out_edges=None):
    """Deterministic parameter init (same shapes as the nn.Linear layers)."""
    if out_edges is None:
        out_edges = out_features
    ks = jax.random.split(key, 6)

    def lin(kw, kb, fan_in, fan_out):
        bound = 1.0 / jnp.sqrt(fan_in)
        W = jax.random.uniform(kw, (fan_in, fan_out), jnp.float32, -bound, bound)
        b = jax.random.uniform(kb, (fan_out,), jnp.float32, -bound, bound)
        return W, b

    Wn, bn = lin(ks[0], ks[1], in_features, out_features)
    Wns, bns = lin(ks[2], ks[3], in_features, out_features)
    We, be = lin(ks[4], ks[5], in_edges, out_edges)
    return Wn, bn, Wns, bns, We, be


if __name__ == "__main__":
    B, N = 4, 16
    in_features, out_features, in_edges = 32, 32, 32

    key = jax.random.PRNGKey(0)
    k_a, k_node, k_edge, k_params = jax.random.split(key, 4)

    A = (jax.random.uniform(k_a, (B, N, N)) > 0.5).astype(jnp.float32)
    emb_node = jax.random.normal(k_node, (B, N, in_features), jnp.float32)
    emb_edge = jax.random.normal(k_edge, (B, N, N, in_edges), jnp.float32)
    params = make_params(k_params, in_features, in_features, in_edges)

    # mode 1 (no d_x computed or written)
    node1, edge1 = channel_independent_conv(A, emb_node, emb_edge, params, mode=1)
    jax.block_until_ready((node1, edge1))
    r_node1, r_edge1 = ref_forward(A, emb_node, emb_edge, params, mode=1)
    assert jnp.allclose(node1, r_node1, atol=1e-4, rtol=1e-4)
    assert jnp.allclose(edge1, r_edge1, atol=1e-4, rtol=1e-4)

    # mode 2 (adds the pairwise exp(-||xi - xj||^2) output)
    node2, edge2, dx2 = channel_independent_conv(A, emb_node, emb_edge, params, mode=2)
    jax.block_until_ready((node2, edge2, dx2))
    r_node2, r_edge2, r_dx2 = ref_forward(A, emb_node, emb_edge, params, mode=2)
    assert jnp.allclose(node2, r_node2, atol=1e-4, rtol=1e-4)
    assert jnp.allclose(edge2, r_edge2, atol=1e-4, rtol=1e-4)
    assert jnp.allclose(dx2, r_dx2, atol=1e-4, rtol=1e-4)

    # explicitly exercise the row-tiled / per-sample path (v7x VMEM bounding)
    node3, edge3, dx3 = channel_independent_conv(
        A, emb_node, emb_edge, params, mode=2, block_b=1, block_i=8)
    jax.block_until_ready((node3, edge3, dx3))
    assert jnp.allclose(node3, r_node2, atol=1e-4, rtol=1e-4)
    assert jnp.allclose(edge3, r_edge2, atol=1e-4, rtol=1e-4)
    assert jnp.allclose(dx3, r_dx2, atol=1e-4, rtol=1e-4)

    # bf16 edge operands + bf16 edge output (halves the dominant HBM traffic);
    # looser tolerance — operands rounded to bf16, accumulation stays f32.
    node4, edge4 = channel_independent_conv(
        A, emb_node, emb_edge, params, mode=1,
        edge_dtype=jnp.bfloat16, edge_out_dtype=jnp.bfloat16)
    jax.block_until_ready((node4, edge4))
    assert jnp.allclose(node4, r_node1, atol=1e-1, rtol=1e-1)
    assert jnp.allclose(edge4.astype(jnp.float32), r_edge1, atol=5e-2, rtol=5e-2)

    print("KERNEL_OK")
</pallas_src>

<mosaic_0001>
module attributes {stable_mosaic.version = 11 : i64} {
  func.func @kernel(%arg0: i32, %arg1: i32, %arg2: memref<4x16x16xf32, #tpu.memory_space<vmem>>, %arg3: memref<4x16x32xf32, #tpu.memory_space<vmem>>, %arg4: memref<4x16x32xf32, #tpu.memory_space<vmem>>, %arg5: memref<4x256x32xf32, #tpu.memory_space<vmem>>, %arg6: memref<32x32xf32, #tpu.memory_space<vmem>>, %arg7: memref<1x32xf32, #tpu.memory_space<vmem>>, %arg8: memref<4x16x32xf32, #tpu.memory_space<vmem>>, %arg9: memref<4x256x32xf32, #tpu.memory_space<vmem>>) attributes {dimension_semantics = [#tpu.dimension_semantics<parallel>, #tpu.dimension_semantics<parallel>], iteration_bounds = array<i64: 1, 1>, scalar_prefetch = 0 : i64, scratch_operands = 0 : i64, tpu.core_type = #tpu.core_type<tc>, window_params = [{transform_indices = @transform_0, window_bounds = array<i64: 4, 16, 16>}, {transform_indices = @transform_1, window_bounds = array<i64: 4, 16, 32>}, {transform_indices = @transform_2, window_bounds = array<i64: 4, 16, 32>}, {transform_indices = @transform_3, window_bounds = array<i64: 4, 256, 32>}, {pipeline_mode = #tpu.pipeline_mode<synchronous>, transform_indices = @transform_4, window_bounds = array<i64: 32, 32>}, {pipeline_mode = #tpu.pipeline_mode<synchronous>, transform_indices = @transform_5, window_bounds = array<i64: 1, 32>}, {transform_indices = @transform_6, window_bounds = array<i64: 4, 16, 32>}, {transform_indices = @transform_7, window_bounds = array<i64: 4, 256, 32>}]} {
    %c0 = arith.constant 0 : index
    %c0_0 = arith.constant 0 : index
    %c0_1 = arith.constant 0 : index
    %0 = vector.load %arg3[%c0, %c0_0, %c0_1] : memref<4x16x32xf32, #tpu.memory_space<vmem>>, vector<4x16x32xf32>
    %c0_2 = arith.constant 0 : index
    %c0_3 = arith.constant 0 : index
    %c0_4 = arith.constant 0 : index
    %1 = vector.load %arg5[%c0_2, %c0_3, %c0_4] : memref<4x256x32xf32, #tpu.memory_space<vmem>>, vector<4x256x32xf32>
    %2 = vector.shape_cast %1 : vector<4x256x32xf32> to vector<1024x32xf32>
    %c0_5 = arith.constant 0 : index
    %c0_6 = arith.constant 0 : index
    %3 = vector.load %arg6[%c0_5, %c0_6] : memref<32x32xf32, #tpu.memory_space<vmem>>, vector<32x32xf32>
    %cst = arith.constant dense<0.000000e+00> : vector<1024x32xf32>
    %4 = tpu.matmul %2, %3, %cst {dimension_numbers = #tpu.dot_dimension_numbers<[1], [0], [0], [1], [0, 0, 1, 1], [], []>} : vector<1024x32xf32>, vector<32x32xf32>, vector<1024x32xf32> -> vector<1024x32xf32>
    %c0_7 = arith.constant 0 : index
    %c0_8 = arith.constant 0 : index
    %5 = vector.load %arg7[%c0_7, %c0_8] : memref<1x32xf32, #tpu.memory_space<vmem>>, vector<1x32xf32>
    %6 = vector.broadcast %5 : vector<1x32xf32> to vector<1024x32xf32>
    %7 = arith.addf %4, %6 : vector<1024x32xf32>
    %cst_9 = arith.constant 0.000000e+00 : f32
    %8 = vector.broadcast %cst_9 : f32 to vector<1024x32xf32>
    %9 = arith.maximumf %7, %8 : vector<1024x32xf32>
    %10 = vector.shape_cast %9 : vector<1024x32xf32> to vector<4x256x32xf32>
    %c0_10 = arith.constant 0 : index
    %c0_11 = arith.constant 0 : index
    %c0_12 = arith.constant 0 : index
    %11 = vector.load %arg9[%c0_10, %c0_11, %c0_12] : memref<4x256x32xf32, #tpu.memory_space<vmem>>, vector<4x256x32xf32>
    tpu.vector_store %arg9[%c0_10, %c0_11, %c0_12], %10 {strides = array<i32>} : memref<4x256x32xf32, #tpu.memory_space<vmem>>, vector<4x256x32xf32>,
    %12 = vector.shape_cast %7 : vector<1024x32xf32> to vector<4x16x16x32xf32>
    %c0_13 = arith.constant 0 : index
    %c0_14 = arith.constant 0 : index
    %c0_15 = arith.constant 0 : index
    %13 = vector.load %arg2[%c0_13, %c0_14, %c0_15] : memref<4x16x16xf32, #tpu.memory_space<vmem>>, vector<4x16x16xf32>
    %14 = vector.shape_cast %13 : vector<4x16x16xf32> to vector<4x16x16x1xf32>
    %15 = vector.broadcast %14 : vector<4x16x16x1xf32> to vector<4x16x16x32xf32>
    %16 = arith.mulf %15, %12 : vector<4x16x16x32xf32>
    %17 = vector.shape_cast %0 : vector<4x16x32xf32> to vector<4x1x16x32xf32>
    %18 = vector.broadcast %17 : vector<4x1x16x32xf32> to vector<4x16x16x32xf32>
    %19 = arith.mulf %16, %18 : vector<4x16x16x32xf32>
    %cst_16 = arith.constant dense<0.000000e+00> : vector<4x16x32xf32>
    %20 = vector.multi_reduction <add>, %19, %cst_16 [2] : vector<4x16x16x32xf32> to vector<4x16x32xf32>
    %cst_17 = arith.constant 0.000000e+00 : f32
    %21 = vector.broadcast %cst_17 : f32 to vector<4x16x32xf32>
    %22 = arith.maximumf %20, %21 : vector<4x16x32xf32>
    %c0_18 = arith.constant 0 : index
    %c0_19 = arith.constant 0 : index
    %c0_20 = arith.constant 0 : index
    %23 = vector.load %arg4[%c0_18, %c0_19, %c0_20] : memref<4x16x32xf32, #tpu.memory_space<vmem>>, vector<4x16x32xf32>
    %cst_21 = arith.constant 0.000000e+00 : f32
    %24 = vector.broadcast %cst_21 : f32 to vector<4x16x32xf32>
    %25 = arith.maximumf %23, %24 : vector<4x16x32xf32>
    %26 = arith.addf %22, %25 : vector<4x16x32xf32>
    %c0_22 = arith.constant 0 : index
    %c0_23 = arith.constant 0 : index
    %c0_24 = arith.constant 0 : index
    %27 = vector.load %arg8[%c0_22, %c0_23, %c0_24] : memref<4x16x32xf32, #tpu.memory_space<vmem>>, vector<4x16x32xf32>
    tpu.vector_store %arg8[%c0_22, %c0_23, %c0_24], %26 {strides = array<i32>} : memref<4x16x32xf32, #tpu.memory_space<vmem>>, vector<4x16x32xf32>,
    return
  }
  func.func @transform_0(%arg0: i32, %arg1: i32) -> (i32, i32, i32) {
    %c0_i32 = arith.constant 0 : i32
    %c0_i32_0 = arith.constant 0 : i32
    return %arg0, %arg1, %c0_i32 : i32, i32, i32
  }
  func.func @transform_1(%arg0: i32, %arg1: i32) -> (i32, i32, i32) {
    %c0_i32 = arith.constant 0 : i32
    %c0_i32_0 = arith.constant 0 : i32
    %c0_i32_1 = arith.constant 0 : i32
    return %arg0, %c0_i32, %c0_i32_0 : i32, i32, i32
  }
  func.func @transform_2(%arg0: i32, %arg1: i32) -> (i32, i32, i32) {
    %c0_i32 = arith.constant 0 : i32
    %c0_i32_0 = arith.constant 0 : i32
    return %arg0, %arg1, %c0_i32 : i32, i32, i32
  }
  func.func @transform_3(%arg0: i32, %arg1: i32) -> (i32, i32, i32) {
    %c0_i32 = arith.constant 0 : i32
    %c0_i32_0 = arith.constant 0 : i32
    return %arg0, %arg1, %c0_i32 : i32, i32, i32
  }
  func.func @transform_4(%arg0: i32, %arg1: i32) -> (i32, i32) {
    %c0_i32 = arith.constant 0 : i32
    %c0_i32_0 = arith.constant 0 : i32
    %c0_i32_1 = arith.constant 0 : i32
    return %c0_i32, %c0_i32_0 : i32, i32
  }
  func.func @transform_5(%arg0: i32, %arg1: i32) -> (i32, i32) {
    %c0_i32 = arith.constant 0 : i32
    %c0_i32_0 = arith.constant 0 : i32
    %c0_i32_1 = arith.constant 0 : i32
    return %c0_i32, %c0_i32_0 : i32, i32
  }
  func.func @transform_6(%arg0: i32, %arg1: i32) -> (i32, i32, i32) {
    %c0_i32 = arith.constant 0 : i32
    %c0_i32_0 = arith.constant 0 : i32
    return %arg0, %arg1, %c0_i32 : i32, i32, i32
  }
  func.func @transform_7(%arg0: i32, %arg1: i32) -> (i32, i32, i32) {
    %c0_i32 = arith.constant 0 : i32
    %c0_i32_0 = arith.constant 0 : i32
    return %arg0, %arg1, %c0_i32 : i32, i32, i32
  }
}

</mosaic_0001>

<bundles_post_ra>
// kernel: tpu_custom_call.1
= control target key start
LH: loop header
LB: loop body
LE: loop exit
PB: predicated region body
PF: predicated region fallthrough
CT: control target
= control target key end

     0   :  { %v1527_v3 = vlaneseq  ;;  %vm173_vm0 = vcmask 261120   ;;  %s6861_s0 = inlined_call_operand.vmem [shape: f32[4,16,16], index: 0, kind: input, shape index: {}]   ;;  %s6862_s1 = inlined_call_operand.vmem [shape: f32[4,16,32], index: 1, kind: input, shape index: {}]   ;;  %s6863_s2 = inlined_call_operand.vmem [shape: f32[4,16,32], index: 2, kind: input, shape index: {}]   ;;  %s6864_s3 = inlined_call_operand.vmem [shape: f32[4,256,32], index: 3, kind: input, shape index: {}]   ;;  %s6865_s4 = inlined_call_operand.vmem [shape: f32[32,32], index: 4, kind: input, shape index: {}]   ;;  %s6866_s5 = inlined_call_operand.vmem [shape: f32[1,32], index: 5, kind: input, shape index: {}]   ;;  %s6867_s6 = inlined_call_operand.hbm [shape: f32[4,16,32], index: 6, kind: output, shape index: {0}]   ;;  %s6868_s7 = inlined_call_operand.vmem [shape: f32[4,256,32], index: 7, kind: output, shape index: {1}]  }
   0x1   :  { %v162_v0 = vld [vmem:[%s6865_s4] sm:$0xff]  ;;  %v163_v1 = vld [vmem:[%s6865_s4 + $0x8] sm:$0xff]  ;;  %v164_v2 = vld [vmem:[%s6865_s4 + $0x10] sm:$0xff] }
   0x2   :  { %v4015_v4 = vpack.c.bf16 %v163_v1, %v162_v0  ;;  %v165_v5 = vld [vmem:[%s6865_s4 + $0x18] sm:$0xff]  ;;  %v34_v6 = vld [vmem:[%s6864_s3] sm:$0xff]  ;;  %v4125_v8 = vshrl.u32 %v1527_v3, 7  ;;  %v35_v15 = vld [vmem:[%s6864_s3 + $0x8] sm:$0xff] }
   0x3   :  { %v4019_v7 = vpack.c.bf16 %v165_v5, %v164_v2  ;;  %3823 = vmatprep.mubr.msk.f32.mxu0 %vm173_vm0, %v34_v6  ;;  %v4131_v9 = vld [vmem:[%s6861_s0] sm:$0xff]  ;;  %v99_v16 = vld [vmem:[%s6864_s3 + $0x208] sm:$0xff]  ;;  %v36_v18 = vld [vmem:[%s6864_s3 + $0x10] sm:$0xff] }
   0x4   :  { %4016 = vmatprep.subr.bf16.mxu0 %v4015_v4  ;;  %4023 = vmatprep.subr.bf16.mxu1 %v4015_v4  ;;  %v98_v10 = vld [vmem:[%s6864_s3 + $0x200] sm:$0xff]  ;;  %v4137_v11 = vsub.s32 1, %v4125_v8  ;;  %v4140_v12 = vsub.s32 0, %v4125_v8  ;;  %v4154_v17 = vsub.s32 2, %v4125_v8  ;;  %v100_v19 = vld [vmem:[%s6864_s3 + $0x210] sm:$0xff]  ;;  %v37_v20 = vld [vmem:[%s6864_s3 + $0x18] sm:$0xff] }
   0x5   :  { %4018 = vmatpush3.bf16.msra.mxu0 %v4015_v4  ;;  %4025 = vmatpush3.bf16.msra.mxu1 %v4015_v4  ;;  %v101_v21 = vld [vmem:[%s6864_s3 + $0x218] sm:$0xff]  ;;  %v4173_v23 = vsub.s32 3, %v4125_v8  ;;  %v38_v24 = vld [vmem:[%s6864_s3 + $0x20] sm:$0xff]  ;;  %v39_v26 = vld [vmem:[%s6864_s3 + $0x28] sm:$0xff]  ;;  %v4194_v29 = vsub.s32 4, %v4125_v8  ;;  %v4215_v35 = vsub.s32 5, %v4125_v8 }
   0x6   :  { %4020 = vmatprep.subr.bf16.mxu0 %v4019_v7  ;;  %4024 = vmatprep.subr.bf16.mxu1 %v4019_v7  ;;  %v1541_v13 = vrot.slane %v4131_v9, %v4137_v11  ;;  %v1530_v14 = vrot.slane %v4131_v9, %v4140_v12  ;;  %v1552_v22 = vrot.slane %v4131_v9, %v4154_v17  ;;  %v102_v25 = vld [vmem:[%s6864_s3 + $0x220] sm:$0xff]  ;;  %v103_v27 = vld [vmem:[%s6864_s3 + $0x228] sm:$0xff]  ;;  %v40_v30 = vld [vmem:[%s6864_s3 + $0x30] sm:$0xff]  ;;  %v4236_v41 = vsub.s32 6, %v4125_v8 }
   0x7   :  { %3919 = vmatprep.mubr.msk.f32.mxu1 %vm173_vm0, %v98_v10  ;;  %v1563_v28 = vrot.slane %v4131_v9, %v4173_v23  ;;  %v104_v31 = vld [vmem:[%s6864_s3 + $0x230] sm:$0xff]  ;;  %v41_v32 = vld [vmem:[%s6864_s3 + $0x38] sm:$0xff]  ;;  %v1574_v34 = vrot.slane %v4131_v9, %v4194_v29  ;;  %v42_v36 = vld [vmem:[%s6864_s3 + $0x40] sm:$0xff]  ;;  %v1585_v40 = vrot.slane %v4131_v9, %v4215_v35  ;;  %v4257_v47 = vsub.s32 7, %v4125_v8 }
   0x8   :  { %1543 = vbcast.lane.b32.xlu1 %v1541_v13, 256  ;;  %1532 = vbcast.lane.b32.xlu0 %v1530_v14, 256  ;;  %v105_v33 = vld [vmem:[%s6864_s3 + $0x238] sm:$0xff]  ;;  %v106_v37 = vld [vmem:[%s6864_s3 + $0x240] sm:$0xff]  ;;  %v43_v38 = vld [vmem:[%s6864_s3 + $0x48] sm:$0xff]  ;;  %v1596_v46 = vrot.slane %v4131_v9, %v4236_v41 }
   0x9   :  { %4022 = vmatpush3.bf16.msra.mxu0 %v4019_v7  ;;  %4026 = vmatpush3.bf16.msra.mxu1 %v4019_v7  ;;  %v107_v39 = vld [vmem:[%s6864_s3 + $0x248] sm:$0xff]  ;;  %v44_v42 = vld [vmem:[%s6864_s3 + $0x50] sm:$0xff]  ;;  %v45_v44 = vld [vmem:[%s6864_s3 + $0x58] sm:$0xff]  ;;  %v1607_v52 = vrot.slane %v4131_v9, %v4257_v47 }
   0xa   :  { %v108_v43 = vld [vmem:[%s6864_s3 + $0x250] sm:$0xff]  ;;  %v109_v45 = vld [vmem:[%s6864_s3 + $0x258] sm:$0xff]  ;;  %v46_v48 = vld [vmem:[%s6864_s3 + $0x60] sm:$0xff] }
   0xb   :  { %v110_v49 = vld [vmem:[%s6864_s3 + $0x260] sm:$0xff]  ;;  %v47_v50 = vld [vmem:[%s6864_s3 + $0x68] sm:$0xff]  ;;  %v48_v54 = vld [vmem:[%s6864_s3 + $0x70] sm:$0xff] }
   0xc   :  { %3824 = vmatmul.mubr.msk.f32.vlgmr.msra.gmra.mrb[0].mxu0 %vm173_vm0, %v35_v15  ;;  %3920 = vmatmul.mubr.msk.f32.vlgmr.msra.gmra.mrb[0].mxu1 %vm173_vm0, %v99_v16  ;;  %v111_v51 = vld [vmem:[%s6864_s3 + $0x268] sm:$0xff]  ;;  %v112_v55 = vld [vmem:[%s6864_s3 + $0x270] sm:$0xff]  ;;  %v49_v56 = vld [vmem:[%s6864_s3 + $0x78] sm:$0xff] }
   0xd   :  { %1547 = vbcast.lane.b32.xlu1 %v1541_v13, 264  ;;  %1536 = vbcast.lane.b32.xlu0 %v1530_v14, 264  ;;  %v4282_v53 = vld [vmem:[%s6861_s0 + $0x8] sm:$0xff]  ;;  %v113_v57 = vld [vmem:[%s6864_s3 + $0x278] sm:$0xff]  ;;  %v50_v59 = vld [vmem:[%s6864_s3 + $0x80] sm:$0xff] }
   0xe   :  { %3826 = vmatprep.mubr.msk.f32.mxu0 %vm173_vm0, %v36_v18  ;;  %3922 = vmatprep.mubr.msk.f32.mxu1 %vm173_vm0, %v100_v19  ;;  %v1618_v58 = vrot.slane %v4282_v53, %v4140_v12  ;;  %v114_v60 = vld [vmem:[%s6864_s3 + $0x280] sm:$0xff]  ;;  %v51_v61 = vld [vmem:[%s6864_s3 + $0x88] sm:$0xff]  ;;  %v1629_v63 = vrot.slane %v4282_v53, %v4137_v11  ;;  %v52_v0 = vld [vmem:[%s6864_s3 + $0x90] sm:$0xff]  ;;  %v1640_v4 = vrot.slane %v4282_v53, %v4154_v17 }
   0xf   :  { %v115_v62 = vld [vmem:[%s6864_s3 + $0x288] sm:$0xff]  ;;  %v116_v1 = vld [vmem:[%s6864_s3 + $0x290] sm:$0xff]  ;;  %v53_v2 = vld [vmem:[%s6864_s3 + $0x98] sm:$0xff] }
  0x10   :  { %3827 = vmatmul.mubr.msk.f32.gmra.mrb[2].mxu0 %vm173_vm0, %v37_v20  ;;  %3923 = vmatmul.mubr.msk.f32.gmra.mrb[2].mxu1 %vm173_vm0, %v101_v21  ;;  %v117_v3 = vld [vmem:[%s6864_s3 + $0x298] sm:$0xff] }
  0x11   :  { %1558 = vbcast.lane.b32.xlu1 %v1552_v22, 264  ;;  %1554 = vbcast.lane.b32.xlu0 %v1552_v22, 256 }
  0x12   :  { %3829 = vmatprep.mubr.msk.f32.mxu0 %vm173_vm0, %v38_v24  ;;  %3925 = vmatprep.mubr.msk.f32.mxu1 %vm173_vm0, %v102_v25 }
  0x14   :  { %3830 = vmatmul.mubr.msk.f32.gmra.mrb[4].mxu0 %vm173_vm0, %v39_v26  ;;  %3926 = vmatmul.mubr.msk.f32.gmra.mrb[4].mxu1 %vm173_vm0, %v103_v27 }
  0x15   :  { %1569 = vbcast.lane.b32.xlu1 %v1563_v28, 264  ;;  %1565 = vbcast.lane.b32.xlu0 %v1563_v28, 256 }
  0x16   :  { %3832 = vmatprep.mubr.msk.f32.mxu0 %vm173_vm0, %v40_v30  ;;  %3928 = vmatprep.mubr.msk.f32.mxu1 %vm173_vm0, %v104_v31 }
  0x18   :  { %3833 = vmatmul.mubr.msk.f32.gmra.mrb[6].mxu0 %vm173_vm0, %v41_v32  ;;  %3929 = vmatmul.mubr.msk.f32.gmra.mrb[6].mxu1 %vm173_vm0, %v105_v33 }
  0x19   :  { %1580 = vbcast.lane.b32.xlu1 %v1574_v34, 264  ;;  %1576 = vbcast.lane.b32.xlu0 %v1574_v34, 256 }
  0x1a   :  { %3835 = vmatprep.mubr.msk.f32.mxu0 %vm173_vm0, %v42_v36  ;;  %3931 = vmatprep.mubr.msk.f32.mxu1 %vm173_vm0, %v106_v37 }
  0x1c   :  { %3836 = vmatmul.mubr.msk.f32.gmra.mrb[8].mxu0 %vm173_vm0, %v43_v38  ;;  %3932 = vmatmul.mubr.msk.f32.gmra.mrb[8].mxu1 %vm173_vm0, %v107_v39 }
  0x1d   :  { %1591 = vbcast.lane.b32.xlu1 %v1585_v40, 264  ;;  %1587 = vbcast.lane.b32.xlu0 %v1585_v40, 256 }
  0x1e   :  { %3838 = vmatprep.mubr.msk.f32.mxu0 %vm173_vm0, %v44_v42  ;;  %3934 = vmatprep.mubr.msk.f32.mxu1 %vm173_vm0, %v108_v43 }
  0x20   :  { %3839 = vmatmul.mubr.msk.f32.gmra.mrb[10].mxu0 %vm173_vm0, %v45_v44  ;;  %3935 = vmatmul.mubr.msk.f32.gmra.mrb[10].mxu1 %vm173_vm0, %v109_v45 }
  0x21   :  { %1602 = vbcast.lane.b32.xlu1 %v1596_v46, 264  ;;  %1598 = vbcast.lane.b32.xlu0 %v1596_v46, 256 }
  0x22   :  { %3841 = vmatprep.mubr.msk.f32.mxu0 %vm173_vm0, %v46_v48  ;;  %3937 = vmatprep.mubr.msk.f32.mxu1 %vm173_vm0, %v110_v49 }
  0x24   :  { %3842 = vmatmul.mubr.msk.f32.gmra.mrb[12].mxu0 %vm173_vm0, %v47_v50  ;;  %3938 = vmatmul.mubr.msk.f32.gmra.mrb[12].mxu1 %vm173_vm0, %v111_v51 }
  0x25   :  { %1613 = vbcast.lane.b32.xlu1 %v1607_v52, 264  ;;  %1609 = vbcast.lane.b32.xlu0 %v1607_v52, 256 }
  0x26   :  { %3844 = vmatprep.mubr.msk.f32.mxu0 %vm173_vm0, %v48_v54  ;;  %3940 = vmatprep.mubr.msk.f32.mxu1 %vm173_vm0, %v112_v55 }
  0x28   :  { %3845 = vmatmul.mubr.msk.f32.gmra.mrb[14].mxu0 %vm173_vm0, %v49_v56  ;;  %3941 = vmatmul.mubr.msk.f32.gmra.mrb[14].mxu1 %vm173_vm0, %v113_v57 }
  0x29   :  { %1624 = vbcast.lane.b32.xlu1 %v1618_v58, 264  ;;  %1620 = vbcast.lane.b32.xlu0 %v1618_v58, 256 }
  0x2a   :  { %3847 = vmatprep.mubr.msk.f32.mxu0 %vm173_vm0, %v50_v59  ;;  %3943 = vmatprep.mubr.msk.f32.mxu1 %vm173_vm0, %v114_v60 }
  0x2c   :  { %3848 = vmatmul.mubr.msk.f32.gmra.mrb[16].mxu0 %vm173_vm0, %v51_v61  ;;  %3944 = vmatmul.mubr.msk.f32.gmra.mrb[16].mxu1 %vm173_vm0, %v115_v62 }
  0x2d   :  { %1635 = vbcast.lane.b32.xlu1 %v1629_v63, 264  ;;  %1631 = vbcast.lane.b32.xlu0 %v1629_v63, 256 }
  0x2e   :  { %3850 = vmatprep.mubr.msk.f32.mxu0 %vm173_vm0, %v52_v0  ;;  %3946 = vmatprep.mubr.msk.f32.mxu1 %vm173_vm0, %v116_v1 }
  0x2f   :  { %13 = vsyncpa [#allocation3], 0  ;;  %v54_v5 = vld [vmem:[%s6864_s3 + $0xa0] sm:$0xff]  ;;  %v55_v7 = vld [vmem:[%s6864_s3 + $0xa8] sm:$0xff]  ;;  %v1651_v9 = vrot.slane %v4282_v53, %v4173_v23  ;;  %v1662_v16 = vrot.slane %v4282_v53, %v4194_v29  ;;  %v1673_v22 = vrot.slane %v4282_v53, %v4215_v35  ;;  %v1684_v28 = vrot.slane %v4282_v53, %v4236_v41 }
  0x30   :  { %v118_v6 = vld [vmem:[%s6864_s3 + $0x2a0] sm:$0xff]  ;;  %3851 = vmatmul.mubr.msk.f32.gmra.mrb[18].mxu0 %vm173_vm0, %v53_v2  ;;  %3947 = vmatmul.mubr.msk.f32.gmra.mrb[18].mxu1 %vm173_vm0, %v117_v3  ;;  %v119_v8 = vld [vmem:[%s6864_s3 + $0x2a8] sm:$0xff]  ;;  %v56_v10 = vld [vmem:[%s6864_s3 + $0xb0] sm:$0xff]  ;;  %v1695_v34 = vrot.slane %v4282_v53, %v4257_v47  ;;  %vm3400_vm1 = vcmask 1041409   ;;  %vm3403_vm2 = vcmask 1042434   ;;  %vm3406_vm3 = vcmask 1043459  }
  0x31   :  { %1646 = vbcast.lane.b32.xlu1 %v1640_v4, 264  ;;  %1642 = vbcast.lane.b32.xlu0 %v1640_v4, 256  ;;  %v120_v13 = vld [vmem:[%s6864_s3 + $0x2b0] sm:$0xff]  ;;  %v57_v14 = vld [vmem:[%s6864_s3 + $0xb8] sm:$0xff]  ;;  %v58_v18 = vld [vmem:[%s6864_s3 + $0xc0] sm:$0xff]  ;;  %vm3409_vm4 = vcmask 1044484  }
  0x32   :  { %3853 = vmatprep.mubr.msk.f32.mxu0 %vm173_vm0, %v54_v5  ;;  %3949 = vmatprep.mubr.msk.f32.mxu1 %vm173_vm0, %v118_v6  ;;  %v121_v15 = vld [vmem:[%s6864_s3 + $0x2b8] sm:$0xff]  ;;  %v122_v19 = vld [vmem:[%s6864_s3 + $0x2c0] sm:$0xff]  ;;  %v59_v20 = vld [vmem:[%s6864_s3 + $0xc8] sm:$0xff]  ;;  %vm3412_vm5 = vcmask 1045509   ;;  %vm3415_vm6 = vcmask 1046534   ;;  %vm3418_vm7 = vcmask 1047559  }
  0x33   :  { %v123_v21 = vld [vmem:[%s6864_s3 + $0x2c8] sm:$0xff]  ;;  %v60_v24 = vld [vmem:[%s6864_s3 + $0xd0] sm:$0xff]  ;;  %v61_v26 = vld [vmem:[%s6864_s3 + $0xd8] sm:$0xff] }
  0x34   :  { %3854 = vmatmul.mubr.msk.f32.gmra.mrb[20].mxu0 %vm173_vm0, %v55_v7  ;;  %3950 = vmatmul.mubr.msk.f32.gmra.mrb[20].mxu1 %vm173_vm0, %v119_v8  ;;  %v124_v25 = vld [vmem:[%s6864_s3 + $0x2d0] sm:$0xff]  ;;  %v125_v27 = vld [vmem:[%s6864_s3 + $0x2d8] sm:$0xff]  ;;  %v62_v30 = vld [vmem:[%s6864_s3 + $0xe0] sm:$0xff] }
  0x35   :  { %1657 = vbcast.lane.b32.xlu1 %v1651_v9, 264  ;;  %1653 = vbcast.lane.b32.xlu0 %v1651_v9, 256  ;;  %v126_v31 = vld [vmem:[%s6864_s3 + $0x2e0] sm:$0xff]  ;;  %v63_v32 = vld [vmem:[%s6864_s3 + $0xe8] sm:$0xff]  ;;  %v4431_v36 = vld [vmem:[%s6861_s0 + $0x10] sm:$0xff] }
  0x36   :  { %3856 = vmatprep.mubr.msk.f32.mxu0 %vm173_vm0, %v56_v10  ;;  %3952 = vmatprep.mubr.msk.f32.mxu1 %vm173_vm0, %v120_v13  ;;  %v127_v33 = vld [vmem:[%s6864_s3 + $0x2e8] sm:$0xff]  ;;  %v64_v37 = vld [vmem:[%s6864_s3 + $0xf0] sm:$0xff]  ;;  %v65_v39 = vld [vmem:[%s6864_s3 + $0xf8] sm:$0xff]  ;;  %v1706_v42 = vrot.slane %v4431_v36, %v4140_v12  ;;  %v1717_v48 = vrot.slane %v4431_v36, %v4137_v11  ;;  %v1728_v53 = vrot.slane %v4431_v36, %v4154_v17 }
  0x37   :  { %v128_v38 = vld [vmem:[%s6864_s3 + $0x2f0] sm:$0xff]  ;;  %v129_v40 = vld [vmem:[%s6864_s3 + $0x2f8] sm:$0xff]  ;;  %v66_v43 = vld [vmem:[%s6864_s3 + $0x100] sm:$0xff]  ;;  %v1739_v58 = vrot.slane %v4431_v36, %v4173_v23  ;;  %v1750_v63 = vrot.slane %v4431_v36, %v4194_v29  ;;  %v1761_v4 = vrot.slane %v4431_v36, %v4215_v35  ;;  %v1772_v9 = vrot.slane %v4431_v36, %v4236_v41 }
  0x38   :  { %3857 = vmatmul.mubr.msk.f32.gmra.mrb[22].mxu0 %vm173_vm0, %v57_v14  ;;  %3953 = vmatmul.mubr.msk.f32.gmra.mrb[22].mxu1 %vm173_vm0, %v121_v15  ;;  %v130_v44 = vld [vmem:[%s6864_s3 + $0x300] sm:$0xff]  ;;  %v67_v45 = vld [vmem:[%s6864_s3 + $0x108] sm:$0xff]  ;;  %v68_v49 = vld [vmem:[%s6864_s3 + $0x110] sm:$0xff] }
  0x39   :  { %1668 = vbcast.lane.b32.xlu1 %v1662_v16, 264  ;;  %1664 = vbcast.lane.b32.xlu0 %v1662_v16, 256  ;;  %v131_v46 = vld [vmem:[%s6864_s3 + $0x308] sm:$0xff]  ;;  %v132_v50 = vld [vmem:[%s6864_s3 + $0x310] sm:$0xff]  ;;  %v69_v51 = vld [vmem:[%s6864_s3 + $0x118] sm:$0xff]  ;;  %v1783_v16 = vrot.slane %v4431_v36, %v4257_v47 }
  0x3a   :  { %3859 = vmatprep.mubr.msk.f32.mxu0 %vm173_vm0, %v58_v18  ;;  %3955 = vmatprep.mubr.msk.f32.mxu1 %vm173_vm0, %v122_v19  ;;  %v133_v52 = vld [vmem:[%s6864_s3 + $0x318] sm:$0xff]  ;;  %v70_v54 = vld [vmem:[%s6864_s3 + $0x120] sm:$0xff]  ;;  %v71_v56 = vld [vmem:[%s6864_s3 + $0x128] sm:$0xff] }
  0x3b   :  { %v134_v55 = vld [vmem:[%s6864_s3 + $0x320] sm:$0xff]  ;;  %v135_v57 = vld [vmem:[%s6864_s3 + $0x328] sm:$0xff]  ;;  %v72_v59 = vld [vmem:[%s6864_s3 + $0x130] sm:$0xff] }
  0x3c   :  { %3860 = vmatmul.mubr.msk.f32.gmra.mrb[24].mxu0 %vm173_vm0, %v59_v20  ;;  %3956 = vmatmul.mubr.msk.f32.gmra.mrb[24].mxu1 %vm173_vm0, %v123_v21  ;;  %v136_v60 = vld [vmem:[%s6864_s3 + $0x330] sm:$0xff]  ;;  %v73_v61 = vld [vmem:[%s6864_s3 + $0x138] sm:$0xff]  ;;  %v74_v0 = vld [vmem:[%s6864_s3 + $0x140] sm:$0xff] }
  0x3d   :  { %1679 = vbcast.lane.b32.xlu1 %v1673_v22, 264  ;;  %1675 = vbcast.lane.b32.xlu0 %v1673_v22, 256  ;;  %v137_v62 = vld [vmem:[%s6864_s3 + $0x338] sm:$0xff]  ;;  %v138_v1 = vld [vmem:[%s6864_s3 + $0x340] sm:$0xff]  ;;  %v75_v2 = vld [vmem:[%s6864_s3 + $0x148] sm:$0xff] }
  0x3e   :  { %3862 = vmatprep.mubr.msk.f32.mxu0 %vm173_vm0, %v60_v24  ;;  %3958 = vmatprep.mubr.msk.f32.mxu1 %vm173_vm0, %v124_v25  ;;  %v139_v3 = vld [vmem:[%s6864_s3 + $0x348] sm:$0xff]  ;;  %v76_v5 = vld [vmem:[%s6864_s3 + $0x150] sm:$0xff]  ;;  %v77_v7 = vld [vmem:[%s6864_s3 + $0x158] sm:$0xff] }
  0x3f   :  { %v140_v6 = vld [vmem:[%s6864_s3 + $0x350] sm:$0xff]  ;;  %v141_v8 = vld [vmem:[%s6864_s3 + $0x358] sm:$0xff]  ;;  %v78_v10 = vld [vmem:[%s6864_s3 + $0x160] sm:$0xff] }
  0x40   :  { %3863 = vmatmul.mubr.msk.f32.gmra.mrb[26].mxu0 %vm173_vm0, %v61_v26  ;;  %3959 = vmatmul.mubr.msk.f32.gmra.mrb[26].mxu1 %vm173_vm0, %v125_v27  ;;  %v142_v13 = vld [vmem:[%s6864_s3 + $0x360] sm:$0xff]  ;;  %v79_v14 = vld [vmem:[%s6864_s3 + $0x168] sm:$0xff]  ;;  %v4580_v18 = vld [vmem:[%s6861_s0 + $0x18] sm:$0xff] }
  0x41   :  { %1690 = vbcast.lane.b32.xlu1 %v1684_v28, 264  ;;  %1686 = vbcast.lane.b32.xlu0 %v1684_v28, 256  ;;  %v143_v15 = vld [vmem:[%s6864_s3 + $0x368] sm:$0xff]  ;;  %v80_v19 = vld [vmem:[%s6864_s3 + $0x170] sm:$0xff]  ;;  %v81_v21 = vld [vmem:[%s6864_s3 + $0x178] sm:$0xff]  ;;  %v1794_v24 = vrot.slane %v4580_v18, %v4140_v12  ;;  %v1816_v36 = vrot.slane %v4580_v18, %v4154_v17 }
  0x42   :  { %3865 = vmatprep.mubr.msk.f32.mxu0 %vm173_vm0, %v62_v30  ;;  %3961 = vmatprep.mubr.msk.f32.mxu1 %vm173_vm0, %v126_v31  ;;  %v144_v20 = vld [vmem:[%s6864_s3 + $0x370] sm:$0xff]  ;;  %v145_v22 = vld [vmem:[%s6864_s3 + $0x378] sm:$0xff]  ;;  %v82_v25 = vld [vmem:[%s6864_s3 + $0x180] sm:$0xff]  ;;  %v1805_v30 = vrot.slane %v4580_v18, %v4137_v11 }
  0x43   :  { %v146_v26 = vld [vmem:[%s6864_s3 + $0x380] sm:$0xff]  ;;  %v83_v27 = vld [vmem:[%s6864_s3 + $0x188] sm:$0xff]  ;;  %v84_v31 = vld [vmem:[%s6864_s3 + $0x190] sm:$0xff] }
  0x44   :  { %3866 = vmatmul.mubr.msk.f32.gmra.mrb[28].mxu0 %vm173_vm0, %v63_v32  ;;  %3962 = vmatmul.mubr.msk.f32.gmra.mrb[28].mxu1 %vm173_vm0, %v127_v33  ;;  %v147_v28 = vld [vmem:[%s6864_s3 + $0x388] sm:$0xff]  ;;  %v148_v32 = vld [vmem:[%s6864_s3 + $0x390] sm:$0xff]  ;;  %v85_v33 = vld [vmem:[%s6864_s3 + $0x198] sm:$0xff] }
  0x45   :  { %1701 = vbcast.lane.b32.xlu1 %v1695_v34, 264  ;;  %1697 = vbcast.lane.b32.xlu0 %v1695_v34, 256  ;;  %v149_v34 = vld [vmem:[%s6864_s3 + $0x398] sm:$0xff] }
  0x46   :  { %3868 = vmatprep.mubr.msk.f32.mxu0 %vm173_vm0, %v64_v37  ;;  %3964 = vmatprep.mubr.msk.f32.mxu1 %vm173_vm0, %v128_v38  ;;  %v86_v37 = vld [vmem:[%s6864_s3 + $0x1a0] sm:$0xff] }
  0x47   :  { %v150_v38 = vld [vmem:[%s6864_s3 + $0x3a0] sm:$0xff] }
  0x48   :  { %3869 = vmatmul.mubr.msk.f32.gmra.mrb[30].mxu0 %vm173_vm0, %v65_v39  ;;  %3965 = vmatmul.mubr.msk.f32.gmra.mrb[30].mxu1 %vm173_vm0, %v129_v40  ;;  %v87_v39 = vld [vmem:[%s6864_s3 + $0x1a8] sm:$0xff] }
  0x49   :  { %1712 = vbcast.lane.b32.xlu1 %v1706_v42, 264  ;;  %1708 = vbcast.lane.b32.xlu0 %v1706_v42, 256  ;;  %v151_v40 = vld [vmem:[%s6864_s3 + $0x3a8] sm:$0xff]  ;;  %v1827_v42 = vrot.slane %v4580_v18, %v4173_v23 }
  0x4a   :  { %3871 = vmatprep.mubr.msk.f32.mxu0 %vm173_vm0, %v66_v43  ;;  %3967 = vmatprep.mubr.msk.f32.mxu1 %vm173_vm0, %v130_v44  ;;  %v88_v43 = vld [vmem:[%s6864_s3 + $0x1b0] sm:$0xff] }
  0x4b   :  { %v152_v44 = vld [vmem:[%s6864_s3 + $0x3b0] sm:$0xff] }
  0x4c   :  { %3872 = vmatmul.mubr.msk.f32.gmra.mrb[32].mxu0 %vm173_vm0, %v67_v45  ;;  %3968 = vmatmul.mubr.msk.f32.gmra.mrb[32].mxu1 %vm173_vm0, %v131_v46  ;;  %v89_v45 = vld [vmem:[%s6864_s3 + $0x1b8] sm:$0xff] }
  0x4d   :  { %1723 = vbcast.lane.b32.xlu1 %v1717_v48, 264  ;;  %1719 = vbcast.lane.b32.xlu0 %v1717_v48, 256  ;;  %v153_v46 = vld [vmem:[%s6864_s3 + $0x3b8] sm:$0xff]  ;;  %v1838_v48 = vrot.slane %v4580_v18, %v4194_v29 }
  0x4e   :  { %3874 = vmatprep.mubr.msk.f32.mxu0 %vm173_vm0, %v68_v49  ;;  %3970 = vmatprep.mubr.msk.f32.mxu1 %vm173_vm0, %v132_v50  ;;  %v90_v49 = vld [vmem:[%s6864_s3 + $0x1c0] sm:$0xff] }
  0x4f   :  { %v154_v50 = vld [vmem:[%s6864_s3 + $0x3c0] sm:$0xff] }
  0x50   :  { %3875 = vmatmul.mubr.msk.f32.gmra.mrb[34].mxu0 %vm173_vm0, %v69_v51  ;;  %3971 = vmatmul.mubr.msk.f32.gmra.mrb[34].mxu1 %vm173_vm0, %v133_v52  ;;  %v91_v51 = vld [vmem:[%s6864_s3 + $0x1c8] sm:$0xff]  ;;  %v1849_v52 = vrot.slane %v4580_v18, %v4215_v35 }
  0x51   :  { %1734 = vbcast.lane.b32.xlu1 %v1728_v53, 264  ;;  %1730 = vbcast.lane.b32.xlu0 %v1728_v53, 256  ;;  %v155_v53 = vld [vmem:[%s6864_s3 + $0x3c8] sm:$0xff] }
  0x52   :  { %3877 = vmatprep.mubr.msk.f32.mxu0 %vm173_vm0, %v70_v54  ;;  %3973 = vmatprep.mubr.msk.f32.mxu1 %vm173_vm0, %v134_v55 }
  0x54   :  { %3878 = vmatmul.mubr.msk.f32.gmra.mrb[36].mxu0 %vm173_vm0, %v71_v56  ;;  %3974 = vmatmul.mubr.msk.f32.gmra.mrb[36].mxu1 %vm173_vm0, %v135_v57  ;;  %v92_v56 = vld [vmem:[%s6864_s3 + $0x1d0] sm:$0xff] }
  0x55   :  { %1745 = vbcast.lane.b32.xlu1 %v1739_v58, 264  ;;  %1741 = vbcast.lane.b32.xlu0 %v1739_v58, 256  ;;  %v156_v57 = vld [vmem:[%s6864_s3 + $0x3d0] sm:$0xff]  ;;  %v93_v58 = vld [vmem:[%s6864_s3 + $0x1d8] sm:$0xff] }
  0x56   :  { %3880 = vmatprep.mubr.msk.f32.mxu0 %vm173_vm0, %v72_v59  ;;  %3976 = vmatprep.mubr.msk.f32.mxu1 %vm173_vm0, %v136_v60  ;;  %v1860_v59 = vrot.slane %v4580_v18, %v4236_v41  ;;  %v157_v60 = vld [vmem:[%s6864_s3 + $0x3d8] sm:$0xff] }
  0x58   :  { %3881 = vmatmul.mubr.msk.f32.gmra.mrb[38].mxu0 %vm173_vm0, %v73_v61  ;;  %3977 = vmatmul.mubr.msk.f32.gmra.mrb[38].mxu1 %vm173_vm0, %v137_v62 }
  0x59   :  { %1756 = vbcast.lane.b32.xlu1 %v1750_v63, 264  ;;  %1752 = vbcast.lane.b32.xlu0 %v1750_v63, 256  ;;  %v94_v63 = vld [vmem:[%s6864_s3 + $0x1e0] sm:$0xff] }
  0x5a   :  { %3883 = vmatprep.mubr.msk.f32.mxu0 %vm173_vm0, %v74_v0  ;;  %3979 = vmatprep.mubr.msk.f32.mxu1 %vm173_vm0, %v138_v1  ;;  %v158_v0 = vld [vmem:[%s6864_s3 + $0x3e0] sm:$0xff]  ;;  %v95_v1 = vld [vmem:[%s6864_s3 + $0x1e8] sm:$0xff] }
  0x5c   :  { %3884 = vmatmul.mubr.msk.f32.gmra.mrb[40].mxu0 %vm173_vm0, %v75_v2  ;;  %3980 = vmatmul.mubr.msk.f32.gmra.mrb[40].mxu1 %vm173_vm0, %v139_v3  ;;  %v1871_v2 = vrot.slane %v4580_v18, %v4257_v47  ;;  %v159_v3 = vld [vmem:[%s6864_s3 + $0x3e8] sm:$0xff] }
  0x5d   :  { %1767 = vbcast.lane.b32.xlu1 %v1761_v4, 264  ;;  %1763 = vbcast.lane.b32.xlu0 %v1761_v4, 256  ;;  %v1523_v4 = vld [vmem:[%s6861_s0 + $0x20] sm:$0xff] }
  0x5e   :  { %3886 = vmatprep.mubr.msk.f32.mxu0 %vm173_vm0, %v76_v5  ;;  %3982 = vmatprep.mubr.msk.f32.mxu1 %vm173_vm0, %v140_v6 }
  0x60   :  { %3887 = vmatmul.mubr.msk.f32.gmra.mrb[42].mxu0 %vm173_vm0, %v77_v7  ;;  %3983 = vmatmul.mubr.msk.f32.gmra.mrb[42].mxu1 %vm173_vm0, %v141_v8  ;;  %v96_v7 = vld [vmem:[%s6864_s3 + $0x1f0] sm:$0xff] }
  0x61   :  { %1778 = vbcast.lane.b32.xlu1 %v1772_v9, 264  ;;  %1774 = vbcast.lane.b32.xlu0 %v1772_v9, 256  ;;  %v160_v8 = vld [vmem:[%s6864_s3 + $0x3f0] sm:$0xff]  ;;  %v97_v9 = vld [vmem:[%s6864_s3 + $0x1f8] sm:$0xff] }
  0x62   :  { %3889 = vmatprep.mubr.msk.f32.mxu0 %vm173_vm0, %v78_v10  ;;  %3985 = vmatprep.mubr.msk.f32.mxu1 %vm173_vm0, %v142_v13  ;;  %v1882_v10 = vrot.slane %v1523_v4, %v4140_v12  ;;  %v161_v13 = vld [vmem:[%s6864_s3 + $0x3f8] sm:$0xff] }
  0x64   :  { %3890 = vmatmul.mubr.msk.f32.gmra.mrb[44].mxu0 %vm173_vm0, %v79_v14  ;;  %3986 = vmatmul.mubr.msk.f32.gmra.mrb[44].mxu1 %vm173_vm0, %v143_v15 }
  0x65   :  { %1789 = vbcast.lane.b32.xlu1 %v1783_v16, 264  ;;  %1785 = vbcast.lane.b32.xlu0 %v1783_v16, 256  ;;  %v1893_v16 = vrot.slane %v1523_v4, %v4137_v11 }
  0x66   :  { %3892 = vmatprep.mubr.msk.f32.mxu0 %vm173_vm0, %v80_v19  ;;  %3988 = vmatprep.mubr.msk.f32.mxu1 %vm173_vm0, %v144_v20  ;;  %v1904_v20 = vrot.slane %v1523_v4, %v4154_v17 }
  0x68   :  { %3893 = vmatmul.mubr.msk.f32.gmra.mrb[46].mxu0 %vm173_vm0, %v81_v21  ;;  %3989 = vmatmul.mubr.msk.f32.gmra.mrb[46].mxu1 %vm173_vm0, %v145_v22 }
  0x69   :  { %1800 = vbcast.lane.b32.xlu1 %v1794_v24, 264  ;;  %1796 = vbcast.lane.b32.xlu0 %v1794_v24, 256  ;;  %v1915_v24 = vrot.slane %v1523_v4, %v4173_v23 }
  0x6a   :  { %3895 = vmatprep.mubr.msk.f32.mxu0 %vm173_vm0, %v82_v25  ;;  %3991 = vmatprep.mubr.msk.f32.mxu1 %vm173_vm0, %v146_v26 }
  0x6c   :  { %3896 = vmatmul.mubr.msk.f32.gmra.mrb[48].mxu0 %vm173_vm0, %v83_v27  ;;  %3992 = vmatmul.mubr.msk.f32.gmra.mrb[48].mxu1 %vm173_vm0, %v147_v28  ;;  %v1926_v27 = vrot.slane %v1523_v4, %v4194_v29 }
  0x6d   :  { %1811 = vbcast.lane.b32.xlu1 %v1805_v30, 264  ;;  %1807 = vbcast.lane.b32.xlu0 %v1805_v30, 256 }
  0x6e   :  { %3898 = vmatprep.mubr.msk.f32.mxu0 %vm173_vm0, %v84_v31  ;;  %3994 = vmatprep.mubr.msk.f32.mxu1 %vm173_vm0, %v148_v32  ;;  %v1937_v31 = vrot.slane %v1523_v4, %v4215_v35 }
  0x70   :  { %3899 = vmatmul.mubr.msk.f32.gmra.mrb[50].mxu0 %vm173_vm0, %v85_v33  ;;  %3995 = vmatmul.mubr.msk.f32.gmra.mrb[50].mxu1 %vm173_vm0, %v149_v34  ;;  %v1948_v34 = vrot.slane %v1523_v4, %v4236_v41 }
  0x71   :  { %1822 = vbcast.lane.b32.xlu1 %v1816_v36, 264  ;;  %1818 = vbcast.lane.b32.xlu0 %v1816_v36, 256 }
  0x72   :  { %3901 = vmatprep.mubr.msk.f32.mxu0 %vm173_vm0, %v86_v37  ;;  %3997 = vmatprep.mubr.msk.f32.mxu1 %vm173_vm0, %v150_v38  ;;  %v1959_v38 = vrot.slane %v1523_v4, %v4257_v47 }
  0x74   :  { %3902 = vmatmul.mubr.msk.f32.gmra.mrb[52].mxu0 %vm173_vm0, %v87_v39  ;;  %3998 = vmatmul.mubr.msk.f32.gmra.mrb[52].mxu1 %vm173_vm0, %v151_v40  ;;  %v4798_v39 = vld [vmem:[%s6861_s0 + $0x28] sm:$0xff] }
  0x75   :  { %1833 = vbcast.lane.b32.xlu1 %v1827_v42, 264  ;;  %1829 = vbcast.lane.b32.xlu0 %v1827_v42, 256 }
  0x76   :  { %3904 = vmatprep.mubr.msk.f32.mxu0 %vm173_vm0, %v88_v43  ;;  %4000 = vmatprep.mubr.msk.f32.mxu1 %vm173_vm0, %v152_v44  ;;  %v1970_v43 = vrot.slane %v4798_v39, %v4140_v12 }
  0x78   :  { %3905 = vmatmul.mubr.msk.f32.gmra.mrb[54].mxu0 %vm173_vm0, %v89_v45  ;;  %4001 = vmatmul.mubr.msk.f32.gmra.mrb[54].mxu1 %vm173_vm0, %v153_v46  ;;  %v1981_v46 = vrot.slane %v4798_v39, %v4137_v11 }
  0x79   :  { %1844 = vbcast.lane.b32.xlu1 %v1838_v48, 264  ;;  %1840 = vbcast.lane.b32.xlu0 %v1838_v48, 256  ;;  %v4815_v48 = vld [vmem:[%s6861_s0 + $0x30] sm:$0xff] }
  0x7a   :  { %v4688_v54 = vpop.permute.xlu1 %1543  ;;  %v4690_v55 = vpop.permute.xlu0 %1532  ;;  %3907 = vmatprep.mubr.msk.f32.mxu0 %vm173_vm0, %v90_v49  ;;  %4003 = vmatprep.mubr.msk.f32.mxu1 %vm173_vm0, %v154_v50 }
  0x7c   :  { %3908 = vmatmul.mubr.msk.f32.gmra.mrb[56].mxu0 %vm173_vm0, %v91_v51  ;;  %4004 = vmatmul.mubr.msk.f32.gmra.mrb[56].mxu1 %vm173_vm0, %v155_v53  ;;  %v2069_v51 = vrot.slane %v4815_v48, %v4137_v11 }
  0x7d   :  { %1855 = vbcast.lane.b32.xlu1 %v1849_v52, 264  ;;  %1851 = vbcast.lane.b32.xlu0 %v1849_v52, 256  ;;  %v4826_v52 = vld [vmem:[%s6861_s0 + $0x38] sm:$0xff] }
  0x7e   :  { %3910 = vmatprep.mubr.msk.f32.mxu0 %vm173_vm0, %v92_v56  ;;  %4006 = vmatprep.mubr.msk.f32.mxu1 %vm173_vm0, %v156_v57  ;;  %v2157_v57 = vrot.slane %v4826_v52, %v4137_v11 }
  0x7f   :  { %v4712_v61 = vpop.permute.xlu1 %1547  ;;  %v4714_v62 = vpop.permute.xlu0 %1536 }
  0x80   :  { %3911 = vmatmul.mubr.msk.f32.gmra.mrb[58].mxu0 %vm173_vm0, %v93_v58  ;;  %4007 = vmatmul.mubr.msk.f32.gmra.mrb[58].mxu1 %vm173_vm0, %v157_v60  ;;  %v1992_v60 = vrot.slane %v4798_v39, %v4154_v17 }
  0x81   :  { %1866 = vbcast.lane.b32.xlu1 %v1860_v59, 264  ;;  %1862 = vbcast.lane.b32.xlu0 %v1860_v59, 256 }
  0x82   :  { %3913 = vmatprep.mubr.msk.f32.mxu0 %vm173_vm0, %v94_v63  ;;  %4009 = vmatprep.mubr.msk.f32.mxu1 %vm173_vm0, %v158_v0 }
  0x83   :  { %v4737_v5 = vpop.permute.xlu1 %1558  ;;  %v4739_v6 = vpop.permute.xlu0 %1554 }
  0x84   :  { %3914 = vmatmul.mubr.msk.f32.gmra.mrb[60].mxu0 %vm173_vm0, %v95_v1  ;;  %4010 = vmatmul.mubr.msk.f32.gmra.mrb[60].mxu1 %vm173_vm0, %v159_v3  ;;  %v2080_v1 = vrot.slane %v4815_v48, %v4154_v17  ;;  %v2168_v3 = vrot.slane %v4826_v52, %v4154_v17 }
  0x85   :  { %1877 = vbcast.lane.b32.xlu1 %v1871_v2, 264  ;;  %1873 = vbcast.lane.b32.xlu0 %v1871_v2, 256 }
  0x86   :  { %3916 = vmatprep.mubr.msk.f32.mxu0 %vm173_vm0, %v96_v7  ;;  %4012 = vmatprep.mubr.msk.f32.mxu1 %vm173_vm0, %v160_v8  ;;  %v2003_v8 = vrot.slane %v4798_v39, %v4173_v23 }
  0x87   :  { %v4758_v14 = vpop.permute.xlu1 %1569  ;;  %v4760_v15 = vpop.permute.xlu0 %1565 }
  0x88   :  { %3917 = vmatmul.mubr.msk.f32.gmra.mrb[62].mxu0 %vm173_vm0, %v97_v9  ;;  %4013 = vmatmul.mubr.msk.f32.gmra.mrb[62].mxu1 %vm173_vm0, %v161_v13  ;;  %v2058_v13 = vrot.slane %v4815_v48, %v4140_v12 }
  0x89   :  { %1888 = vbcast.lane.b32.xlu1 %v1882_v10, 264  ;;  %1884 = vbcast.lane.b32.xlu0 %v1882_v10, 256 }
  0x8b   :  { %v4765_v18 = vpop.permute.xlu1 %1580  ;;  %v4767_v19 = vpop.permute.xlu0 %1576 }
  0x8d   :  { %1899 = vbcast.lane.b32.xlu1 %v1893_v16, 264  ;;  %1895 = vbcast.lane.b32.xlu0 %v1893_v16, 256 }
  0x8f   :  { %v4770_v21 = vpop.permute.xlu1 %1591  ;;  %v4772_v22 = vpop.permute.xlu0 %1587 }
  0x91   :  { %1910 = vbcast.lane.b32.xlu1 %v1904_v20, 264  ;;  %1906 = vbcast.lane.b32.xlu0 %v1904_v20, 256  ;;  %v2091_v20 = vrot.slane %v4815_v48, %v4173_v23 }
  0x93   :  { %v4775_v25 = vpop.permute.xlu1 %1602  ;;  %v4777_v26 = vpop.permute.xlu0 %1598 }
  0x95   :  { %1921 = vbcast.lane.b32.xlu1 %v1915_v24, 264  ;;  %1917 = vbcast.lane.b32.xlu0 %v1915_v24, 256 }
  0x97   :  { %v4780_v28 = vpop.permute.xlu1 %1613  ;;  %v4782_v30 = vpop.permute.xlu0 %1609 }
  0x99   :  { %1932 = vbcast.lane.b32.xlu1 %v1926_v27, 264  ;;  %1928 = vbcast.lane.b32.xlu0 %v1926_v27, 256 }
  0x9b   :  { %v4785_v32 = vpop.permute.xlu1 %1624  ;;  %v4787_v33 = vpop.permute.xlu0 %1620 }
  0x9d   :  { %1943 = vbcast.lane.b32.xlu1 %v1937_v31, 264  ;;  %1939 = vbcast.lane.b32.xlu0 %v1937_v31, 256  ;;  %v2146_v31 = vrot.slane %v4826_v52, %v4140_v12 }
  0x9f   :  { %v4790_v36 = vpop.permute.xlu1 %1635  ;;  %v4792_v37 = vpop.permute.xlu0 %1631 }
  0xa1   :  { %1954 = vbcast.lane.b32.xlu1 %v1948_v34, 264  ;;  %1950 = vbcast.lane.b32.xlu0 %v1948_v34, 256 }
  0xa3   :  { %v4800_v40 = vpop.permute.xlu1 %1646  ;;  %v4802_v42 = vpop.permute.xlu0 %1642 }
  0xa5   :  { %1965 = vbcast.lane.b32.xlu1 %v1959_v38, 264  ;;  %1961 = vbcast.lane.b32.xlu0 %v1959_v38, 256 }
  0xa7   :  { %v4806_v44 = vpop.permute.xlu1 %1657  ;;  %v4808_v45 = vpop.permute.xlu0 %1653 }
  0xa9   :  { %1976 = vbcast.lane.b32.xlu1 %v1970_v43, 264  ;;  %1972 = vbcast.lane.b32.xlu0 %v1970_v43, 256  ;;  %v2179_v43 = vrot.slane %v4826_v52, %v4173_v23  ;;  %v2102_v23 = vrot.slane %v4815_v48, %v4194_v29 }
  0xab   :  { %v4817_v49 = vpop.permute.xlu1 %1668  ;;  %v4819_v50 = vpop.permute.xlu0 %1664 }
  0xac   :  { %6876 = vst [vmem:[#allocation5_spill] sm:$0xff] %v4819_v50 }
  0xad   :  { %1987 = vbcast.lane.b32.xlu1 %v1981_v46, 264  ;;  %1983 = vbcast.lane.b32.xlu0 %v1981_v46, 256 }
  0xaf   :  { %v4828_v53 = vpop.permute.xlu1 %1679  ;;  %v4830_v56 = vpop.permute.xlu0 %1675 }
  0xb0   :  { %6877 = vst [vmem:[#allocation6_spill] sm:$0xff] %v4828_v53  ;;  %6878 = vst [vmem:[#allocation7_spill] sm:$0xff] %v4830_v56 }
  0xb1   :  { %2075 = vbcast.lane.b32.xlu1 %v2069_v51, 264  ;;  %2071 = vbcast.lane.b32.xlu0 %v2069_v51, 256 }
  0xb3   :  { %v4834_v58 = vpop.permute.xlu1 %1690  ;;  %v4836_v59 = vpop.permute.xlu0 %1686 }
  0xb4   :  { %6879 = vst [vmem:[#allocation8_spill] sm:$0xff] %v4834_v58  ;;  %6880 = vst [vmem:[#allocation9_spill] sm:$0xff] %v4836_v59 }
  0xb5   :  { %2163 = vbcast.lane.b32.xlu1 %v2157_v57, 264  ;;  %2159 = vbcast.lane.b32.xlu0 %v2157_v57, 256  ;;  %v2014_v57 = vrot.slane %v4798_v39, %v4194_v29 }
  0xb7   :  { %v4840_v63 = vpop.permute.xlu1 %1701  ;;  %v4842_v0 = vpop.permute.xlu0 %1697 }
  0xb8   :  { %6881 = vst [vmem:[#allocation10_spill] sm:$0xff] %v4840_v63  ;;  %6882 = vst [vmem:[#allocation11_spill] sm:$0xff] %v4842_v0 }
  0xb9   :  { %1998 = vbcast.lane.b32.xlu1 %v1992_v60, 264  ;;  %1994 = vbcast.lane.b32.xlu0 %v1992_v60, 256 }
  0xbb   :  { %v4846_v2 = vpop.permute.xlu1 %1712  ;;  %v4848_v11 = vpop.permute.xlu0 %1708 }
  0xbc   :  { %6883 = vst [vmem:[#allocation12_spill] sm:$0xff] %v4846_v2  ;;  %6884 = vst [vmem:[#allocation13_spill] sm:$0xff] %v4848_v11 }
  0xbd   :  { %2086 = vbcast.lane.b32.xlu1 %v2080_v1, 264  ;;  %2082 = vbcast.lane.b32.xlu0 %v2080_v1, 256  ;;  %v3127_v1 = vld [vmem:[%s6863_s2] sm:$0xff] }
  0xbf   :  { %v4852_v4 = vpop.permute.xlu1 %1723  ;;  %v4854_v7 = vpop.permute.xlu0 %1719 }
  0xc0   :  { %6885 = vst [vmem:[#allocation14_spill] sm:$0xff] %v4852_v4  ;;  %6886 = vst [vmem:[#allocation15_spill] sm:$0xff] %v4854_v7 }
  0xc1   :  { %2174 = vbcast.lane.b32.xlu1 %v2168_v3, 264  ;;  %2170 = vbcast.lane.b32.xlu0 %v2168_v3, 256 }
  0xc3   :  { %v4858_v9 = vpop.permute.xlu1 %1734  ;;  %v4860_v10 = vpop.permute.xlu0 %1730 }
  0xc4   :  { %6887 = vst [vmem:[#allocation16_spill] sm:$0xff] %v4858_v9  ;;  %6888 = vst [vmem:[#allocation17_spill] sm:$0xff] %v4860_v10 }
  0xc5   :  { %2009 = vbcast.lane.b32.xlu1 %v2003_v8, 264  ;;  %2005 = vbcast.lane.b32.xlu0 %v2003_v8, 256 }
  0xc7   :  { %v4864_v16 = vpop.permute.xlu1 %1745  ;;  %v4866_v17 = vpop.permute.xlu0 %1741 }
  0xc8   :  { %6889 = vst [vmem:[#allocation18_spill] sm:$0xff] %v4864_v16  ;;  %6890 = vst [vmem:[#allocation19_spill] sm:$0xff] %v4866_v17  ;;  %v4988_v17 = vld [vmem:[%s6862_s1] sm:$0xff] }
  0xc9   :  { %2064 = vbcast.lane.b32.xlu1 %v2058_v13, 264  ;;  %2060 = vbcast.lane.b32.xlu0 %v2058_v13, 256  ;;  %v4901_v13 = vmax.f32 %v3127_v1, 0.0  ;;  %v4920_v1 = vrot.slane %v4798_v39, %v4236_v41 }
  0xcb   :  { %v4870_v24 = vpop.permute.xlu1 %1756  ;;  %v4872_v27 = vpop.permute.xlu0 %1752 }
  0xcc   :  { %6891 = vst [vmem:[#allocation20_spill] sm:$0xff] %v4870_v24  ;;  %6892 = vst [vmem:[#allocation21_spill] sm:$0xff] %v4872_v27 }
  0xcd   :  { %2097 = vbcast.lane.b32.xlu1 %v2091_v20, 264  ;;  %2093 = vbcast.lane.b32.xlu0 %v2091_v20, 256  ;;  %v2190_v20 = vrot.slane %v4826_v52, %v4194_v29  ;;  %v3128_v29 = vld [vmem:[%s6863_s2 + $0x8] sm:$0xff] }
  0xce   :  { %v4954_v24 = vmax.f32 %v3128_v29, 0.0 }
  0xcf   :  { %v4876_v34 = vpop.permute.xlu1 %1767  ;;  %v4878_v38 = vpop.permute.xlu0 %1763 }
  0xd0   :  { %6893 = vst [vmem:[#allocation22_spill] sm:$0xff] %v4876_v34  ;;  %6894 = vst [vmem:[#allocation23_spill] sm:$0xff] %v4878_v38 }
  0xd1   :  { %2152 = vbcast.lane.b32.xlu1 %v2146_v31, 264  ;;  %2148 = vbcast.lane.b32.xlu0 %v2146_v31, 256  ;;  %v3131_v31 = vld [vmem:[%s6863_s2 + $0x20] sm:$0xff] }
  0xd3   :  { %v4882_v46 = vpop.permute.xlu1 %1778  ;;  %v4884_v51 = vpop.permute.xlu0 %1774 }
  0xd4   :  { %6895 = vst [vmem:[#allocation24_spill] sm:$0xff] %v4882_v46  ;;  %6896 = vst [vmem:[#allocation25_spill] sm:$0xff] %v4884_v51  ;;  %v4938_v51 = vld [vmem:[%s6866_s5] ss:$0 sm:$0xff]  ;;  %v4958_v46 = vrot.slane %v4815_v48, %v4257_v47 }
  0xd5   :  { %2185 = vbcast.lane.b32.xlu1 %v2179_v43, 264  ;;  %2181 = vbcast.lane.b32.xlu0 %v2179_v43, 256  ;;  %v2025_v43 = vrot.slane %v4798_v39, %v4215_v35 }
  0xd7   :  { %v4888_v60 = vpop.permute.xlu1 %1789  ;;  %v4890_v12 = vpop.permute.xlu0 %1785 }
  0xd8   :  { %6897 = vst [vmem:[#allocation26_spill] sm:$0xff] %v4888_v60  ;;  %6898 = vst [vmem:[#allocation27_spill] sm:$0xff] %v4890_v12  ;;  %v4929_v60 = vrot.slane %v4815_v48, %v4236_v41  ;;  %v4946_v12 = vrot.slane %v4798_v39, %v4257_v47 }
  0xd9   :  { %2020 = vbcast.lane.b32.xlu1 %v2014_v57, 264  ;;  %2016 = vbcast.lane.b32.xlu0 %v2014_v57, 256  ;;  %v4912_v57 = vrot.slane %v4815_v48, %v4215_v35 }
  0xdb   :  { %v4897_v3 = vpop.permute.xlu1 %1800  ;;  %v4899_v8 = vpop.permute.xlu0 %1796 }
  0xdc   :  { %6899 = vst [vmem:[#allocation28_spill] sm:$0xff] %v4897_v3  ;;  %6900 = vst [vmem:[#allocation29_spill] sm:$0xff] %v4899_v8  ;;  %v4916_v3 = vrot.slane %v4826_v52, %v4215_v35  ;;  %v4933_v35 = vrot.slane %v4826_v52, %v4236_v41  ;;  %v4942_v8 = vmax.f32 %v3131_v31, 0.0 }
  0xdd   :  { %2108 = vbcast.lane.b32.xlu1 %v2102_v23, 264  ;;  %2104 = vbcast.lane.b32.xlu0 %v2102_v23, 256 }
  0xdf   :  { %v4948_v38 = vpop.permute.xlu1 %1811  ;;  %v4950_v34 = vpop.permute.xlu0 %1807 }
  0xe0   :  { %6901 = vst [vmem:[#allocation30_spill] sm:$0xff] %v4948_v38  ;;  %6902 = vst [vmem:[#allocation31_spill] sm:$0xff] %v4950_v34  ;;  %v3825_v31 = vpop.f32.mrb[0].mxu0  ;;  %v3921_v23 = vpop.f32.mrb[0].mxu1  ;;  %v4965_v34 = vrot.slane %v4826_v52, %v4257_v47  ;;  %v4976_v38 = vld [vmem:[%s6862_s1 + $0x8] sm:$0xff] }
  0xe1   :  { %v630_v27 = vadd.f32 %v3825_v31, %v4938_v51  ;;  %v624_v29 = vpop.f32.mrb[1].mxu0  ;;  %2196 = vbcast.lane.b32.xlu1 %v2190_v20, 264  ;;  %2192 = vbcast.lane.b32.xlu0 %v2190_v20, 256  ;;  %v4969_v48 = vadd.f32 %v3921_v23, %v4938_v51  ;;  %v944_v41 = vpop.f32.mrb[1].mxu1 }
  0xe2   :  { %v625_v47 = vadd.f32 %v4938_v51, %v624_v29  ;;  %v4980_v52 = vadd.f32 %v4938_v51, %v944_v41 }
  0xe3   :  { %v1264_v31 = vmax.f32 %v630_v27, 0.0  ;;  %v2232_v39 = vmul.f32 %v4714_v62, %v630_v27  ;;  %v4990_v16 = vpop.permute.xlu1 %1822  ;;  %v4992_v10 = vpop.permute.xlu0 %1818  ;;  %v1328_v29 = vmax.f32 %v4969_v48, 0.0 }
  0xe4   :  { %6903 = vst [vmem:[#allocation32_spill] sm:$0xff] %v4990_v16  ;;  %6904 = vst [vmem:[#allocation33_spill] sm:$0xff] %v4992_v10  ;;  %v1263_v9 = vmax.f32 %v625_v47, 0.0  ;;  %v2231_v20 = vmul.f32 %v4690_v55, %v625_v47  ;;  %v3828_v23 = vpop.f32.mrb[2].mxu0  ;;  %v1327_v7 = vmax.f32 %v4980_v52, 0.0  ;;  %v3924_v62 = vpop.f32.mrb[2].mxu1 }
  0xe5   :  { %1392 = vst.msk [vmem:[%s6868_s7 + $0x8] sm:$0xff] %vm173_vm0, %v1264_v31  ;;  %v2360_v10 = vmul.f32 %v2232_v39, %v4976_v38  ;;  %v640_v16 = vadd.f32 %v3828_v23, %v4938_v51  ;;  %v634_v4 = vpop.f32.mrb[3].mxu0  ;;  %2031 = vbcast.lane.b32.xlu1 %v2025_v43, 264  ;;  %2027 = vbcast.lane.b32.xlu0 %v2025_v43, 256  ;;  %1456 = vst.msk [vmem:[%s6868_s7 + $0x208] sm:$0xff] %vm173_vm0, %v1328_v29  ;;  %v954_v47 = vpop.f32.mrb[3].mxu1 }
  0xe6   :  { %v5010_v55 = vadd.f32 %v3924_v62, %v4938_v51  ;;  %1391 = vst.msk [vmem:[%s6868_s7] sm:$0xff] %vm173_vm0, %v1263_v9  ;;  %v2359_v39 = vmul.f32 %v2231_v20, %v4988_v17  ;;  %v635_v43 = vadd.f32 %v4938_v51, %v634_v4  ;;  %1455 = vst.msk [vmem:[%s6868_s7 + $0x200] sm:$0xff] %vm173_vm0, %v1327_v7 }
  0xe7   :  { %v5024_v23 = vadd.f32 %v4938_v51, %v954_v47  ;;  %v2488_v29 = vsel %vm173_vm0, %v2360_v10, 0.0  ;;  %v1266_v62 = vmax.f32 %v640_v16, 0.0  ;;  %v2234_v27 = vmul.f32 %v4712_v61, %v640_v16  ;;  %v5029_v9 = vpop.permute.xlu1 %1833  ;;  %v5031_v20 = vpop.permute.xlu0 %1829 }
  0xe8   :  { %6905 = vst [vmem:[#allocation34_spill] sm:$0xff] %v5029_v9  ;;  %6906 = vst [vmem:[#allocation35_spill] sm:$0xff] %v5031_v20  ;;  %v1330_v4 = vmax.f32 %v5010_v55, 0.0  ;;  %v2487_v41 = vsel %vm173_vm0, %v2359_v39, 0.0  ;;  %v1265_v11 = vmax.f32 %v635_v43, 0.0  ;;  %v2233_v7 = vmul.f32 %v4688_v54, %v635_v43  ;;  %v3831_v47 = vpop.f32.mrb[4].mxu0 }
  0xe9   :  { %v1329_v2 = vmax.f32 %v5024_v23, 0.0  ;;  %v3927_v31 = vpop.f32.mrb[4].mxu1  ;;  %v2489_v0 = vadd.f32 %v2488_v29, %v2487_v41  ;;  %1394 = vst.msk [vmem:[%s6868_s7 + $0x18] sm:$0xff] %vm173_vm0, %v1266_v62  ;;  %v2362_v61 = vmul.f32 %v2234_v27, %v4976_v38  ;;  %v650_v10 = vadd.f32 %v3831_v47, %v4938_v51  ;;  %v644_v16 = vpop.f32.mrb[5].mxu0  ;;  %2119 = vbcast.lane.b32.xlu1 %v4912_v57, 264 }
  0xea   :  { %2115 = vbcast.lane.b32.xlu0 %v4912_v57, 256  ;;  %1458 = vst.msk [vmem:[%s6868_s7 + $0x218] sm:$0xff] %vm173_vm0, %v1330_v4  ;;  %v964_v54 = vpop.f32.mrb[5].mxu1  ;;  %1393 = vst.msk [vmem:[%s6868_s7 + $0x10] sm:$0xff] %vm173_vm0, %v1265_v11  ;;  %v2361_v27 = vmul.f32 %v2233_v7, %v4988_v17  ;;  %v645_v39 = vadd.f32 %v4938_v51, %v644_v16  ;;  %v5061_v57 = vadd.f32 %v3927_v31, %v4938_v51 }
  0xeb   :  { %1457 = vst.msk [vmem:[%s6868_s7 + $0x210] sm:$0xff] %vm173_vm0, %v1329_v2  ;;  %v5064_v43 = vadd.f32 %v4938_v51, %v964_v54  ;;  %v2490_v29 = vrot.slane %v2489_v0, 4  ;;  %v2497_v62 = vsel %vm173_vm0, %v2362_v61, 0.0  ;;  %v1268_v4 = vmax.f32 %v650_v10, 0.0  ;;  %v5068_v7 = vpop.permute.xlu1 %1844  ;;  %v5070_v47 = vpop.permute.xlu0 %1840 }
  0xec   :  { %v2236_v11 = vmul.f32 %v4737_v5, %v650_v10  ;;  %6907 = vst [vmem:[#allocation36_spill] sm:$0xff] %v5068_v7  ;;  %6908 = vst [vmem:[#allocation37_spill] sm:$0xff] %v5070_v47  ;;  %v2496_v16 = vsel %vm173_vm0, %v2361_v27, 0.0  ;;  %v1267_v41 = vmax.f32 %v645_v39, 0.0  ;;  %v2235_v2 = vmul.f32 %v4739_v6, %v645_v39  ;;  %v3834_v31 = vpop.f32.mrb[6].mxu0  ;;  %v3930_v54 = vpop.f32.mrb[6].mxu1 }
  0xed   :  { %v1332_v20 = vmax.f32 %v5061_v57, 0.0  ;;  %v2491_v9 = vadd.f32 %v2490_v29, %v2489_v0  ;;  %v2498_v63 = vadd.f32 %v2497_v62, %v2496_v16  ;;  %1396 = vst.msk [vmem:[%s6868_s7 + $0x28] sm:$0xff] %vm173_vm0, %v1268_v4  ;;  %v660_v61 = vadd.f32 %v3834_v31, %v4938_v51  ;;  %v654_v10 = vpop.f32.mrb[7].mxu0  ;;  %2207 = vbcast.lane.b32.xlu1 %v4916_v3, 264  ;;  %v5082_v27 = vpop.f32.mrb[7].mxu1 }
  0xee   :  { %v2364_v5 = vmul.f32 %v2236_v11, %v4976_v38  ;;  %1395 = vst.msk [vmem:[%s6868_s7 + $0x20] sm:$0xff] %vm173_vm0, %v1267_v41  ;;  %v2363_v6 = vmul.f32 %v2235_v2, %v4988_v17  ;;  %v655_v0 = vadd.f32 %v4938_v51, %v654_v10  ;;  %2203 = vbcast.lane.b32.xlu0 %v4916_v3, 256  ;;  %v1331_v39 = vmax.f32 %v5064_v43, 0.0 }
  0xef   :  { %1460 = vst.msk [vmem:[%s6868_s7 + $0x228] sm:$0xff] %vm173_vm0, %v1332_v20  ;;  %v5097_v29 = vadd.f32 %v3930_v54, %v4938_v51  ;;  %v2492_v62 = vrot.slane %v2491_v9, 2  ;;  %v2499_v4 = vrot.slane %v2498_v63, 4  ;;  %v1270_v11 = vmax.f32 %v660_v61, 0.0  ;;  %v5100_v16 = vpop.permute.xlu1 %1855  ;;  %v5102_v2 = vpop.permute.xlu0 %1851 }
  0xf0   :  { %v2506_v41 = vsel %vm173_vm0, %v2364_v5, 0.0  ;;  %6909 = vst [vmem:[#allocation38_spill] sm:$0xff] %v5100_v16  ;;  %6910 = vst [vmem:[#allocation39_spill] sm:$0xff] %v5102_v2  ;;  %v2505_v3 = vsel %vm173_vm0, %v2363_v6, 0.0  ;;  %v2238_v31 = vmul.f32 %v4758_v14, %v660_v61  ;;  %v1269_v10 = vmax.f32 %v655_v0, 0.0  ;;  %v3837_v47 = vpop.f32.mrb[8].mxu0 }
  0xf1   :  { %v2237_v20 = vmul.f32 %v4760_v15, %v655_v0  ;;  %1459 = vst.msk [vmem:[%s6868_s7 + $0x220] sm:$0xff] %vm173_vm0, %v1331_v39  ;;  %v5111_v54 = vpop.f32.mrb[8].mxu1  ;;  %v2493_v5 = vadd.f32 %v2492_v62, %v2491_v9  ;;  %v2500_v7 = vadd.f32 %v2499_v4, %v2498_v63  ;;  %v2507_v16 = vadd.f32 %v2506_v41, %v2505_v3  ;;  %v664_v61 = vpop.f32.mrb[9].mxu0 }
  0xf2   :  { %1398 = vst.msk [vmem:[%s6868_s7 + $0x38] sm:$0xff] %vm173_vm0, %v1270_v11  ;;  %v670_v14 = vadd.f32 %v3837_v47, %v4938_v51  ;;  %2042 = vbcast.lane.b32.xlu1 %v4920_v1, 264  ;;  %v5119_v15 = vpop.f32.mrb[9].mxu1  ;;  %v2366_v6 = vmul.f32 %v2238_v31, %v4976_v38  ;;  %1397 = vst.msk [vmem:[%s6868_s7 + $0x30] sm:$0xff] %vm173_vm0, %v1269_v10  ;;  %v665_v9 = vadd.f32 %v4938_v51, %v664_v61 }
  0xf3   :  { %v2365_v63 = vmul.f32 %v2237_v20, %v4988_v17  ;;  %2038 = vbcast.lane.b32.xlu0 %v4920_v1, 256  ;;  %v1334_v47 = vmax.f32 %v5097_v29, 0.0  ;;  %v2494_v0 = vrot.slane %v2493_v5, 1  ;;  %v2501_v39 = vrot.slane %v2500_v7, 2  ;;  %v5130_v41 = vpop.permute.xlu1 %1866  ;;  %v5132_v11 = vpop.permute.xlu0 %1862 }
  0xf4   :  { %v2508_v62 = vrot.slane %v2507_v16, 4  ;;  %v1272_v4 = vmax.f32 %v670_v14, 0.0  ;;  %6911 = vst [vmem:[#allocation40_spill] sm:$0xff] %v5130_v41  ;;  %6912 = vst [vmem:[#allocation41_spill] sm:$0xff] %v5132_v11  ;;  %v2515_v3 = vsel %vm173_vm0, %v2366_v6, 0.0  ;;  %v2240_v10 = vmul.f32 %v4765_v18, %v670_v14  ;;  %v3840_v61 = vpop.f32.mrb[10].mxu0 }
  0xf5   :  { %v2514_v31 = vsel %vm173_vm0, %v2365_v63, 0.0  ;;  %v1271_v20 = vmax.f32 %v665_v9, 0.0  ;;  %1462 = vst.msk [vmem:[%s6868_s7 + $0x238] sm:$0xff] %vm173_vm0, %v1334_v47  ;;  %v5141_v1 = vpop.f32.mrb[10].mxu1  ;;  %v2495_v2 = vadd.f32 %v2494_v0, %v2493_v5  ;;  %v2502_v59 = vadd.f32 %v2501_v39, %v2500_v7  ;;  %v674_v6 = vpop.f32.mrb[11].mxu0 }
  0xf6   :  { %v2509_v41 = vadd.f32 %v2508_v62, %v2507_v16  ;;  %v2516_v58 = vadd.f32 %v2515_v3, %v2514_v31  ;;  %1400 = vst.msk [vmem:[%s6868_s7 + $0x48] sm:$0xff] %vm173_vm0, %v1272_v4  ;;  %2130 = vbcast.lane.b32.xlu1 %v4929_v60, 264  ;;  %v5148_v18 = vpop.f32.mrb[11].mxu1  ;;  %v2368_v14 = vmul.f32 %v2240_v10, %v4976_v38 }
  0xf7   :  { %1399 = vst.msk [vmem:[%s6868_s7 + $0x40] sm:$0xff] %vm173_vm0, %v1271_v20  ;;  %v2239_v7 = vmul.f32 %v4767_v19, %v665_v9  ;;  %v680_v16 = vadd.f32 %v3840_v61, %v4938_v51  ;;  %v675_v5 = vadd.f32 %v4938_v51, %v674_v6  ;;  %2126 = vbcast.lane.b32.xlu0 %v4929_v60, 256  ;;  %v3063_v63 = vmax.f32 %v2495_v2, 0.0  ;;  %v5159_v62 = vpop.permute.xlu1 %1877  ;;  %v5161_v4 = vpop.permute.xlu0 %1873 }
  0xf8   :  { %v2503_v47 = vrot.slane %v2502_v59, 1  ;;  %v2510_v0 = vrot.slane %v2509_v41, 2  ;;  %v2517_v39 = vrot.slane %v2516_v58, 4  ;;  %6913 = vst [vmem:[#allocation42_spill] sm:$0xff] %v5159_v62  ;;  %6914 = vst [vmem:[#allocation43_spill] sm:$0xff] %v5161_v4  ;;  %v2524_v3 = vsel %vm173_vm0, %v2368_v14, 0.0 }
  0xf9   :  { %v2367_v31 = vmul.f32 %v2239_v7, %v4988_v17  ;;  %v1274_v10 = vmax.f32 %v680_v16, 0.0  ;;  %v2242_v19 = vmul.f32 %v4770_v21, %v680_v16  ;;  %v3843_v9 = vpop.f32.mrb[12].mxu0  ;;  %v5166_v20 = vpop.f32.mrb[12].mxu1  ;;  %v3271_v60 = vadd.f32 %v4901_v13, %v3063_v63 }
  0xfa   :  { %v2504_v2 = vadd.f32 %v2503_v47, %v2502_v59  ;;  %v2511_v61 = vadd.f32 %v2510_v0, %v2509_v41  ;;  %v2518_v6 = vadd.f32 %v2517_v39, %v2516_v58  ;;  %v684_v11 = vpop.f32.mrb[13].mxu0  ;;  %2218 = vbcast.lane.b32.xlu1 %v4933_v35, 264  ;;  %v5170_v62 = vpop.f32.mrb[13].mxu1  ;;  %v1273_v7 = vmax.f32 %v675_v5, 0.0 }
  0xfb   :  { %v2523_v14 = vsel %vm173_vm0, %v2367_v31, 0.0  ;;  %1402 = vst.msk [vmem:[%s6868_s7 + $0x58] sm:$0xff] %vm173_vm0, %v1274_v10  ;;  %v2370_v21 = vmul.f32 %v2242_v19, %v4976_v38  ;;  %v2241_v59 = vmul.f32 %v4772_v22, %v675_v5  ;;  %2214 = vbcast.lane.b32.xlu0 %v4933_v35, 256  ;;  %v1889_v47 = vpop.permute.xlu1 %1888  ;;  %v690_v31 = vadd.f32 %v3843_v9, %v4938_v51  ;;  %v3846_v5 = vpop.f32.mrb[14].mxu0 }
  0xfc   :  { %v3064_v58 = vmax.f32 %v2504_v2, 0.0  ;;  %v2512_v41 = vrot.slane %v2511_v61, 1  ;;  %v2519_v16 = vrot.slane %v2518_v6, 2  ;;  %v2525_v63 = vadd.f32 %v2524_v3, %v2523_v14  ;;  %1401 = vst.msk [vmem:[%s6868_s7 + $0x50] sm:$0xff] %vm173_vm0, %v1273_v7  ;;  %v5188_v35 = vpop.f32.mrb[14].mxu1 }
  0xfd   :  { %v2533_v0 = vsel %vm173_vm0, %v2370_v21, 0.0  ;;  %v2369_v39 = vmul.f32 %v2241_v59, %v4988_v17  ;;  %v685_v22 = vadd.f32 %v4938_v51, %v684_v11  ;;  %v6915_v10 = vrot.slane %v4901_v13, 1  ;;  %v5192_v21 = vpop.f32.mrb[15].mxu0  ;;  %v5195_v7 = vpop.f32.mrb[15].mxu1 }
  0xfe   :  { %v2513_v19 = vadd.f32 %v2512_v41, %v2511_v61  ;;  %v2520_v2 = vadd.f32 %v2519_v16, %v2518_v6  ;;  %v2526_v14 = vrot.slane %v2525_v63, 4  ;;  %2053 = vbcast.lane.b32.xlu1 %v4946_v12, 264  ;;  %v1276_v59 = vmax.f32 %v690_v31, 0.0  ;;  %v5203_v41 = vld [vmem:[%s6862_s1 + $0x28] sm:$0xff]  ;;  %v1885_v16 = vpop.permute.xlu0 %1884 }
  0xff   :  { %v3272_v3 = vadd.f32 %v6915_v10, %v3064_v58  ;;  %v2532_v9 = vsel %vm173_vm0, %v2369_v39, 0.0  ;;  %v2244_v11 = vmul.f32 %v4775_v25, %v690_v31  ;;  %v1275_v4 = vmax.f32 %v685_v22, 0.0  ;;  %2049 = vbcast.lane.b32.xlu0 %v4946_v12, 256  ;;  %v5216_v39 = vpop.f32.mrb[16].mxu0  ;;  %v5218_v31 = vpop.f32.mrb[16].mxu1 }
 0x100   :  { %v3065_v58 = vmax.f32 %v2513_v19, 0.0  ;;  %v2521_v61 = vrot.slane %v2520_v2, 1  ;;  %v2527_v6 = vadd.f32 %v2526_v14, %v2525_v63  ;;  %v2534_v10 = vadd.f32 %v2533_v0, %v2532_v9  ;;  %1404 = vst.msk [vmem:[%s6868_s7 + $0x68] sm:$0xff] %vm173_vm0, %v1276_v59  ;;  %v5223_v59 = vpop.f32.mrb[17].mxu0 }
 0x101   :  { %v3399_v56 = vrot.slane %v3272_v3, 7  ;;  %v2372_v25 = vmul.f32 %v2244_v11, %v4976_v38  ;;  %1403 = vst.msk [vmem:[%s6868_s7 + $0x60] sm:$0xff] %vm173_vm0, %v1275_v4  ;;  %v2243_v12 = vmul.f32 %v4777_v26, %v685_v22  ;;  %v2296_v63 = vmul.f32 %v1889_v47, %v4969_v48  ;;  %v5226_v4 = vpop.f32.mrb[17].mxu1 }
 0x102   :  { %v6916_v3 = vrot.slane %v4901_v13, 2  ;;  %v2522_v14 = vadd.f32 %v2521_v61, %v2520_v2  ;;  %v2528_v9 = vrot.slane %v2527_v6, 2  ;;  %2141 = vbcast.lane.b32.xlu1 %v4958_v46, 264  ;;  %6917 = vst [vmem:[#allocation44_spill] sm:$0xff] %v5226_v4  ;;  %v2535_v26 = vrot.slane %v2534_v10, 4  ;;  %v5235_v2 = vld [vmem:[%s6862_s1 + $0x20] sm:$0xff]  ;;  %v1900_v61 = vpop.permute.xlu1 %1899 }
 0x103   :  { %v3401_v0 = vsel %vm3400_vm1, %v3399_v56, %v3271_v60  ;;  %v2542_v48 = vsel %vm173_vm0, %v2372_v25, 0.0  ;;  %v2371_v47 = vmul.f32 %v2243_v12, %v4988_v17  ;;  %v2424_v22 = vmul.f32 %v2296_v63, %v5203_v41  ;;  %2137 = vbcast.lane.b32.xlu0 %v4958_v46, 256  ;;  %v5241_v46 = vpop.f32.mrb[18].mxu0 }
 0x104   :  { %v3273_v19 = vadd.f32 %v6916_v3, %v3065_v58  ;;  %v3066_v60 = vmax.f32 %v2522_v14, 0.0  ;;  %v2529_v11 = vadd.f32 %v2528_v9, %v2527_v6  ;;  %v2295_v58 = vmul.f32 %v1885_v16, %v4980_v52  ;;  %v5248_v16 = vpop.f32.mrb[19].mxu0 }
 0x105   :  { %v2536_v3 = vadd.f32 %v2535_v26, %v2534_v10  ;;  %v2541_v25 = vsel %vm173_vm0, %v2371_v47, 0.0  ;;  %v2776_v12 = vsel %vm173_vm0, %v2424_v22, 0.0  ;;  %v700_v63 = vadd.f32 %v3846_v5, %v4938_v51 }
 0x106   :  { %v3402_v56 = vrot.slane %v3273_v19, 6  ;;  %v5243_v19 = vpop.f32.mrb[18].mxu1  ;;  %v6919_v14 = vrot.slane %v4901_v13, 3  ;;  %v2530_v53 = vrot.slane %v2529_v11, 1  ;;  %v2543_v52 = vadd.f32 %v2542_v48, %v2541_v25  ;;  %2229 = vbcast.lane.b32.xlu1 %v4965_v34, 264 }
 0x107   :  { %6918 = vst [vmem:[#allocation45_spill] sm:$0xff] %v5243_v19  ;;  %v5251_v10 = vpop.f32.mrb[19].mxu1  ;;  %v2537_v26 = vrot.slane %v2536_v3, 2  ;;  %v2423_v5 = vmul.f32 %v2295_v58, %v5235_v2  ;;  %v1278_v47 = vmax.f32 %v700_v63, 0.0  ;;  %v2246_v22 = vmul.f32 %v4780_v28, %v700_v63  ;;  %2225 = vbcast.lane.b32.xlu0 %v4965_v34, 256  ;;  %v5265_v34 = vpop.f32.mrb[20].mxu0 }
 0x108   :  { %v3404_v6 = vsel %vm3403_vm2, %v3402_v56, %v3401_v0  ;;  %v3274_v9 = vadd.f32 %v6919_v14, %v3066_v60  ;;  %6920 = vst [vmem:[#allocation46_spill] sm:$0xff] %v5251_v10  ;;  %v2531_v56 = vadd.f32 %v2530_v53, %v2529_v11  ;;  %v2544_v19 = vrot.slane %v2543_v52, 4  ;;  %v1896_v60 = vpop.permute.xlu0 %1895  ;;  %v5267_v53 = vpop.f32.mrb[20].mxu1 }
 0x109   :  { %v695_v48 = vadd.f32 %v4938_v51, %v5192_v21  ;;  %v2538_v25 = vadd.f32 %v2537_v26, %v2536_v3  ;;  %v2775_v14 = vsel %vm173_vm0, %v2423_v5, 0.0  ;;  %1406 = vst.msk [vmem:[%s6868_s7 + $0x78] sm:$0xff] %vm173_vm0, %v1278_v47  ;;  %v2374_v58 = vmul.f32 %v2246_v22, %v4976_v38  ;;  %6921 = vst [vmem:[#allocation47_spill] sm:$0xff] %v5267_v53  ;;  %v5272_v26 = vpop.f32.mrb[21].mxu1 }
 0x10a   :  { %v3405_v0 = vrot.slane %v3274_v9, 5  ;;  %v2298_v28 = vmul.f32 %v1900_v61, %v5010_v55  ;;  %v3067_v21 = vmax.f32 %v2531_v56, 0.0  ;;  %v2545_v3 = vadd.f32 %v2544_v19, %v2543_v52  ;;  %v5270_v9 = vpop.f32.mrb[21].mxu0  ;;  %6922 = vst [vmem:[#allocation48_spill] sm:$0xff] %v5272_v26 }
 0x10b   :  { %v2777_v63 = vadd.f32 %v2776_v12, %v2775_v14  ;;  %v2539_v5 = vrot.slane %v2538_v25, 1  ;;  %v2551_v47 = vsel %vm173_vm0, %v2374_v58, 0.0  ;;  %v1277_v22 = vmax.f32 %v695_v48, 0.0  ;;  %v5287_v52 = vpop.f32.mrb[22].mxu0  ;;  %v5289_v56 = vpop.f32.mrb[22].mxu1 }
 0x10c   :  { %v3407_v11 = vsel %vm3406_vm3, %v3405_v0, %v3404_v6  ;;  %v2245_v55 = vmul.f32 %v4782_v30, %v695_v48  ;;  %v6923_v61 = vrot.slane %v4901_v13, 4  ;;  %v2546_v53 = vrot.slane %v2545_v3, 2  ;;  %6924 = vst [vmem:[#allocation49_spill] sm:$0xff] %v5289_v56  ;;  %v1907_v50 = vpop.permute.xlu0 %1906 }
 0x10d   :  { %v2778_v4 = vrot.slane %v2777_v63, 4  ;;  %v2426_v6 = vmul.f32 %v2298_v28, %v5203_v41  ;;  %v2540_v0 = vadd.f32 %v2539_v5, %v2538_v25  ;;  %1405 = vst.msk [vmem:[%s6868_s7 + $0x70] sm:$0xff] %vm173_vm0, %v1277_v22  ;;  %v2297_v19 = vmul.f32 %v1896_v60, %v5024_v23  ;;  %v5292_v28 = vpop.f32.mrb[23].mxu0 }
 0x10e   :  { %v3275_v10 = vadd.f32 %v6923_v61, %v3067_v21  ;;  %v2373_v12 = vmul.f32 %v2245_v55, %v4988_v17  ;;  %v710_v30 = vadd.f32 %v5216_v39, %v4938_v51  ;;  %v2547_v14 = vadd.f32 %v2546_v53, %v2545_v3  ;;  %v5294_v21 = vpop.f32.mrb[23].mxu1  ;;  %v1911_v53 = vpop.permute.xlu1 %1910 }
 0x10f   :  { %v2779_v58 = vadd.f32 %v2778_v4, %v2777_v63  ;;  %v2785_v25 = vsel %vm173_vm0, %v2426_v6, 0.0  ;;  %6925 = vst [vmem:[#allocation50_spill] sm:$0xff] %v5294_v21  ;;  %v3068_v5 = vmax.f32 %v2540_v0, 0.0  ;;  %v2425_v60 = vmul.f32 %v2297_v19, %v5235_v2 }
 0x110   :  { %v3408_v48 = vrot.slane %v3275_v10, 4  ;;  %v2550_v23 = vsel %vm173_vm0, %v2373_v12, 0.0  ;;  %v1280_v39 = vmax.f32 %v710_v30, 0.0  ;;  %v2548_v55 = vrot.slane %v2547_v14, 1  ;;  %v5311_v12 = vpop.f32.mrb[24].mxu1 }
 0x111   :  { %v2780_v61 = vrot.slane %v2779_v58, 2  ;;  %v2552_v10 = vadd.f32 %v2551_v47, %v2550_v23  ;;  %v6926_v4 = vrot.slane %v4901_v13, 5  ;;  %v2784_v63 = vsel %vm173_vm0, %v2425_v60, 0.0  ;;  %v5315_v60 = vpop.f32.mrb[25].mxu1 }
 0x112   :  { %v3410_v22 = vsel %vm3409_vm4, %v3408_v48, %v3407_v11  ;;  %1408 = vst.msk [vmem:[%s6868_s7 + $0x88] sm:$0xff] %vm173_vm0, %v1280_v39  ;;  %v2248_v6 = vmul.f32 %v4785_v32, %v710_v30  ;;  %v705_v0 = vadd.f32 %v4938_v51, %v5223_v59  ;;  %v5309_v11 = vpop.f32.mrb[24].mxu0  ;;  %v2549_v47 = vadd.f32 %v2548_v55, %v2547_v14 }
 0x113   :  { %v3276_v3 = vadd.f32 %v6926_v4, %v3068_v5  ;;  %v2781_v19 = vadd.f32 %v2780_v61, %v2779_v58  ;;  %v2553_v48 = vrot.slane %v2552_v10, 4  ;;  %v2786_v5 = vadd.f32 %v2785_v25, %v2784_v63  ;;  %v5313_v23 = vpop.f32.mrb[25].mxu0 }
 0x114   :  { %v2376_v39 = vmul.f32 %v2248_v6, %v4976_v38  ;;  %v1279_v21 = vmax.f32 %v705_v0, 0.0  ;;  %v2247_v32 = vmul.f32 %v4787_v33, %v705_v0  ;;  %v3069_v30 = vmax.f32 %v2549_v47, 0.0  ;;  %v5327_v61 = vpop.f32.mrb[26].mxu0  ;;  %v5329_v33 = vpop.f32.mrb[26].mxu1 }
 0x115   :  { %v3411_v4 = vrot.slane %v3276_v3, 3  ;;  %v2782_v59 = vrot.slane %v2781_v19, 1  ;;  %v2554_v56 = vadd.f32 %v2553_v48, %v2552_v10  ;;  %v2787_v26 = vrot.slane %v2786_v5, 4  ;;  %v5333_v0 = vpop.f32.mrb[27].mxu0  ;;  %v5335_v47 = vpop.f32.mrb[27].mxu1 }
 0x116   :  { %v2560_v58 = vsel %vm173_vm0, %v2376_v39, 0.0  ;;  %1407 = vst.msk [vmem:[%s6868_s7 + $0x80] sm:$0xff] %vm173_vm0, %v1279_v21  ;;  %v2375_v25 = vmul.f32 %v2247_v32, %v4988_v17  ;;  %v2300_v55 = vmul.f32 %v1911_v53, %v5061_v57  ;;  %v6927_v10 = vrot.slane %v4901_v13, 6 }
 0x117   :  { %v3413_v14 = vsel %vm3412_vm5, %v3411_v4, %v3410_v22  ;;  %v2783_v63 = vadd.f32 %v2782_v59, %v2781_v19  ;;  %v2555_v22 = vrot.slane %v2554_v56, 2  ;;  %v2788_v6 = vadd.f32 %v2787_v26, %v2786_v5 }
 0x118   :  { %v3277_v3 = vadd.f32 %v6927_v10, %v3069_v30  ;;  %v2559_v21 = vsel %vm173_vm0, %v2375_v25, 0.0  ;;  %v2428_v48 = vmul.f32 %v2300_v55, %v5203_v41  ;;  %v2299_v57 = vmul.f32 %v1907_v50, %v5064_v43  ;;  %v5344_v10 = vpop.f32.mrb[28].mxu0  ;;  %v5346_v25 = vpop.f32.mrb[28].mxu1 }
 0x119   :  { %v720_v53 = vadd.f32 %v5241_v46, %v4938_v51  ;;  %v3095_v39 = vmax.f32 %v2783_v63, 0.0  ;;  %v2556_v32 = vadd.f32 %v2555_v22, %v2554_v56  ;;  %v2789_v30 = vrot.slane %v2788_v6, 2  ;;  %6928 = vst [vmem:[#allocation51_spill] sm:$0xff] %v5346_v25  ;;  %v5352_v56 = vpop.f32.mrb[29].mxu0 }
 0x11a   :  { %v3414_v4 = vrot.slane %v3277_v3, 2  ;;  %v2561_v19 = vadd.f32 %v2560_v58, %v2559_v21  ;;  %v2794_v26 = vsel %vm173_vm0, %v2428_v48, 0.0  ;;  %v2427_v5 = vmul.f32 %v2299_v57, %v5235_v2  ;;  %v5354_v3 = vpop.f32.mrb[29].mxu1 }
 0x11b   :  { %v1282_v59 = vmax.f32 %v720_v53, 0.0  ;;  %v5350_v43 = vadd.f32 %v4942_v8, %v3095_v39  ;;  %v2557_v46 = vrot.slane %v2556_v32, 1  ;;  %v2790_v55 = vadd.f32 %v2789_v30, %v2788_v6  ;;  %6929 = vst [vmem:[#allocation52_spill] sm:$0xff] %v5354_v3  ;;  %v1918_v39 = vpop.permute.xlu0 %1917 }
 0x11c   :  { %v3416_v50 = vsel %vm3415_vm6, %v3414_v4, %v3413_v14  ;;  %v2562_v58 = vrot.slane %v2561_v19, 4  ;;  %v2793_v63 = vsel %vm173_vm0, %v2427_v5, 0.0  ;;  %v2250_v22 = vmul.f32 %v4790_v36, %v720_v53  ;;  %v1922_v4 = vpop.permute.xlu1 %1921  ;;  %v5370_v36 = vpop.f32.mrb[30].mxu1 }
 0x11d   :  { %1410 = vst.msk [vmem:[%s6868_s7 + $0x98] sm:$0xff] %vm173_vm0, %v1282_v59  ;;  %v715_v14 = vadd.f32 %v4938_v51, %v5248_v16  ;;  %v2558_v21 = vadd.f32 %v2557_v46, %v2556_v32  ;;  %v2791_v48 = vrot.slane %v2790_v55, 1  ;;  %v2795_v6 = vadd.f32 %v2794_v26, %v2793_v63  ;;  %v5368_v59 = vpop.f32.mrb[30].mxu0  ;;  %v5374_v63 = vpop.f32.mrb[31].mxu1 }
 0x11e   :  { %v975_v57 = vadd.f32 %v4938_v51, %v5082_v27  ;;  %v2563_v30 = vadd.f32 %v2562_v58, %v2561_v19  ;;  %v2378_v5 = vmul.f32 %v2250_v22, %v4976_v38  ;;  %v5372_v26 = vpop.f32.mrb[31].mxu0  ;;  %6930 = vst [vmem:[#allocation53_spill] sm:$0xff] %v5374_v63  ;;  %v2302_v58 = vmul.f32 %v1922_v4, %v5097_v29 }
 0x11f   :  { %v1281_v3 = vmax.f32 %v715_v14, 0.0  ;;  %v2249_v25 = vmul.f32 %v4792_v37, %v715_v14  ;;  %v3070_v53 = vmax.f32 %v2558_v21, 0.0  ;;  %v2792_v16 = vadd.f32 %v2791_v48, %v2790_v55  ;;  %v5393_v29 = vpop.f32.mrb[32].mxu0 }
 0x120   :  { %v2796_v32 = vrot.slane %v2795_v6, 4  ;;  %v1333_v46 = vmax.f32 %v975_v57, 0.0  ;;  %v2564_v27 = vrot.slane %v2563_v30, 2  ;;  %v2569_v19 = vsel %vm173_vm0, %v2378_v5, 0.0 }
 0x121   :  { %1409 = vst.msk [vmem:[%s6868_s7 + $0x90] sm:$0xff] %vm173_vm0, %v1281_v3  ;;  %v2377_v37 = vmul.f32 %v2249_v25, %v4988_v17  ;;  %v6931_v55 = vrot.slane %v4901_v13, 7  ;;  %v3096_v14 = vmax.f32 %v2792_v16, 0.0  ;;  %v2301_v48 = vmul.f32 %v1918_v39, %v975_v57  ;;  %v5395_v13 = vpop.f32.mrb[32].mxu1 }
 0x122   :  { %v2797_v21 = vadd.f32 %v2796_v32, %v2795_v6  ;;  %1461 = vst.msk [vmem:[%s6868_s7 + $0x230] sm:$0xff] %vm173_vm0, %v1333_v46  ;;  %v2565_v5 = vadd.f32 %v2564_v27, %v2563_v30  ;;  %v2430_v3 = vmul.f32 %v2302_v58, %v5203_v41  ;;  %v730_v25 = vadd.f32 %v5265_v34, %v4938_v51  ;;  %v5399_v46 = vpop.f32.mrb[33].mxu0  ;;  %v5401_v57 = vpop.f32.mrb[33].mxu1 }
 0x123   :  { %v3278_v22 = vadd.f32 %v6931_v55, %v3070_v53  ;;  %v2568_v63 = vsel %vm173_vm0, %v2377_v37, 0.0  ;;  %v6932_v6 = vrot.slane %v4942_v8, 1  ;;  %v2429_v27 = vmul.f32 %v2301_v48, %v5235_v2 }
 0x124   :  { %v2798_v16 = vrot.slane %v2797_v21, 2  ;;  %v2570_v32 = vadd.f32 %v2569_v19, %v2568_v63  ;;  %v2566_v39 = vrot.slane %v2565_v5, 1  ;;  %v2803_v30 = vsel %vm173_vm0, %v2430_v3, 0.0  ;;  %v5415_v3 = vpop.f32.mrb[34].mxu0 }
 0x125   :  { %v3417_v4 = vrot.slane %v3278_v22, 1  ;;  %v3304_v53 = vadd.f32 %v6932_v6, %v3096_v14  ;;  %v1284_v34 = vmax.f32 %v730_v25, 0.0  ;;  %v2802_v63 = vsel %vm173_vm0, %v2429_v27, 0.0 }
 0x126   :  { %v2799_v55 = vadd.f32 %v2798_v16, %v2797_v21  ;;  %v2571_v22 = vrot.slane %v2570_v32, 4  ;;  %v2567_v14 = vadd.f32 %v2566_v39, %v2565_v5  ;;  %v2252_v19 = vmul.f32 %v4800_v40, %v730_v25 }
 0x127   :  { %v3419_v37 = vsel %vm3418_vm7, %v3417_v4, %v3416_v50  ;;  %v3462_v58 = vrot.slane %v3304_v53, 7  ;;  %1412 = vst.msk [vmem:[%s6868_s7 + $0xa8] sm:$0xff] %vm173_vm0, %v1284_v34  ;;  %v990_v48 = vadd.f32 %v5111_v54, %v4938_v51  ;;  %v5417_v50 = vpop.f32.mrb[34].mxu1  ;;  %v2804_v6 = vadd.f32 %v2803_v30, %v2802_v63  ;;  %v5421_v53 = vpop.f32.mrb[35].mxu0 }
 0x128   :  { %3526 = vst.msk [vmem:[#allocation2] sm:$0xff] %vm173_vm0, %v3419_v37  ;;  %v2800_v5 = vrot.slane %v2799_v55, 1  ;;  %v2572_v4 = vadd.f32 %v2571_v22, %v2570_v32  ;;  %6933 = vst [vmem:[#allocation54_spill] sm:$0xff] %v5421_v53  ;;  %v5423_v16 = vpop.f32.mrb[35].mxu1  ;;  %v3071_v39 = vmax.f32 %v2567_v14, 0.0  ;;  %v2380_v40 = vmul.f32 %v2252_v19, %v4976_v38  ;;  %v1929_v32 = vpop.permute.xlu0 %1928 }
 0x129   :  { %v3463_v21 = vsel %vm3400_vm1, %v3462_v58, %v5350_v43  ;;  %6934 = vst [vmem:[#allocation55_spill] sm:$0xff] %v5423_v16  ;;  %v1336_v25 = vmax.f32 %v990_v48, 0.0  ;;  %v725_v54 = vadd.f32 %v4938_v51, %v5270_v9  ;;  %v2805_v37 = vrot.slane %v2804_v6, 4  ;;  %v1933_v58 = vpop.permute.xlu1 %1932  ;;  %v5441_v63 = vpop.f32.mrb[36].mxu1 }
 0x12a   :  { %v2801_v27 = vadd.f32 %v2800_v5, %v2799_v55  ;;  %v2573_v34 = vrot.slane %v2572_v4, 2  ;;  %v985_v43 = vadd.f32 %v4938_v51, %v5119_v15  ;;  %v5431_v30 = vadd.f32 %v4954_v24, %v3071_v39  ;;  %v5439_v55 = vpop.f32.mrb[36].mxu0  ;;  %6935 = vst [vmem:[#allocation56_spill] sm:$0xff] %v5441_v63  ;;  %v5445_v53 = vpop.f32.mrb[37].mxu1 }
 0x12b   :  { %v2578_v22 = vsel %vm173_vm0, %v2380_v40, 0.0  ;;  %1464 = vst.msk [vmem:[%s6868_s7 + $0x248] sm:$0xff] %vm173_vm0, %v1336_v25  ;;  %v1283_v14 = vmax.f32 %v725_v54, 0.0  ;;  %v2251_v9 = vmul.f32 %v4802_v42, %v725_v54  ;;  %v2806_v5 = vadd.f32 %v2805_v37, %v2804_v6  ;;  %v5443_v39 = vpop.f32.mrb[37].mxu0  ;;  %6936 = vst [vmem:[#allocation57_spill] sm:$0xff] %v5445_v53 }
 0x12c   :  { %v3097_v15 = vmax.f32 %v2801_v27, 0.0  ;;  %v2574_v19 = vadd.f32 %v2573_v34, %v2572_v4  ;;  %v1335_v16 = vmax.f32 %v985_v43, 0.0  ;;  %v2304_v42 = vmul.f32 %v1933_v58, %v990_v48  ;;  %v5465_v58 = vpop.f32.mrb[38].mxu0 }
 0x12d   :  { %1411 = vst.msk [vmem:[%s6868_s7 + $0xa0] sm:$0xff] %vm173_vm0, %v1283_v14  ;;  %v2379_v40 = vmul.f32 %v2251_v9, %v4988_v17  ;;  %v2303_v25 = vmul.f32 %v1929_v32, %v985_v43  ;;  %v740_v54 = vadd.f32 %v5287_v52, %v4938_v51  ;;  %v6937_v4 = vrot.slane %v4942_v8, 2  ;;  %v5467_v32 = vpop.f32.mrb[38].mxu1  ;;  %v5469_v63 = vpop.f32.mrb[39].mxu0 }
 0x12e   :  { %v2575_v27 = vrot.slane %v2574_v19, 1  ;;  %v2807_v34 = vrot.slane %v2806_v5, 2  ;;  %1463 = vst.msk [vmem:[%s6868_s7 + $0x240] sm:$0xff] %vm173_vm0, %v1335_v16  ;;  %v1000_v37 = vadd.f32 %v5141_v1, %v4938_v51  ;;  %v2432_v48 = vmul.f32 %v2304_v42, %v5203_v41  ;;  %v5471_v16 = vpop.f32.mrb[39].mxu1 }
 0x12f   :  { %v3305_v6 = vadd.f32 %v6937_v4, %v3097_v15  ;;  %v2577_v14 = vsel %vm173_vm0, %v2379_v40, 0.0  ;;  %v2431_v43 = vmul.f32 %v2303_v25, %v5235_v2  ;;  %v1286_v52 = vmax.f32 %v740_v54, 0.0  ;;  %6938 = vst [vmem:[#allocation58_spill] sm:$0xff] %v5471_v16 }
 0x130   :  { %v2576_v15 = vadd.f32 %v2575_v27, %v2574_v19  ;;  %v2808_v4 = vadd.f32 %v2807_v34, %v2806_v5  ;;  %v2579_v53 = vadd.f32 %v2578_v22, %v2577_v14  ;;  %v2812_v1 = vsel %vm173_vm0, %v2432_v48, 0.0 }
 0x131   :  { %v3464_v9 = vrot.slane %v3305_v6, 6  ;;  %v2811_v40 = vsel %vm173_vm0, %v2431_v43, 0.0  ;;  %1414 = vst.msk [vmem:[%s6868_s7 + $0xb8] sm:$0xff] %vm173_vm0, %v1286_v52  ;;  %v2254_v42 = vmul.f32 %v4806_v44, %v740_v54  ;;  %v1338_v25 = vmax.f32 %v1000_v37, 0.0  ;;  %v5490_v54 = vpop.f32.mrb[40].mxu0 }
 0x132   :  { %v3072_v5 = vmax.f32 %v2576_v15, 0.0  ;;  %v2809_v22 = vrot.slane %v2808_v4, 1  ;;  %v2580_v6 = vrot.slane %v2579_v53, 4  ;;  %v2813_v27 = vadd.f32 %v2812_v1, %v2811_v40  ;;  %v5500_v15 = vpop.f32.mrb[41].mxu0 }
 0x133   :  { %v3465_v19 = vsel %vm3403_vm2, %v3464_v9, %v3463_v21  ;;  %v2382_v34 = vmul.f32 %v2254_v42, %v4976_v38  ;;  %1466 = vst.msk [vmem:[%s6868_s7 + $0x258] sm:$0xff] %vm173_vm0, %v1338_v25  ;;  %v735_v14 = vadd.f32 %v4938_v51, %v5292_v28  ;;  %v995_v44 = vadd.f32 %v4938_v51, %v5148_v18  ;;  %v5492_v21 = vpop.f32.mrb[40].mxu1  ;;  %v1944_v25 = vpop.permute.xlu1 %1943 }
 0x134   :  { %6939 = vst [vmem:[#allocation59_spill] sm:$0xff] %v5492_v21  ;;  %v6940_v48 = vrot.slane %v4954_v24, 1  ;;  %v2810_v52 = vadd.f32 %v2809_v22, %v2808_v4  ;;  %v2581_v38 = vadd.f32 %v2580_v6, %v2579_v53  ;;  %v5498_v9 = vadd.f32 %v5166_v20, %v4938_v51  ;;  %v5502_v1 = vpop.f32.mrb[41].mxu1  ;;  %v1940_v53 = vpop.permute.xlu0 %1939 }
 0x135   :  { %6941 = vst [vmem:[#allocation60_spill] sm:$0xff] %v5502_v1  ;;  %v2814_v28 = vrot.slane %v2813_v27, 4  ;;  %v2587_v18 = vsel %vm173_vm0, %v2382_v34, 0.0  ;;  %v1285_v40 = vmax.f32 %v735_v14, 0.0  ;;  %v2253_v42 = vmul.f32 %v4808_v45, %v735_v14  ;;  %v5515_v45 = vld [vmem:[%s6866_s5] ss:$0 sm:$0xff] }
 0x136   :  { %v3280_v43 = vadd.f32 %v6940_v48, %v3072_v5  ;;  %v3098_v16 = vmax.f32 %v2810_v52, 0.0  ;;  %v2582_v5 = vrot.slane %v2581_v38, 2  ;;  %v1337_v4 = vmax.f32 %v995_v44, 0.0  ;;  %v5521_v34 = vpop.f32.mrb[42].mxu0 }
 0x137   :  { %v2815_v22 = vadd.f32 %v2814_v28, %v2813_v27  ;;  %1413 = vst.msk [vmem:[%s6868_s7 + $0xb0] sm:$0xff] %vm173_vm0, %v1285_v40  ;;  %v2381_v51 = vmul.f32 %v2253_v42, %v4988_v17  ;;  %v1340_v20 = vmax.f32 %v5498_v9, 0.0  ;;  %v5519_v6 = vadd.f32 %v5515_v45, %v5170_v62  ;;  %v5523_v27 = vpop.f32.mrb[42].mxu1  ;;  %v5535_v62 = vpop.f32.mrb[43].mxu0 }
 0x138   :  { %v3420_v21 = vrot.slane %v3280_v43, 7  ;;  %6942 = vst [vmem:[#allocation61_spill] sm:$0xff] %v5523_v27  ;;  %v6943_v17 = vrot.slane %v4942_v8, 3  ;;  %v2583_v43 = vadd.f32 %v2582_v5, %v2581_v38  ;;  %1465 = vst.msk [vmem:[%s6868_s7 + $0x250] sm:$0xff] %vm173_vm0, %v1337_v4  ;;  %v2306_v52 = vmul.f32 %v1944_v25, %v1000_v37  ;;  %v5537_v28 = vpop.f32.mrb[43].mxu1  ;;  %v1951_v27 = vpop.permute.xlu0 %1950 }
 0x139   :  { %6944 = vst [vmem:[#allocation62_spill] sm:$0xff] %v5537_v28  ;;  %v2816_v40 = vrot.slane %v2815_v22, 2  ;;  %v2586_v42 = vsel %vm173_vm0, %v2381_v51, 0.0  ;;  %1468 = vst.msk [vmem:[%s6868_s7 + $0x268] sm:$0xff] %vm173_vm0, %v1340_v20  ;;  %v750_v51 = vadd.f32 %v5515_v45, %v5309_v11  ;;  %v5555_v20 = vadd.f32 %v5515_v45, %v5188_v35 }
 0x13a   :  { %v5527_v14 = vsel %vm3400_vm1, %v3420_v21, %v5431_v30  ;;  %v3306_v48 = vadd.f32 %v6943_v17, %v3098_v16  ;;  %v1339_v30 = vmax.f32 %v5519_v6, 0.0  ;;  %v2305_v16 = vmul.f32 %v1940_v53, %v995_v44  ;;  %v5557_v44 = vpop.f32.mrb[44].mxu0 }
 0x13b   :  { %v2584_v38 = vrot.slane %v2583_v43, 1  ;;  %v2588_v5 = vadd.f32 %v2587_v18, %v2586_v42  ;;  %v2434_v37 = vmul.f32 %v2306_v52, %v5203_v41  ;;  %v2817_v25 = vadd.f32 %v2816_v40, %v2815_v22  ;;  %6945 = vst [vmem:[#allocation63_spill] sm:$0xff] %v5557_v44  ;;  %v5559_v18 = vpop.f32.mrb[44].mxu1  ;;  %v5565_v52 = vpop.f32.mrb[45].mxu0 }
 0x13c   :  { %v3466_v21 = vrot.slane %v3306_v48, 5  ;;  %1467 = vst.msk [vmem:[%s6868_s7 + $0x260] sm:$0xff] %vm173_vm0, %v1339_v30  ;;  %v2433_v4 = vmul.f32 %v2305_v16, %v5235_v2  ;;  %6946 = vst [vmem:[#allocation64_spill] sm:$0xff] %v5559_v18  ;;  %v5567_v40 = vpop.f32.mrb[45].mxu1  ;;  %v1288_v35 = vmax.f32 %v750_v51, 0.0  ;;  %v2256_v30 = vmul.f32 %v4817_v49, %v750_v51 }
 0x13d   :  { %v2585_v22 = vadd.f32 %v2584_v38, %v2583_v43  ;;  %v2589_v17 = vrot.slane %v2588_v5, 4  ;;  %v2821_v48 = vsel %vm173_vm0, %v2434_v37, 0.0  ;;  %6947 = vst [vmem:[#allocation65_spill] sm:$0xff] %v5565_v52  ;;  %6948 = vst [vmem:[#allocation66_spill] sm:$0xff] %v5567_v40  ;;  %v2818_v11 = vrot.slane %v2817_v25, 1  ;;  %v5579_v43 = vld [vmem:[%s6862_s1 + $0x8] sm:$0xff] }
 0x13e   :  { %v5562_v53 = vsel %vm3406_vm3, %v3466_v21, %v3465_v19  ;;  %v2820_v42 = vsel %vm173_vm0, %v2433_v4, 0.0  ;;  %v1342_v19 = vmax.f32 %v5555_v20, 0.0  ;;  %1416 = vst.msk [vmem:[%s6868_s7 + $0xc8] sm:$0xff] %vm173_vm0, %v1288_v35  ;;  %v2384_v38 = vmul.f32 %v5579_v43, %v2256_v30  ;;  %v5588_v37 = vpop.f32.mrb[46].mxu0  ;;  %v6954_v30 = vld [vmem:[#allocation5_spill] sm:$0xff] }
 0x13f   :  { %v3073_v16 = vmax.f32 %v2585_v22, 0.0  ;;  %v2590_v28 = vadd.f32 %v2589_v17, %v2588_v5  ;;  %v2822_v18 = vadd.f32 %v2821_v48, %v2820_v42  ;;  %v2819_v21 = vadd.f32 %v2818_v11, %v2817_v25  ;;  %6949 = vst [vmem:[#allocation67_spill] sm:$0xff] %v5588_v37  ;;  %v5590_v25 = vpop.f32.mrb[46].mxu1 }
 0x140   :  { %v745_v49 = vadd.f32 %v5515_v45, %v5313_v23  ;;  %v5586_v5 = vadd.f32 %v5515_v45, %v5195_v7  ;;  %6950 = vst [vmem:[#allocation68_spill] sm:$0xff] %v5590_v25  ;;  %v6951_v4 = vrot.slane %v4954_v24, 2  ;;  %1470 = vst.msk [vmem:[%s6868_s7 + $0x278] sm:$0xff] %vm173_vm0, %v1342_v19  ;;  %v5600_v23 = vadd.f32 %v5515_v45, %v5218_v31  ;;  %v5602_v7 = vpop.f32.mrb[47].mxu0  ;;  %v5604_v48 = vpop.f32.mrb[47].mxu1 }
 0x141   :  { %v2591_v22 = vrot.slane %v2590_v28, 2  ;;  %v2823_v17 = vrot.slane %v2822_v18, 4  ;;  %6952 = vst [vmem:[#allocation69_spill] sm:$0xff] %v5602_v7  ;;  %6953 = vst [vmem:[#allocation70_spill] sm:$0xff] %v5604_v48  ;;  %v3099_v11 = vmax.f32 %v2819_v21, 0.0  ;;  %v2596_v42 = vsel %vm173_vm0, %v2384_v38, 0.0 }
 0x142   :  { %v3281_v51 = vadd.f32 %v6951_v4, %v3073_v16  ;;  %v1287_v35 = vmax.f32 %v745_v49, 0.0  ;;  %v2255_v16 = vmul.f32 %v6954_v30, %v745_v49  ;;  %v1955_v4 = vpop.permute.xlu1 %1954  ;;  %v1341_v19 = vmax.f32 %v5586_v5, 0.0  ;;  %v5618_v21 = vld [vmem:[%s6862_s1] sm:$0xff] }
 0x143   :  { %v2592_v40 = vadd.f32 %v2591_v22, %v2590_v28  ;;  %v2824_v37 = vadd.f32 %v2823_v17, %v2822_v18  ;;  %v6955_v31 = vrot.slane %v4942_v8, 4  ;;  %v1344_v28 = vmax.f32 %v5600_v23, 0.0  ;;  %v6956_v18 = vld [vmem:[#allocation44_spill] sm:$0xff]  ;;  %v5628_v22 = vpop.f32.mrb[48].mxu1 }
 0x144   :  { %v3422_v25 = vrot.slane %v3281_v51, 6  ;;  %1415 = vst.msk [vmem:[%s6868_s7 + $0xc0] sm:$0xff] %vm173_vm0, %v1287_v35  ;;  %v2383_v38 = vmul.f32 %v5618_v21, %v2255_v16  ;;  %v5624_v49 = vadd.f32 %v5515_v45, %v6956_v18  ;;  %v5626_v51 = vpop.f32.mrb[48].mxu0  ;;  %6958 = vst [vmem:[#allocation44_spill] sm:$0xff] %v5628_v22  ;;  %v2308_v30 = vmul.f32 %v1955_v4, %v5498_v9 }
 0x145   :  { %v3307_v1 = vadd.f32 %v6955_v31, %v3099_v11  ;;  %6957 = vst [vmem:[#allocation5_spill] sm:$0xff] %v5626_v51  ;;  %v2593_v11 = vrot.slane %v2592_v40, 1  ;;  %v2825_v35 = vrot.slane %v2824_v37, 2  ;;  %1469 = vst.msk [vmem:[%s6868_s7 + $0x270] sm:$0xff] %vm173_vm0, %v1341_v19  ;;  %v5637_v16 = vpop.f32.mrb[49].mxu0  ;;  %v5639_v31 = vpop.f32.mrb[49].mxu1 }
 0x146   :  { %v3423_v17 = vsel %vm3403_vm2, %v3422_v25, %v5527_v14  ;;  %6959 = vst [vmem:[#allocation71_spill] sm:$0xff] %v5637_v16  ;;  %6960 = vst [vmem:[#allocation72_spill] sm:$0xff] %v5639_v31  ;;  %v2595_v48 = vsel %vm173_vm0, %v2383_v38, 0.0  ;;  %v1343_v14 = vmax.f32 %v5624_v49, 0.0  ;;  %v2307_v25 = vmul.f32 %v1951_v27, %v5519_v6  ;;  %v5662_v27 = vpop.f32.mrb[50].mxu0 }
 0x147   :  { %v3468_v18 = vrot.slane %v3307_v1, 4  ;;  %1472 = vst.msk [vmem:[%s6868_s7 + $0x288] sm:$0xff] %vm173_vm0, %v1344_v28  ;;  %v2594_v22 = vadd.f32 %v2593_v11, %v2592_v40  ;;  %v2826_v19 = vadd.f32 %v2825_v35, %v2824_v37  ;;  %v2597_v51 = vadd.f32 %v2596_v42, %v2595_v48  ;;  %v6961_v28 = vld [vmem:[#allocation45_spill] sm:$0xff]  ;;  %v5664_v40 = vpop.f32.mrb[50].mxu1  ;;  %v5667_v11 = vpop.f32.mrb[51].mxu0 }
 0x148   :  { %v2436_v9 = vmul.f32 %v2308_v30, %v5203_v41  ;;  %1471 = vst.msk [vmem:[%s6868_s7 + $0x280] sm:$0xff] %vm173_vm0, %v1343_v14  ;;  %v2435_v1 = vmul.f32 %v2307_v25, %v5235_v2  ;;  %v760_v38 = vadd.f32 %v5515_v45, %v5327_v61  ;;  %v5660_v6 = vadd.f32 %v5515_v45, %v6961_v28  ;;  %v5669_v35 = vpop.f32.mrb[51].mxu1 }
 0x149   :  { %v3469_v4 = vsel %vm3409_vm4, %v3468_v18, %v5562_v53  ;;  %6962 = vst [vmem:[#allocation45_spill] sm:$0xff] %v5662_v27  ;;  %6963 = vst [vmem:[#allocation73_spill] sm:$0xff] %v5664_v40  ;;  %v3074_v37 = vmax.f32 %v2594_v22, 0.0  ;;  %v2827_v53 = vrot.slane %v2826_v19, 1  ;;  %v2598_v48 = vrot.slane %v2597_v51, 4  ;;  %v6966_v18 = vld [vmem:[#allocation6_spill] sm:$0xff] }
 0x14a   :  { %v2830_v42 = vsel %vm173_vm0, %v2436_v9, 0.0  ;;  %6964 = vst [vmem:[#allocation74_spill] sm:$0xff] %v5667_v11  ;;  %6965 = vst [vmem:[#allocation75_spill] sm:$0xff] %v5669_v35  ;;  %v2829_v30 = vsel %vm173_vm0, %v2435_v1, 0.0  ;;  %v1290_v61 = vmax.f32 %v760_v38, 0.0  ;;  %v2258_v14 = vmul.f32 %v6966_v18, %v760_v38  ;;  %v6968_v38 = vld [vmem:[#allocation46_spill] sm:$0xff]  ;;  %v1962_v35 = vpop.permute.xlu0 %1961 }
 0x14b   :  { %v1346_v25 = vmax.f32 %v5660_v6, 0.0  ;;  %v6967_v28 = vrot.slane %v4954_v24, 3  ;;  %v2828_v40 = vadd.f32 %v2827_v53, %v2826_v19  ;;  %v2599_v22 = vadd.f32 %v2598_v48, %v2597_v51  ;;  %v6969_v51 = vld [vmem:[#allocation47_spill] sm:$0xff] }
 0x14c   :  { %v2831_v31 = vadd.f32 %v2830_v42, %v2829_v30  ;;  %1418 = vst.msk [vmem:[%s6868_s7 + $0xd8] sm:$0xff] %vm173_vm0, %v1290_v61  ;;  %v2386_v9 = vmul.f32 %v5579_v43, %v2258_v14  ;;  %v755_v1 = vadd.f32 %v5515_v45, %v5333_v0  ;;  %v5689_v19 = vadd.f32 %v5515_v45, %v6968_v38  ;;  %v1966_v61 = vpop.permute.xlu1 %1965 }
 0x14d   :  { %v3282_v27 = vadd.f32 %v6967_v28, %v3074_v37  ;;  %1474 = vst.msk [vmem:[%s6868_s7 + $0x298] sm:$0xff] %vm173_vm0, %v1346_v25  ;;  %v5693_v37 = vadd.f32 %v5515_v45, %v6969_v51  ;;  %v3100_v48 = vmax.f32 %v2828_v40, 0.0  ;;  %v2600_v42 = vrot.slane %v2599_v22, 2  ;;  %v6970_v25 = vld [vmem:[#allocation7_spill] sm:$0xff] }
 0x14e   :  { %v2832_v30 = vrot.slane %v2831_v31, 4  ;;  %v2605_v18 = vsel %vm173_vm0, %v2386_v9, 0.0  ;;  %v1289_v14 = vmax.f32 %v755_v1, 0.0  ;;  %v2257_v28 = vmul.f32 %v6970_v25, %v755_v1 }
 0x14f   :  { %v3424_v53 = vrot.slane %v3282_v27, 5  ;;  %v1345_v0 = vmax.f32 %v5689_v19, 0.0  ;;  %v6971_v11 = vrot.slane %v4942_v8, 5  ;;  %v2601_v51 = vadd.f32 %v2600_v42, %v2599_v22  ;;  %v5718_v22 = vpop.f32.mrb[52].mxu1 }
 0x150   :  { %v2833_v7 = vadd.f32 %v2832_v30, %v2831_v31  ;;  %1417 = vst.msk [vmem:[%s6868_s7 + $0xd0] sm:$0xff] %vm173_vm0, %v1289_v14  ;;  %v2385_v27 = vmul.f32 %v5618_v21, %v2257_v28  ;;  %v1348_v40 = vmax.f32 %v5693_v37, 0.0  ;;  %v2310_v31 = vmul.f32 %v1966_v61, %v5555_v20  ;;  %6974 = vst [vmem:[#allocation46_spill] sm:$0xff] %v5718_v22  ;;  %v5732_v25 = vpop.f32.mrb[53].mxu1  ;;  %v1977_v44 = vpop.permute.xlu1 %1976 }
 0x151   :  { %v3425_v38 = vsel %vm3406_vm3, %v3424_v53, %v3423_v17  ;;  %v3308_v16 = vadd.f32 %v6971_v11, %v3100_v48  ;;  %1473 = vst.msk [vmem:[%s6868_s7 + $0x290] sm:$0xff] %vm173_vm0, %v1345_v0  ;;  %v6972_v17 = vld [vmem:[#allocation48_spill] sm:$0xff]  ;;  %v5716_v11 = vpop.f32.mrb[52].mxu0  ;;  %v2602_v53 = vrot.slane %v2601_v51, 1  ;;  %v2309_v42 = vmul.f32 %v1962_v35, %v5586_v5  ;;  %6976 = vst [vmem:[#allocation7_spill] sm:$0xff] %v5732_v25 }
 0x152   :  { %v5713_v9 = vadd.f32 %v5515_v45, %v6972_v17  ;;  %6973 = vst [vmem:[#allocation6_spill] sm:$0xff] %v5716_v11  ;;  %v2834_v48 = vrot.slane %v2833_v7, 2  ;;  %v5721_v30 = vpop.f32.mrb[53].mxu0  ;;  %v2604_v14 = vsel %vm173_vm0, %v2385_v27, 0.0  ;;  %1476 = vst.msk [vmem:[%s6868_s7 + $0x2a8] sm:$0xff] %vm173_vm0, %v1348_v40  ;;  %v2438_v61 = vmul.f32 %v2310_v31, %v5203_v41  ;;  %v6977_v31 = vld [vmem:[#allocation8_spill] sm:$0xff] }
 0x153   :  { %v3470_v1 = vrot.slane %v3308_v16, 3  ;;  %6975 = vst [vmem:[#allocation47_spill] sm:$0xff] %v5721_v30  ;;  %v770_v16 = vadd.f32 %v5515_v45, %v5344_v10  ;;  %v2603_v35 = vadd.f32 %v2602_v53, %v2601_v51  ;;  %v2606_v0 = vadd.f32 %v2605_v18, %v2604_v14  ;;  %v6978_v11 = vld [vmem:[#allocation49_spill] sm:$0xff] }
 0x154   :  { %v1347_v20 = vmax.f32 %v5713_v9, 0.0  ;;  %v2835_v28 = vadd.f32 %v2834_v48, %v2833_v7  ;;  %v2839_v27 = vsel %vm173_vm0, %v2438_v61, 0.0  ;;  %v2437_v40 = vmul.f32 %v2309_v42, %v5235_v2 }
 0x155   :  { %v3471_v5 = vsel %vm3412_vm5, %v3470_v1, %v3469_v4  ;;  %v1292_v17 = vmax.f32 %v770_v16, 0.0  ;;  %v2260_v30 = vmul.f32 %v6977_v31, %v770_v16  ;;  %v3075_v10 = vmax.f32 %v2603_v35, 0.0  ;;  %v6979_v1 = vld [vmem:[#allocation50_spill] sm:$0xff] }
 0x156   :  { %1475 = vst.msk [vmem:[%s6868_s7 + $0x2a0] sm:$0xff] %vm173_vm0, %v1347_v20  ;;  %v2836_v22 = vrot.slane %v2835_v28, 1  ;;  %v2607_v25 = vrot.slane %v2606_v0, 4  ;;  %v5744_v4 = vadd.f32 %v5515_v45, %v6978_v11  ;;  %v2838_v7 = vsel %vm173_vm0, %v2437_v40, 0.0  ;;  %v6981_v40 = vld [vmem:[#allocation9_spill] sm:$0xff] }
 0x157   :  { %1420 = vst.msk [vmem:[%s6868_s7 + $0xe8] sm:$0xff] %vm173_vm0, %v1292_v17  ;;  %v2388_v18 = vmul.f32 %v5579_v43, %v2260_v30  ;;  %v765_v51 = vadd.f32 %v5515_v45, %v5352_v56  ;;  %v5756_v53 = vadd.f32 %v5515_v45, %v6979_v1  ;;  %v6980_v48 = vrot.slane %v4954_v24, 4 }
 0x158   :  { %v2837_v42 = vadd.f32 %v2836_v22, %v2835_v28  ;;  %v2608_v14 = vadd.f32 %v2607_v25, %v2606_v0  ;;  %v2840_v20 = vadd.f32 %v2839_v27, %v2838_v7  ;;  %v1350_v16 = vmax.f32 %v5744_v4, 0.0  ;;  %v1973_v27 = vpop.permute.xlu0 %1972 }
 0x159   :  { %v3283_v11 = vadd.f32 %v6980_v48, %v3075_v10  ;;  %v2614_v61 = vsel %vm173_vm0, %v2388_v18, 0.0  ;;  %v1291_v35 = vmax.f32 %v765_v51, 0.0  ;;  %v2259_v30 = vmul.f32 %v6981_v40, %v765_v51  ;;  %v5784_v48 = vpop.f32.mrb[54].mxu0 }
 0x15a   :  { %v3101_v31 = vmax.f32 %v2837_v42, 0.0  ;;  %v2609_v56 = vrot.slane %v2608_v14, 2  ;;  %v2841_v52 = vrot.slane %v2840_v20, 4  ;;  %1478 = vst.msk [vmem:[%s6868_s7 + $0x2b8] sm:$0xff] %vm173_vm0, %v1350_v16  ;;  %v1349_v25 = vmax.f32 %v5756_v53, 0.0 }
 0x15b   :  { %v3426_v17 = vrot.slane %v3283_v11, 4  ;;  %1419 = vst.msk [vmem:[%s6868_s7 + $0xe0] sm:$0xff] %vm173_vm0, %v1291_v35  ;;  %v2387_v22 = vmul.f32 %v5618_v21, %v2259_v30  ;;  %v5775_v28 = vadd.f32 %v5515_v45, %v5311_v12  ;;  %v5779_v0 = vadd.f32 %v5515_v45, %v5315_v60  ;;  %v5786_v11 = vpop.f32.mrb[54].mxu1  ;;  %v5796_v35 = vpop.f32.mrb[55].mxu0 }
 0x15c   :  { %v6982_v7 = vrot.slane %v4942_v8, 6  ;;  %v2610_v51 = vadd.f32 %v2609_v56, %v2608_v14  ;;  %v2842_v1 = vadd.f32 %v2841_v52, %v2840_v20  ;;  %1477 = vst.msk [vmem:[%s6868_s7 + $0x2b0] sm:$0xff] %vm173_vm0, %v1349_v25  ;;  %v3185_v40 = vrot.slane %v4942_v8, 7 }
 0x15d   :  { %v3427_v10 = vsel %vm3409_vm4, %v3426_v17, %v3425_v38  ;;  %v2613_v42 = vsel %vm173_vm0, %v2387_v22, 0.0  ;;  %v1352_v12 = vmax.f32 %v5775_v28, 0.0  ;;  %v1351_v60 = vmax.f32 %v5779_v0, 0.0 }
 0x15e   :  { %v3309_v18 = vadd.f32 %v6982_v7, %v3101_v31  ;;  %v2312_v38 = vmul.f32 %v1977_v44, %v5600_v23  ;;  %v2611_v14 = vrot.slane %v2610_v51, 1  ;;  %v2843_v52 = vrot.slane %v2842_v1, 2  ;;  %v6983_v7 = vld [vmem:[#allocation10_spill] sm:$0xff] }
 0x15f   :  { %v2615_v20 = vadd.f32 %v2614_v61, %v2613_v42  ;;  %1480 = vst.msk [vmem:[%s6868_s7 + $0x2c8] sm:$0xff] %vm173_vm0, %v1352_v12  ;;  %1479 = vst.msk [vmem:[%s6868_s7 + $0x2c0] sm:$0xff] %vm173_vm0, %v1351_v60  ;;  %v2311_v23 = vmul.f32 %v1973_v27, %v5624_v49  ;;  %v780_v61 = vadd.f32 %v5515_v45, %v5368_v59  ;;  %v5815_v42 = vpop.f32.mrb[55].mxu1 }
 0x160   :  { %v3472_v16 = vrot.slane %v3309_v18, 2  ;;  %v2440_v44 = vmul.f32 %v2312_v38, %v5203_v41  ;;  %v2612_v8 = vadd.f32 %v2611_v14, %v2610_v51  ;;  %v2844_v17 = vadd.f32 %v2843_v52, %v2842_v1 }
 0x161   :  { %v2616_v31 = vrot.slane %v2615_v20, 4  ;;  %v2439_v22 = vmul.f32 %v2311_v23, %v5235_v2  ;;  %v1294_v25 = vmax.f32 %v780_v61, 0.0  ;;  %v2262_v18 = vmul.f32 %v6983_v7, %v780_v61 }
 0x162   :  { %v3473_v30 = vsel %vm3415_vm6, %v3472_v16, %v3471_v5  ;;  %v2848_v56 = vsel %vm173_vm0, %v2440_v44, 0.0  ;;  %v3076_v41 = vmax.f32 %v2612_v8, 0.0  ;;  %v2845_v12 = vrot.slane %v2844_v17, 1  ;;  %v6985_v44 = vld [vmem:[#allocation11_spill] sm:$0xff] }
 0x163   :  { %v2617_v49 = vadd.f32 %v2616_v31, %v2615_v20  ;;  %v5819_v59 = vadd.f32 %v5515_v45, %v5329_v33  ;;  %v3163_v5 = vrot.slane %v4954_v24, 6  ;;  %v2847_v27 = vsel %vm173_vm0, %v2439_v22, 0.0  ;;  %1422 = vst.msk [vmem:[%s6868_s7 + $0xf8] sm:$0xff] %vm173_vm0, %v1294_v25  ;;  %v6988_v25 = vld [vmem:[#allocation52_spill] sm:$0xff] }
 0x164   :  { %v2390_v2 = vmul.f32 %v5579_v43, %v2262_v18  ;;  %v775_v51 = vadd.f32 %v5515_v45, %v5372_v26  ;;  %v6984_v1 = vrot.slane %v4954_v24, 5  ;;  %v2846_v38 = vadd.f32 %v2845_v12, %v2844_v17 }
 0x165   :  { %v2618_v33 = vrot.slane %v2617_v49, 2  ;;  %v2849_v16 = vadd.f32 %v2848_v56, %v2847_v27  ;;  %v1354_v52 = vmax.f32 %v5819_v59, 0.0  ;;  %v5846_v17 = vadd.f32 %v5515_v45, %v5335_v47  ;;  %v6986_v56 = vld [vmem:[#allocation51_spill] sm:$0xff]  ;;  %v1988_v27 = vpop.permute.xlu1 %1987 }
 0x166   :  { %v3284_v60 = vadd.f32 %v6984_v1, %v3076_v41  ;;  %v2623_v14 = vsel %vm173_vm0, %v2390_v2, 0.0  ;;  %v1293_v20 = vmax.f32 %v775_v51, 0.0  ;;  %v2261_v23 = vmul.f32 %v6985_v44, %v775_v51  ;;  %v1984_v2 = vpop.permute.xlu0 %1983 }
 0x167   :  { %v3102_v8 = vmax.f32 %v2846_v38, 0.0  ;;  %v2619_v31 = vadd.f32 %v2618_v33, %v2617_v49  ;;  %v2850_v43 = vrot.slane %v2849_v16, 4  ;;  %1482 = vst.msk [vmem:[%s6868_s7 + $0x2d8] sm:$0xff] %vm173_vm0, %v1354_v52  ;;  %v5850_v22 = vadd.f32 %v5515_v45, %v6986_v56 }
 0x168   :  { %v3428_v61 = vrot.slane %v3284_v60, 3  ;;  %1421 = vst.msk [vmem:[%s6868_s7 + $0xf0] sm:$0xff] %vm173_vm0, %v1293_v20  ;;  %v2389_v26 = vmul.f32 %v5618_v21, %v2261_v23  ;;  %v5854_v7 = vadd.f32 %v5515_v45, %v6988_v25  ;;  %v1353_v47 = vmax.f32 %v5846_v17, 0.0 }
 0x169   :  { %6987 = vst [vmem:[#allocation48_spill] sm:$0xff] %v5850_v22  ;;  %v3310_v41 = vadd.f32 %v3185_v40, %v3102_v8  ;;  %v2620_v12 = vrot.slane %v2619_v31, 1  ;;  %v2851_v49 = vadd.f32 %v2850_v43, %v2849_v16  ;;  %v1356_v51 = vmax.f32 %v5850_v22, 0.0  ;;  %v5883_v8 = vld [vmem:[%s6862_s1 + $0x18] sm:$0xff] }
 0x16a   :  { %6989 = vst [vmem:[#allocation8_spill] sm:$0xff] %v5854_v7  ;;  %v3429_v18 = vsel %vm3412_vm5, %v3428_v61, %v3427_v10  ;;  %v2622_v21 = vsel %vm173_vm0, %v2389_v26, 0.0  ;;  %v1355_v1 = vmax.f32 %v5854_v7, 0.0  ;;  %1481 = vst.msk [vmem:[%s6868_s7 + $0x2d0] sm:$0xff] %vm173_vm0, %v1353_v47  ;;  %v2314_v10 = vmul.f32 %v1988_v27, %v5660_v6  ;;  %v6990_v26 = vld [vmem:[#allocation12_spill] sm:$0xff]  ;;  %v5917_v47 = vpop.f32.mrb[56].mxu1 }
 0x16b   :  { %v3474_v60 = vrot.slane %v3310_v41, 1  ;;  %v2621_v38 = vadd.f32 %v2620_v12, %v2619_v31  ;;  %v2852_v33 = vrot.slane %v2851_v49, 2  ;;  %v2624_v52 = vadd.f32 %v2623_v14, %v2622_v21  ;;  %1484 = vst.msk [vmem:[%s6868_s7 + $0x2e8] sm:$0xff] %vm173_vm0, %v1356_v51  ;;  %v5877_v14 = vpop.f32.mrb[56].mxu0  ;;  %v3132_v41 = vld [vmem:[%s6863_s2 + $0x28] sm:$0xff] }
 0x16c   :  { %1483 = vst.msk [vmem:[%s6868_s7 + $0x2e0] sm:$0xff] %vm173_vm0, %v1355_v1  ;;  %v2313_v40 = vmul.f32 %v1984_v2, %v5689_v19  ;;  %v790_v16 = vadd.f32 %v5515_v45, %v5393_v29  ;;  %v5885_v31 = vpop.f32.mrb[57].mxu0  ;;  %v5891_v29 = vld [vmem:[%s6862_s1 + $0x28] sm:$0xff]  ;;  %v5897_v19 = vld [vmem:[%s6862_s1 + $0x20] sm:$0xff]  ;;  %v785_v21 = vadd.f32 %v5515_v45, %v5399_v46 }
 0x16d   :  { %v3475_v20 = vsel %vm3418_vm7, %v3474_v60, %v3473_v30  ;;  %v3077_v44 = vmax.f32 %v2621_v38, 0.0  ;;  %v2853_v23 = vadd.f32 %v2852_v33, %v2851_v49  ;;  %v2625_v61 = vrot.slane %v2624_v52, 4  ;;  %v5922_v38 = vld [vmem:[%s6862_s1 + $0x10] sm:$0xff] }
 0x16e   :  { %3530 = vst.msk [vmem:[#allocation2 + $0x20] sm:$0xff] %vm173_vm0, %v3475_v20  ;;  %v2442_v6 = vmul.f32 %v5891_v29, %v2314_v10  ;;  %v2441_v30 = vmul.f32 %v5897_v19, %v2313_v40  ;;  %v1296_v43 = vmax.f32 %v790_v16, 0.0  ;;  %v2264_v56 = vmul.f32 %v6990_v26, %v790_v16  ;;  %v6993_v40 = vld [vmem:[#allocation13_spill] sm:$0xff]  ;;  %v2076_v20 = vpop.permute.xlu1 %2075 }
 0x16f   :  { %v3285_v25 = vadd.f32 %v3163_v5, %v3077_v44  ;;  %v2626_v12 = vadd.f32 %v2625_v61, %v2624_v52  ;;  %v5906_v49 = vadd.f32 %v5515_v45, %v5370_v36  ;;  %v2854_v1 = vrot.slane %v2853_v23, 1 }
 0x170   :  { %v2857_v27 = vsel %vm173_vm0, %v2442_v6, 0.0  ;;  %v2856_v2 = vsel %vm173_vm0, %v2441_v30, 0.0  ;;  %1424 = vst.msk [vmem:[%s6868_s7 + $0x108] sm:$0xff] %vm173_vm0, %v1296_v43  ;;  %v2392_v5 = vmul.f32 %v2264_v56, %v5883_v8  ;;  %v5924_v33 = vmax.f32 %v3132_v41, 0.0  ;;  %v5950_v56 = vpop.f32.mrb[57].mxu1 }
 0x171   :  { %6991 = vst [vmem:[#allocation49_spill] sm:$0xff] %v5906_v49  ;;  %v3430_v51 = vrot.slane %v3285_v25, 2  ;;  %v2627_v36 = vrot.slane %v2626_v12, 2  ;;  %v2858_v60 = vadd.f32 %v2857_v27, %v2856_v2  ;;  %v1358_v52 = vmax.f32 %v5906_v49, 0.0 }
 0x172   :  { %6992 = vst [vmem:[#allocation50_spill] sm:$0xff] %v5924_v33  ;;  %v1295_v10 = vmax.f32 %v785_v21, 0.0  ;;  %v2263_v16 = vmul.f32 %v6993_v40, %v785_v21  ;;  %v3164_v61 = vrot.slane %v4954_v24, 7  ;;  %v2632_v30 = vsel %vm173_vm0, %v2392_v5, 0.0  ;;  %v6997_v40 = vld [vmem:[#allocation54_spill] sm:$0xff] }
 0x173   :  { %v5929_v46 = vsel %vm3415_vm6, %v3430_v51, %v3429_v18  ;;  %v2628_v44 = vadd.f32 %v2627_v36, %v2626_v12  ;;  %v2859_v6 = vrot.slane %v2858_v60, 4  ;;  %1486 = vst.msk [vmem:[%s6868_s7 + $0x2f8] sm:$0xff] %vm173_vm0, %v1358_v52  ;;  %v6994_v18 = vld [vmem:[#allocation53_spill] sm:$0xff]  ;;  %v5948_v24 = vadd.f32 %v5515_v45, %v5395_v13 }
 0x174   :  { %1423 = vst.msk [vmem:[%s6868_s7 + $0x100] sm:$0xff] %vm173_vm0, %v1295_v10  ;;  %v2391_v43 = vmul.f32 %v2263_v16, %v5922_v38  ;;  %v5944_v26 = vadd.f32 %v5515_v45, %v6994_v18  ;;  %v5952_v25 = vadd.f32 %v2854_v1, %v2853_v23  ;;  %v5956_v27 = vadd.f32 %v5515_v45, %v5401_v57  ;;  %v2072_v57 = vpop.permute.xlu0 %2071 }
 0x175   :  { %v2629_v41 = vrot.slane %v2628_v44, 1  ;;  %v2860_v12 = vadd.f32 %v2859_v6, %v2858_v60  ;;  %v1360_v21 = vmax.f32 %v5948_v24, 0.0  ;;  %v800_v13 = vadd.f32 %v5515_v45, %v5415_v3  ;;  %v6996_v60 = vld [vmem:[#allocation14_spill] sm:$0xff] }
 0x176   :  { %6995 = vst [vmem:[#allocation9_spill] sm:$0xff] %v5944_v26  ;;  %v2631_v2 = vsel %vm173_vm0, %v2391_v43, 0.0  ;;  %v1357_v5 = vmax.f32 %v5944_v26, 0.0  ;;  %v1359_v23 = vmax.f32 %v5956_v27, 0.0  ;;  %v1120_v3 = vadd.f32 %v5515_v45, %v5417_v50  ;;  %v5989_v50 = vpop.f32.mrb[58].mxu0 }
 0x177   :  { %v2630_v51 = vadd.f32 %v2629_v41, %v2628_v44  ;;  %v2861_v36 = vrot.slane %v2860_v12, 2  ;;  %v2633_v52 = vadd.f32 %v2632_v30, %v2631_v2  ;;  %1488 = vst.msk [vmem:[%s6868_s7 + $0x308] sm:$0xff] %vm173_vm0, %v1360_v21  ;;  %v1298_v1 = vmax.f32 %v800_v13, 0.0  ;;  %v5977_v44 = vpop.permute.xlu1 %2163  ;;  %v5987_v41 = vld [vmem:[%s6862_s1 + $0x38] sm:$0xff] }
 0x178   :  { %1485 = vst.msk [vmem:[%s6868_s7 + $0x2f0] sm:$0xff] %vm173_vm0, %v1357_v5  ;;  %v2266_v10 = vmul.f32 %v6996_v60, %v800_v13  ;;  %v795_v16 = vadd.f32 %v5515_v45, %v6997_v40  ;;  %v3186_v30 = vrot.slane %v5924_v33, 1  ;;  %1487 = vst.msk [vmem:[%s6868_s7 + $0x300] sm:$0xff] %vm173_vm0, %v1359_v23  ;;  %v1362_v2 = vmax.f32 %v1120_v3, 0.0  ;;  %v5996_v13 = vpop.f32.mrb[59].mxu0  ;;  %v6998_v60 = vld [vmem:[#allocation15_spill] sm:$0xff] }
 0x179   :  { %v3078_v6 = vmax.f32 %v2630_v51, 0.0  ;;  %v2862_v43 = vadd.f32 %v2861_v36, %v2860_v12  ;;  %v2634_v18 = vrot.slane %v2633_v52, 4  ;;  %1426 = vst.msk [vmem:[%s6868_s7 + $0x118] sm:$0xff] %vm173_vm0, %v1298_v1  ;;  %v2330_v5 = vmul.f32 %v2076_v20, %v1120_v3  ;;  %v6999_v20 = vld [vmem:[#allocation55_spill] sm:$0xff] }
 0x17a   :  { %v2394_v12 = vmul.f32 %v2266_v10, %v5883_v8  ;;  %v1297_v21 = vmax.f32 %v795_v16, 0.0  ;;  %v2265_v40 = vmul.f32 %v6998_v60, %v795_v16  ;;  %v3103_v26 = vmax.f32 %v5952_v25, 0.0  ;;  %1490 = vst.msk [vmem:[%s6868_s7 + $0x318] sm:$0xff] %vm173_vm0, %v1362_v2  ;;  %v6016_v16 = vld [vmem:[%s6862_s1 + $0x30] sm:$0xff]  ;;  %v6019_v2 = vpop.permute.xlu0 %2159 }
 0x17b   :  { %v3286_v51 = vadd.f32 %v3164_v61, %v3078_v6  ;;  %v2863_v36 = vrot.slane %v2862_v43, 1  ;;  %v2635_v23 = vadd.f32 %v2634_v18, %v2633_v52  ;;  %v2458_v1 = vmul.f32 %v2330_v5, %v5987_v41  ;;  %v1999_v5 = vpop.permute.xlu1 %1998 }
 0x17c   :  { %v2641_v49 = vsel %vm173_vm0, %v2394_v12, 0.0  ;;  %1425 = vst.msk [vmem:[%s6868_s7 + $0x110] sm:$0xff] %vm173_vm0, %v1297_v21  ;;  %v1115_v61 = vadd.f32 %v5515_v45, %v6999_v20  ;;  %v2393_v3 = vmul.f32 %v2265_v40, %v5922_v38  ;;  %v810_v40 = vadd.f32 %v5515_v45, %v5439_v55 }
 0x17d   :  { %v3432_v52 = vrot.slane %v3286_v51, 1  ;;  %v2864_v10 = vadd.f32 %v2863_v36, %v2862_v43  ;;  %v2636_v25 = vrot.slane %v2635_v23, 2  ;;  %v2929_v6 = vsel %vm173_vm0, %v2458_v1, 0.0  ;;  %v6034_v1 = vpop.f32.mrb[60].mxu0 }
 0x17e   :  { %v1361_v18 = vmax.f32 %v1115_v61, 0.0  ;;  %v2329_v12 = vmul.f32 %v2072_v57, %v1115_v61  ;;  %v2640_v36 = vsel %vm173_vm0, %v2393_v3, 0.0  ;;  %v3129_v61 = vld [vmem:[%s6863_s2 + $0x10] sm:$0xff]  ;;  %v7000_v3 = vld [vmem:[#allocation16_spill] sm:$0xff] }
 0x17f   :  { %v3433_v21 = vsel %vm3418_vm7, %v3432_v52, %v5929_v46  ;;  %v3104_v51 = vmax.f32 %v2864_v10, 0.0  ;;  %v2637_v43 = vadd.f32 %v2636_v25, %v2635_v23  ;;  %v2642_v60 = vadd.f32 %v2641_v49, %v2640_v36  ;;  %v6043_v36 = vpop.f32.mrb[61].mxu0 }
 0x180   :  { %3527 = vst.msk [vmem:[#allocation2 + $0x8] sm:$0xff] %vm173_vm0, %v3433_v21  ;;  %1489 = vst.msk [vmem:[%s6868_s7 + $0x310] sm:$0xff] %vm173_vm0, %v1361_v18  ;;  %v2457_v57 = vmul.f32 %v2329_v12, %v6016_v16  ;;  %v805_v46 = vadd.f32 %v5515_v45, %v5443_v39  ;;  %v3311_v23 = vadd.f32 %v5924_v33, %v3103_v26  ;;  %v1300_v25 = vmax.f32 %v810_v40, 0.0 }
 0x181   :  { %v3312_v20 = vadd.f32 %v3186_v30, %v3104_v51  ;;  %v2316_v49 = vmul.f32 %v1999_v5, %v5693_v37  ;;  %v2643_v52 = vrot.slane %v2642_v60, 4  ;;  %v2268_v55 = vmul.f32 %v7000_v3, %v810_v40  ;;  %7001 = vst [vmem:[#allocation10_spill] sm:$0xff] %v6043_v36  ;;  %v7002_v30 = vld [vmem:[#allocation17_spill] sm:$0xff]  ;;  %v1995_v51 = vpop.permute.xlu0 %1994 }
 0x182   :  { %v2928_v10 = vsel %vm173_vm0, %v2457_v57, 0.0  ;;  %v2638_v12 = vrot.slane %v2637_v43, 1  ;;  %v1299_v21 = vmax.f32 %v805_v46, 0.0  ;;  %1428 = vst.msk [vmem:[%s6868_s7 + $0x128] sm:$0xff] %vm173_vm0, %v1300_v25  ;;  %v2267_v5 = vmul.f32 %v7002_v30, %v805_v46  ;;  %v7003_v30 = vld [vmem:[#allocation18_spill] sm:$0xff] }
 0x183   :  { %v3476_v18 = vrot.slane %v3312_v20, 7  ;;  %v2930_v39 = vadd.f32 %v2929_v6, %v2928_v10  ;;  %v2644_v26 = vadd.f32 %v2643_v52, %v2642_v60  ;;  %v2396_v37 = vmul.f32 %v2268_v55, %v5883_v8 }
 0x184   :  { %v6054_v40 = vmax.f32 %v3129_v61, 0.0  ;;  %1427 = vst.msk [vmem:[%s6868_s7 + $0x120] sm:$0xff] %vm173_vm0, %v1299_v21  ;;  %v2444_v6 = vmul.f32 %v5891_v29, %v2316_v49  ;;  %v2395_v52 = vmul.f32 %v2267_v5, %v5922_v38  ;;  %v2639_v10 = vadd.f32 %v2638_v12, %v2637_v43 }
 0x185   :  { %v6052_v57 = vsel %vm3400_vm1, %v3476_v18, %v3311_v23  ;;  %v2645_v60 = vrot.slane %v2644_v26, 2  ;;  %v2650_v20 = vsel %vm173_vm0, %v2396_v37, 0.0  ;;  %v2315_v23 = vmul.f32 %v1995_v51, %v5713_v9  ;;  %v7004_v51 = vld [vmem:[#allocation19_spill] sm:$0xff] }
 0x186   :  { %v3165_v46 = vrot.slane %v6054_v40, 1  ;;  %v820_v61 = vadd.f32 %v5515_v45, %v5465_v58  ;;  %v2931_v3 = vrot.slane %v2930_v39, 4  ;;  %v2649_v55 = vsel %vm173_vm0, %v2395_v52, 0.0  ;;  %v6074_v58 = vpop.f32.mrb[62].mxu0 }
 0x187   :  { %v2646_v25 = vadd.f32 %v2645_v60, %v2644_v26  ;;  %v815_v49 = vadd.f32 %v5515_v45, %v5469_v63  ;;  %v2651_v18 = vadd.f32 %v2650_v20, %v2649_v55  ;;  %v2866_v21 = vsel %vm173_vm0, %v2444_v6, 0.0  ;;  %7005 = vst [vmem:[#allocation11_spill] sm:$0xff] %v6074_v58  ;;  %v7006_v63 = vld [vmem:[#allocation56_spill] sm:$0xff]  ;;  %v6091_v22 = vpop.f32.mrb[63].mxu0  ;;  %v7030_v58 = vld [vmem:[#allocation26_spill] sm:$0xff] }
 0x188   :  { %v2443_v37 = vmul.f32 %v5897_v19, %v2315_v23  ;;  %v1302_v43 = vmax.f32 %v820_v61, 0.0  ;;  %v2270_v5 = vmul.f32 %v7003_v30, %v820_v61  ;;  %v3079_v26 = vmax.f32 %v2639_v10, 0.0  ;;  %v7007_v30 = vld [vmem:[#allocation57_spill] sm:$0xff]  ;;  %7008 = vst [vmem:[#allocation51_spill] sm:$0xff] %v6091_v22 }
 0x189   :  { %v2647_v12 = vrot.slane %v2646_v25, 1  ;;  %v1301_v9 = vmax.f32 %v815_v49, 0.0  ;;  %v2269_v7 = vmul.f32 %v7004_v51, %v815_v49  ;;  %v2652_v60 = vrot.slane %v2651_v18, 4  ;;  %v2087_v51 = vpop.permute.xlu1 %2086 }
 0x18a   :  { %v2865_v52 = vsel %vm173_vm0, %v2443_v37, 0.0  ;;  %1430 = vst.msk [vmem:[%s6868_s7 + $0x138] sm:$0xff] %vm173_vm0, %v1302_v43  ;;  %v1130_v6 = vadd.f32 %v5515_v45, %v7006_v63  ;;  %v2398_v61 = vmul.f32 %v2270_v5, %v5883_v8  ;;  %v2932_v55 = vadd.f32 %v2931_v3, %v2930_v39  ;;  %v6099_v39 = vpop.f32.mrb[58].mxu1 }
 0x18b   :  { %v2648_v20 = vadd.f32 %v2647_v12, %v2646_v25  ;;  %v2867_v23 = vadd.f32 %v2866_v21, %v2865_v52  ;;  %1429 = vst.msk [vmem:[%s6868_s7 + $0x130] sm:$0xff] %vm173_vm0, %v1301_v9  ;;  %v2397_v10 = vmul.f32 %v2269_v7, %v5922_v38  ;;  %v2653_v49 = vadd.f32 %v2652_v60, %v2651_v18  ;;  %v2083_v52 = vpop.permute.xlu0 %2082 }
 0x18c   :  { %v1364_v37 = vmax.f32 %v1130_v6, 0.0  ;;  %v1125_v43 = vadd.f32 %v5515_v45, %v7007_v30  ;;  %v2659_v12 = vsel %vm173_vm0, %v2398_v61, 0.0  ;;  %7009 = vst [vmem:[#allocation52_spill] sm:$0xff] %v6099_v39  ;;  %v3287_v3 = vadd.f32 %v6054_v40, %v3079_v26 }
 0x18d   :  { %v3080_v25 = vmax.f32 %v2648_v20, 0.0  ;;  %v2868_v21 = vrot.slane %v2867_v23, 4  ;;  %v2658_v5 = vsel %vm173_vm0, %v2397_v10, 0.0  ;;  %v2654_v63 = vrot.slane %v2653_v49, 2 }
 0x18e   :  { %v2660_v9 = vadd.f32 %v2659_v12, %v2658_v5  ;;  %1492 = vst.msk [vmem:[%s6868_s7 + $0x328] sm:$0xff] %vm173_vm0, %v1364_v37  ;;  %v1363_v7 = vmax.f32 %v1125_v43, 0.0  ;;  %v2332_v20 = vmul.f32 %v2087_v51, %v1130_v6  ;;  %v2933_v30 = vrot.slane %v2932_v55, 2 }
 0x18f   :  { %v3288_v18 = vadd.f32 %v3165_v46, %v3080_v25  ;;  %v2869_v60 = vadd.f32 %v2868_v21, %v2867_v23  ;;  %v2655_v61 = vadd.f32 %v2654_v63, %v2653_v49  ;;  %v2331_v10 = vmul.f32 %v2083_v52, %v1125_v43  ;;  %v6113_v43 = vpop.f32.mrb[59].mxu1 }
 0x190   :  { %v2661_v22 = vrot.slane %v2660_v9, 4  ;;  %1491 = vst.msk [vmem:[%s6868_s7 + $0x320] sm:$0xff] %vm173_vm0, %v1363_v7  ;;  %v2460_v37 = vmul.f32 %v2332_v20, %v5987_v41  ;;  %v830_v39 = vadd.f32 %v5515_v45, %v5490_v54  ;;  %v3166_v46 = vrot.slane %v6054_v40, 2  ;;  %7010 = vst [vmem:[#allocation12_spill] sm:$0xff] %v6113_v43 }
 0x191   :  { %v3434_v12 = vrot.slane %v3288_v18, 7  ;;  %v2870_v5 = vrot.slane %v2869_v60, 2  ;;  %v2656_v26 = vrot.slane %v2655_v61, 1  ;;  %v2459_v23 = vmul.f32 %v2331_v10, %v6016_v16 }
 0x192   :  { %v2662_v6 = vadd.f32 %v2661_v22, %v2660_v9  ;;  %v2938_v25 = vsel %vm173_vm0, %v2460_v37, 0.0  ;;  %v1304_v21 = vmax.f32 %v830_v39, 0.0  ;;  %v2934_v52 = vadd.f32 %v2933_v30, %v2932_v55  ;;  %v7011_v22 = vld [vmem:[#allocation20_spill] sm:$0xff] }
 0x193   :  { %v3435_v49 = vsel %vm3400_vm1, %v3434_v12, %v3287_v3  ;;  %v2871_v51 = vadd.f32 %v2870_v5, %v2869_v60  ;;  %v2657_v63 = vadd.f32 %v2656_v26, %v2655_v61  ;;  %v2937_v18 = vsel %vm173_vm0, %v2459_v23, 0.0 }
 0x194   :  { %v2663_v7 = vrot.slane %v2662_v6, 2  ;;  %v2939_v20 = vadd.f32 %v2938_v25, %v2937_v18  ;;  %1432 = vst.msk [vmem:[%s6868_s7 + $0x148] sm:$0xff] %vm173_vm0, %v1304_v21  ;;  %v2272_v9 = vmul.f32 %v7011_v22, %v830_v39  ;;  %v825_v3 = vadd.f32 %v5515_v45, %v5500_v15  ;;  %v7012_v25 = vld [vmem:[#allocation21_spill] sm:$0xff] }
 0x195   :  { %v2872_v54 = vrot.slane %v2871_v51, 1  ;;  %v3081_v60 = vmax.f32 %v2657_v63, 0.0  ;;  %v3187_v10 = vrot.slane %v5924_v33, 2  ;;  %v840_v30 = vadd.f32 %v5515_v45, %v5521_v34  ;;  %v7013_v34 = vld [vmem:[#allocation22_spill] sm:$0xff] }
 0x196   :  { %v2664_v55 = vadd.f32 %v2663_v7, %v2662_v6  ;;  %v3167_v12 = vrot.slane %v6054_v40, 3  ;;  %v2400_v5 = vmul.f32 %v2272_v9, %v5883_v8  ;;  %v1303_v37 = vmax.f32 %v825_v3, 0.0 }
 0x197   :  { %v2873_v61 = vadd.f32 %v2872_v54, %v2871_v51  ;;  %v3289_v26 = vadd.f32 %v3166_v46, %v3081_v60  ;;  %v2271_v39 = vmul.f32 %v7012_v25, %v825_v3  ;;  %v1306_v21 = vmax.f32 %v840_v30, 0.0  ;;  %v3133_v51 = vld [vmem:[%s6863_s2 + $0x30] sm:$0xff]  ;;  %v6145_v60 = vpop.permute.xlu1 %2174 }
 0x198   :  { %v2665_v23 = vrot.slane %v2664_v55, 1  ;;  %v2935_v18 = vrot.slane %v2934_v52, 1  ;;  %v2668_v63 = vsel %vm173_vm0, %v2400_v5, 0.0  ;;  %1431 = vst.msk [vmem:[%s6868_s7 + $0x140] sm:$0xff] %vm173_vm0, %v1303_v37  ;;  %v2274_v6 = vmul.f32 %v7013_v34, %v840_v30 }
 0x199   :  { %v3105_v15 = vmax.f32 %v2873_v61, 0.0  ;;  %v3436_v46 = vrot.slane %v3289_v26, 6  ;;  %v2399_v54 = vmul.f32 %v2271_v39, %v5922_v38  ;;  %1434 = vst.msk [vmem:[%s6868_s7 + $0x158] sm:$0xff] %vm173_vm0, %v1306_v21  ;;  %v835_v22 = vadd.f32 %v5515_v45, %v5535_v62  ;;  %v6152_v39 = vpop.permute.xlu0 %2170 }
 0x19a   :  { %v2666_v7 = vadd.f32 %v2665_v23, %v2664_v55  ;;  %v2940_v3 = vrot.slane %v2939_v20, 4  ;;  %v2402_v30 = vmul.f32 %v2274_v6, %v5883_v8  ;;  %v6150_v26 = vmax.f32 %v3133_v51, 0.0 }
 0x19b   :  { %v3313_v9 = vadd.f32 %v3187_v10, %v3105_v15  ;;  %v3437_v61 = vsel %vm3403_vm2, %v3436_v46, %v3435_v49  ;;  %v2667_v55 = vsel %vm173_vm0, %v2399_v54, 0.0  ;;  %v1305_v37 = vmax.f32 %v835_v22, 0.0  ;;  %v7014_v10 = vld [vmem:[#allocation23_spill] sm:$0xff]  ;;  %v6170_v46 = vpop.f32.mrb[60].mxu1 }
 0x19c   :  { %v3082_v5 = vmax.f32 %v2666_v7, 0.0  ;;  %v2669_v25 = vadd.f32 %v2668_v63, %v2667_v55  ;;  %v2936_v21 = vadd.f32 %v2935_v18, %v2934_v52  ;;  %v2273_v15 = vmul.f32 %v7014_v10, %v835_v22  ;;  %7016 = vst [vmem:[#allocation53_spill] sm:$0xff] %v6170_v46  ;;  %v6182_v22 = vpop.f32.mrb[61].mxu1  ;;  %v7020_v10 = vld [vmem:[#allocation24_spill] sm:$0xff] }
 0x19d   :  { %v3478_v23 = vrot.slane %v3313_v9, 6  ;;  %1433 = vst.msk [vmem:[%s6868_s7 + $0x150] sm:$0xff] %vm173_vm0, %v1305_v37  ;;  %v6161_v49 = vadd.f32 %v5515_v45, %v5467_v32  ;;  %v2941_v63 = vadd.f32 %v2940_v3, %v2939_v20  ;;  %v2677_v52 = vsel %vm173_vm0, %v2402_v30, 0.0  ;;  %v6173_v32 = vpop.permute.xlu1 %2009  ;;  %v6178_v45 = vld [vmem:[%s6866_s5] ss:$0 sm:$0xff]  ;;  %7018 = vst [vmem:[#allocation14_spill] sm:$0xff] %v6182_v22 }
 0x19e   :  { %v3290_v62 = vadd.f32 %v3167_v12, %v3082_v5  ;;  %v2670_v6 = vrot.slane %v2669_v25, 4  ;;  %v2401_v12 = vmul.f32 %v2273_v15, %v5922_v38  ;;  %v3193_v7 = vrot.slane %v6150_v26, 1  ;;  %v7019_v5 = vld [vmem:[#allocation58_spill] sm:$0xff] }
 0x19f   :  { %v6165_v34 = vsel %vm3403_vm2, %v3478_v23, %v6052_v57  ;;  %v1366_v18 = vmax.f32 %v6161_v49, 0.0  ;;  %v7017_v57 = vld [vmem:[#allocation63_spill] sm:$0xff]  ;;  %v3112_v9 = vmax.f32 %v2936_v21, 0.0  ;;  %v6194_v55 = vadd.f32 %v6178_v45, %v7019_v5 }
 0x1a0   :  { %7015 = vst [vmem:[#allocation13_spill] sm:$0xff] %v6165_v34  ;;  %v3438_v51 = vrot.slane %v3290_v62, 5  ;;  %v2671_v54 = vadd.f32 %v2670_v6, %v2669_v25  ;;  %v850_v20 = vadd.f32 %v6178_v45, %v7017_v57  ;;  %v2676_v30 = vsel %vm173_vm0, %v2401_v12, 0.0  ;;  %v6196_v62 = vpop.permute.xlu0 %2005  ;;  %v7021_v6 = vld [vmem:[#allocation65_spill] sm:$0xff]  ;;  %v7024_v34 = vld [vmem:[#allocation60_spill] sm:$0xff] }
 0x1a1   :  { %1494 = vst.msk [vmem:[%s6868_s7 + $0x338] sm:$0xff] %vm173_vm0, %v1366_v18  ;;  %v2942_v37 = vrot.slane %v2941_v63, 2  ;;  %v2678_v25 = vadd.f32 %v2677_v52, %v2676_v30  ;;  %v1365_v15 = vmax.f32 %v6194_v55, 0.0  ;;  %v6202_v18 = vadd.f32 %v3193_v7, %v3112_v9  ;;  %v7022_v30 = vld [vmem:[#allocation25_spill] sm:$0xff] }
 0x1a2   :  { %v6185_v3 = vsel %vm3406_vm3, %v3438_v51, %v3437_v61  ;;  %v2672_v23 = vrot.slane %v2671_v54, 2  ;;  %v1308_v21 = vmax.f32 %v850_v20, 0.0  ;;  %v2276_v61 = vmul.f32 %v7020_v10, %v850_v20  ;;  %v2065_v10 = vpop.permute.xlu1 %2064 }
 0x1a3   :  { %v845_v51 = vadd.f32 %v6178_v45, %v7021_v6  ;;  %v2679_v57 = vrot.slane %v2678_v25, 4  ;;  %1493 = vst.msk [vmem:[%s6868_s7 + $0x330] sm:$0xff] %vm173_vm0, %v1365_v15  ;;  %v3168_v7 = vrot.slane %v6054_v40, 4  ;;  %v2943_v6 = vadd.f32 %v2942_v37, %v2941_v63  ;;  %v7023_v15 = vld [vmem:[#allocation59_spill] sm:$0xff]  ;;  %v7025_v63 = vld [vmem:[#allocation61_spill] sm:$0xff] }
 0x1a4   :  { %v2673_v12 = vadd.f32 %v2672_v23, %v2671_v54  ;;  %1436 = vst.msk [vmem:[%s6868_s7 + $0x168] sm:$0xff] %vm173_vm0, %v1308_v21  ;;  %v2404_v52 = vmul.f32 %v2276_v61, %v5883_v8  ;;  %v6232_v37 = vadd.f32 %v6178_v45, %v7025_v63 }
 0x1a5   :  { %v1307_v20 = vmax.f32 %v845_v51, 0.0  ;;  %v2275_v5 = vmul.f32 %v7022_v30, %v845_v51  ;;  %v2680_v9 = vadd.f32 %v2679_v57, %v2678_v25  ;;  %v6224_v51 = vadd.f32 %v6178_v45, %v7023_v15  ;;  %v2061_v57 = vpop.permute.xlu0 %2060 }
 0x1a6   :  { %v2674_v23 = vrot.slane %v2673_v12, 1  ;;  %v2686_v21 = vsel %vm173_vm0, %v2404_v52, 0.0  ;;  %v6228_v25 = vadd.f32 %v6178_v45, %v7024_v34  ;;  %7026 = vst [vmem:[#allocation54_spill] sm:$0xff] %v6232_v37  ;;  %v2328_v15 = vmul.f32 %v2065_v10, %v5948_v24  ;;  %v6252_v10 = vpop.f32.mrb[62].mxu1 }
 0x1a7   :  { %1435 = vst.msk [vmem:[%s6868_s7 + $0x160] sm:$0xff] %vm173_vm0, %v1307_v20  ;;  %v2403_v61 = vmul.f32 %v2275_v5, %v5922_v38  ;;  %v2681_v54 = vrot.slane %v2680_v9, 2  ;;  %v1368_v5 = vmax.f32 %v6224_v51, 0.0  ;;  %v2944_v34 = vrot.slane %v2943_v6, 1  ;;  %7028 = vst [vmem:[#allocation15_spill] sm:$0xff] %v6252_v10 }
 0x1a8   :  { %v2675_v30 = vadd.f32 %v2674_v23, %v2673_v12  ;;  %v1367_v46 = vmax.f32 %v6228_v25, 0.0  ;;  %v1370_v63 = vmax.f32 %v6232_v37, 0.0  ;;  %v2456_v52 = vmul.f32 %v2328_v15, %v5987_v41 }
 0x1a9   :  { %v2685_v20 = vsel %vm173_vm0, %v2403_v61, 0.0  ;;  %v2682_v12 = vadd.f32 %v2681_v54, %v2680_v9  ;;  %1496 = vst.msk [vmem:[%s6868_s7 + $0x348] sm:$0xff] %vm173_vm0, %v1368_v5  ;;  %v2327_v61 = vmul.f32 %v2061_v57, %v5956_v27  ;;  %v7027_v54 = vld [vmem:[#allocation67_spill] sm:$0xff] }
 0x1aa   :  { %v3083_v22 = vmax.f32 %v2675_v30, 0.0  ;;  %v2687_v23 = vadd.f32 %v2686_v21, %v2685_v20  ;;  %1495 = vst.msk [vmem:[%s6868_s7 + $0x340] sm:$0xff] %vm173_vm0, %v1367_v46  ;;  %v860_v9 = vadd.f32 %v6178_v45, %v7027_v54  ;;  %v3169_v21 = vrot.slane %v6054_v40, 5  ;;  %1498 = vst.msk [vmem:[%s6868_s7 + $0x358] sm:$0xff] %vm173_vm0, %v1370_v63  ;;  %v6265_v46 = vpop.f32.mrb[63].mxu1 }
 0x1ab   :  { %v2683_v33 = vrot.slane %v2682_v12, 1  ;;  %v2920_v27 = vsel %vm173_vm0, %v2456_v52, 0.0  ;;  %v2945_v54 = vadd.f32 %v2944_v34, %v2943_v6 }
 0x1ac   :  { %v3291_v43 = vadd.f32 %v3168_v7, %v3083_v22  ;;  %v2688_v24 = vrot.slane %v2687_v23, 4  ;;  %v2455_v22 = vmul.f32 %v2327_v61, %v6016_v16  ;;  %v7029_v7 = vld [vmem:[#allocation62_spill] sm:$0xff]  ;;  %v1310_v15 = vmax.f32 %v860_v9, 0.0 }
 0x1ad   :  { %v6263_v30 = vadd.f32 %v6178_v45, %v7029_v7  ;;  %v2684_v20 = vadd.f32 %v2683_v33, %v2682_v12  ;;  %v2278_v37 = vmul.f32 %v7030_v58, %v860_v9  ;;  %v2318_v33 = vmul.f32 %v6173_v32, %v5744_v4 }
 0x1ae   :  { %v3440_v57 = vrot.slane %v3291_v43, 4  ;;  %v2689_v5 = vadd.f32 %v2688_v24, %v2687_v23  ;;  %v2919_v10 = vsel %vm173_vm0, %v2455_v22, 0.0  ;;  %1438 = vst.msk [vmem:[%s6868_s7 + $0x178] sm:$0xff] %vm173_vm0, %v1310_v15  ;;  %v2317_v43 = vmul.f32 %v6196_v62, %v5756_v53  ;;  %v7032_v24 = vld [vmem:[#allocation64_spill] sm:$0xff]  ;;  %v7033_v62 = vld [vmem:[#allocation27_spill] sm:$0xff] }
 0x1af   :  { %v1369_v63 = vmax.f32 %v6263_v30, 0.0  ;;  %v3084_v61 = vmax.f32 %v2684_v20, 0.0  ;;  %v2921_v7 = vadd.f32 %v2920_v27, %v2919_v10  ;;  %v2406_v58 = vmul.f32 %v2278_v37, %v5883_v8  ;;  %v2098_v10 = vpop.permute.xlu1 %2097 }
 0x1b0   :  { %v3441_v52 = vsel %vm3409_vm4, %v3440_v57, %v6185_v3  ;;  %v2690_v36 = vrot.slane %v2689_v5, 2  ;;  %v7031_v3 = vld [vmem:[#allocation69_spill] sm:$0xff]  ;;  %v6289_v9 = vadd.f32 %v6178_v45, %v7032_v24  ;;  %v3113_v4 = vmax.f32 %v2945_v54, 0.0  ;;  %v7035_v54 = vld [vmem:[#allocation68_spill] sm:$0xff] }
 0x1b1   :  { %1497 = vst.msk [vmem:[%s6868_s7 + $0x350] sm:$0xff] %vm173_vm0, %v1369_v63  ;;  %v855_v6 = vadd.f32 %v6178_v45, %v7031_v3  ;;  %v3292_v12 = vadd.f32 %v3169_v21, %v3084_v61  ;;  %v2922_v34 = vrot.slane %v2921_v7, 4  ;;  %v3170_v53 = vrot.slane %v6054_v40, 6 }
 0x1b2   :  { %v2691_v23 = vadd.f32 %v2690_v36, %v2689_v5  ;;  %v1372_v20 = vmax.f32 %v6289_v9, 0.0  ;;  %v2695_v21 = vsel %vm173_vm0, %v2406_v58, 0.0  ;;  %v7034_v5 = vld [vmem:[#allocation66_spill] sm:$0xff]  ;;  %v6306_v63 = vadd.f32 %v6178_v45, %v7035_v54 }
 0x1b3   :  { %v1309_v32 = vmax.f32 %v855_v6, 0.0  ;;  %v2277_v37 = vmul.f32 %v7033_v62, %v855_v6  ;;  %v3442_v27 = vrot.slane %v3292_v12, 3  ;;  %v2923_v57 = vadd.f32 %v2922_v34, %v2921_v7  ;;  %v2094_v6 = vpop.permute.xlu0 %2093  ;;  %v7039_v54 = vld [vmem:[#allocation70_spill] sm:$0xff] }
 0x1b4   :  { %v2692_v22 = vrot.slane %v2691_v23, 1  ;;  %v6302_v15 = vadd.f32 %v6178_v45, %v7034_v5  ;;  %1500 = vst.msk [vmem:[%s6868_s7 + $0x368] sm:$0xff] %vm173_vm0, %v1372_v20  ;;  %v2334_v58 = vmul.f32 %v2098_v10, %v6161_v49  ;;  %v6315_v12 = vmul.f32 %v5891_v29, %v2318_v33  ;;  %v7037_v33 = vld [vmem:[#allocation5_spill] sm:$0xff] }
 0x1b5   :  { %1437 = vst.msk [vmem:[%s6868_s7 + $0x170] sm:$0xff] %vm173_vm0, %v1309_v32  ;;  %v2405_v36 = vmul.f32 %v2277_v37, %v5922_v38  ;;  %v3443_v61 = vsel %vm3412_vm5, %v3442_v27, %v3441_v52  ;;  %v2924_v3 = vrot.slane %v2923_v57, 2  ;;  %v1374_v32 = vmax.f32 %v6306_v63, 0.0 }
 0x1b6   :  { %v2693_v7 = vadd.f32 %v2692_v22, %v2691_v23  ;;  %v1371_v24 = vmax.f32 %v6302_v15, 0.0  ;;  %v2462_v37 = vmul.f32 %v2334_v58, %v5987_v41  ;;  %v7036_v27 = vrot.slane %v6150_v26, 2 }
 0x1b7   :  { %v2694_v34 = vsel %vm173_vm0, %v2405_v36, 0.0  ;;  %v2925_v23 = vadd.f32 %v2924_v3, %v2923_v57  ;;  %v6324_v49 = vmul.f32 %v5897_v19, %v2317_v43  ;;  %1502 = vst.msk [vmem:[%s6868_s7 + $0x378] sm:$0xff] %vm173_vm0, %v1374_v32  ;;  %v2333_v29 = vmul.f32 %v2094_v6, %v6194_v55  ;;  %v7038_v36 = vld [vmem:[#allocation28_spill] sm:$0xff]  ;;  %v7040_v6 = vld [vmem:[#allocation71_spill] sm:$0xff] }
 0x1b8   :  { %v3085_v52 = vmax.f32 %v2693_v7, 0.0  ;;  %v2696_v62 = vadd.f32 %v2695_v21, %v2694_v34  ;;  %v3321_v22 = vadd.f32 %v7036_v27, %v3113_v4  ;;  %1499 = vst.msk [vmem:[%s6868_s7 + $0x360] sm:$0xff] %vm173_vm0, %v1371_v24  ;;  %v870_v10 = vadd.f32 %v6178_v45, %v7037_v33 }
 0x1b9   :  { %v2926_v4 = vrot.slane %v2925_v23, 1  ;;  %v2947_v19 = vsel %vm173_vm0, %v2462_v37, 0.0  ;;  %v2461_v43 = vmul.f32 %v2333_v29, %v6016_v16  ;;  %v6342_v7 = vadd.f32 %v6178_v45, %v7039_v54  ;;  %v2153_v29 = vpop.permute.xlu1 %2152 }
 0x1ba   :  { %v3293_v57 = vadd.f32 %v3170_v53, %v3085_v52  ;;  %v2697_v20 = vrot.slane %v2696_v62, 4  ;;  %v1312_v21 = vmax.f32 %v870_v10, 0.0  ;;  %v2280_v5 = vmul.f32 %v7038_v36, %v870_v10  ;;  %v7041_v10 = vld [vmem:[#allocation29_spill] sm:$0xff]  ;;  %v7043_v36 = vld [vmem:[#allocation72_spill] sm:$0xff] }
 0x1bb   :  { %v2927_v58 = vadd.f32 %v2926_v4, %v2925_v23  ;;  %v865_v34 = vadd.f32 %v6178_v45, %v7040_v6  ;;  %v3492_v53 = vrot.slane %v3321_v22, 6  ;;  %v2946_v24 = vsel %vm173_vm0, %v2461_v43, 0.0  ;;  %v7042_v4 = vld [vmem:[#allocation44_spill] sm:$0xff] }
 0x1bc   :  { %v3444_v3 = vrot.slane %v3293_v57, 2  ;;  %v2698_v55 = vadd.f32 %v2697_v20, %v2696_v62  ;;  %1440 = vst.msk [vmem:[%s6868_s7 + $0x188] sm:$0xff] %vm173_vm0, %v1312_v21  ;;  %v2408_v32 = vmul.f32 %v2280_v5, %v5883_v8  ;;  %v1373_v52 = vmax.f32 %v6342_v7, 0.0  ;;  %v2149_v5 = vpop.permute.xlu0 %2148 }
 0x1bd   :  { %v3111_v23 = vmax.f32 %v2927_v58, 0.0  ;;  %v2948_v27 = vadd.f32 %v2947_v19, %v2946_v24  ;;  %v3171_v22 = vrot.slane %v6054_v40, 7  ;;  %v1311_v33 = vmax.f32 %v865_v34, 0.0 }
 0x1be   :  { %v6354_v37 = vsel %vm3415_vm6, %v3444_v3, %v3443_v61  ;;  %v2699_v62 = vrot.slane %v2698_v55, 2  ;;  %1501 = vst.msk [vmem:[%s6868_s7 + $0x370] sm:$0xff] %vm173_vm0, %v1373_v52  ;;  %v2279_v57 = vmul.f32 %v7041_v10, %v865_v34  ;;  %v1190_v20 = vadd.f32 %v6178_v45, %v7042_v4 }
 0x1bf   :  { %v3319_v61 = vadd.f32 %v6150_v26, %v3111_v23  ;;  %v2949_v21 = vrot.slane %v2948_v27, 4  ;;  %v1185_v19 = vadd.f32 %v6178_v45, %v7043_v36  ;;  %v2704_v40 = vsel %vm173_vm0, %v2408_v32, 0.0  ;;  %1439 = vst.msk [vmem:[%s6868_s7 + $0x180] sm:$0xff] %vm173_vm0, %v1311_v33 }
 0x1c0   :  { %v2700_v43 = vadd.f32 %v2699_v62, %v2698_v55  ;;  %v2407_v54 = vmul.f32 %v2279_v57, %v5922_v38  ;;  %v1376_v3 = vmax.f32 %v1190_v20, 0.0  ;;  %v2344_v58 = vmul.f32 %v2153_v29, %v1190_v20  ;;  %v7046_v20 = vld [vmem:[#allocation73_spill] sm:$0xff] }
 0x1c1   :  { %v7044_v6 = vrot.slane %v6202_v18, 7  ;;  %v2950_v24 = vadd.f32 %v2949_v21, %v2948_v27  ;;  %v1375_v52 = vmax.f32 %v1185_v19, 0.0  ;;  %v2343_v29 = vmul.f32 %v2149_v5, %v1185_v19  ;;  %v7047_v21 = vld [vmem:[#allocation74_spill] sm:$0xff] }
 0x1c2   :  { %v2701_v34 = vrot.slane %v2700_v43, 1  ;;  %v2703_v32 = vsel %vm173_vm0, %v2407_v54, 0.0  ;;  %1504 = vst.msk [vmem:[%s6868_s7 + $0x388] sm:$0xff] %vm173_vm0, %v1376_v3  ;;  %v2472_v62 = vmul.f32 %v2344_v58, %v5987_v41  ;;  %v7048_v3 = vld [vmem:[#allocation30_spill] sm:$0xff] }
 0x1c3   :  { %v3491_v55 = vsel %vm3400_vm1, %v7044_v6, %v3319_v61  ;;  %v2951_v18 = vrot.slane %v2950_v24, 2  ;;  %v2705_v10 = vadd.f32 %v2704_v40, %v2703_v32  ;;  %1503 = vst.msk [vmem:[%s6868_s7 + $0x380] sm:$0xff] %vm173_vm0, %v1375_v52  ;;  %v2471_v4 = vmul.f32 %v2343_v29, %v6016_v16 }
 0x1c4   :  { %v6377_v23 = vsel %vm3403_vm2, %v3492_v53, %v3491_v55  ;;  %v2702_v33 = vadd.f32 %v2701_v34, %v2700_v43  ;;  %v7045_v53 = vld [vmem:[#allocation45_spill] sm:$0xff]  ;;  %v2992_v57 = vsel %vm173_vm0, %v2472_v62, 0.0  ;;  %v1200_v61 = vadd.f32 %v6178_v45, %v7046_v20 }
 0x1c5   :  { %v880_v27 = vadd.f32 %v6178_v45, %v7045_v53  ;;  %v875_v43 = vadd.f32 %v6178_v45, %v7047_v21  ;;  %v2952_v19 = vadd.f32 %v2951_v18, %v2950_v24  ;;  %v2706_v5 = vrot.slane %v2705_v10, 4 }
 0x1c6   :  { %v3086_v36 = vmax.f32 %v2702_v33, 0.0  ;;  %v2991_v54 = vsel %vm173_vm0, %v2471_v4, 0.0  ;;  %v1378_v6 = vmax.f32 %v1200_v61, 0.0  ;;  %v2346_v55 = vmul.f32 %v5977_v44, %v1200_v61  ;;  %v7049_v44 = vld [vmem:[#allocation31_spill] sm:$0xff] }
 0x1c7   :  { %v1314_v40 = vmax.f32 %v880_v27, 0.0  ;;  %v2282_v58 = vmul.f32 %v7048_v3, %v880_v27  ;;  %v2953_v52 = vrot.slane %v2952_v19, 1  ;;  %v2707_v32 = vadd.f32 %v2706_v5, %v2705_v10  ;;  %v7051_v3 = vld [vmem:[#allocation6_spill] sm:$0xff] }
 0x1c8   :  { %v3294_v34 = vadd.f32 %v3171_v22, %v3086_v36  ;;  %v2993_v62 = vadd.f32 %v2992_v57, %v2991_v54  ;;  %v3195_v24 = vrot.slane %v6150_v26, 3  ;;  %1506 = vst.msk [vmem:[%s6868_s7 + $0x398] sm:$0xff] %vm173_vm0, %v1378_v6  ;;  %v1313_v33 = vmax.f32 %v875_v43, 0.0 }
 0x1c9   :  { %1442 = vst.msk [vmem:[%s6868_s7 + $0x198] sm:$0xff] %vm173_vm0, %v1314_v40  ;;  %v2410_v29 = vmul.f32 %v2282_v58, %v5883_v8  ;;  %v2281_v22 = vmul.f32 %v7049_v44, %v875_v43  ;;  %v2954_v10 = vadd.f32 %v2953_v52, %v2952_v19  ;;  %v2708_v53 = vrot.slane %v2707_v32, 2  ;;  %v7050_v40 = vld [vmem:[#allocation75_spill] sm:$0xff] }
 0x1ca   :  { %v3446_v18 = vrot.slane %v3294_v34, 1  ;;  %v2994_v27 = vrot.slane %v2993_v62, 4  ;;  %v2474_v4 = vmul.f32 %v2346_v55, %v5987_v41  ;;  %1441 = vst.msk [vmem:[%s6868_s7 + $0x190] sm:$0xff] %vm173_vm0, %v1313_v33  ;;  %v2875_v19 = vsel %vm173_vm0, %v6315_v12, 0.0 }
 0x1cb   :  { %v2713_v57 = vsel %vm173_vm0, %v2410_v29, 0.0  ;;  %v2409_v20 = vmul.f32 %v2281_v22, %v5922_v38  ;;  %v3114_v21 = vmax.f32 %v2954_v10, 0.0  ;;  %v2709_v43 = vadd.f32 %v2708_v53, %v2707_v32  ;;  %v3130_v10 = vld [vmem:[%s6863_s2 + $0x18] sm:$0xff] }
 0x1cc   :  { %v3447_v61 = vsel %vm3418_vm7, %v3446_v18, %v6354_v37  ;;  %v2995_v36 = vadd.f32 %v2994_v27, %v2993_v62  ;;  %v1195_v54 = vadd.f32 %v6178_v45, %v7050_v40  ;;  %v890_v58 = vadd.f32 %v6178_v45, %v7051_v3  ;;  %v7052_v62 = vld [vmem:[#allocation32_spill] sm:$0xff]  ;;  %v7054_v27 = vld [vmem:[#allocation47_spill] sm:$0xff] }
 0x1cd   :  { %3528 = vst.msk [vmem:[#allocation2 + $0x10] sm:$0xff] %vm173_vm0, %v3447_v61  ;;  %v2712_v5 = vsel %vm173_vm0, %v2409_v20, 0.0  ;;  %v2874_v6 = vsel %vm173_vm0, %v6324_v49, 0.0  ;;  %v3322_v37 = vadd.f32 %v3195_v24, %v3114_v21  ;;  %v2710_v44 = vrot.slane %v2709_v43, 1  ;;  %v7053_v49 = vld [vmem:[#allocation46_spill] sm:$0xff]  ;;  %v3134_v61 = vld [vmem:[%s6863_s2 + $0x38] sm:$0xff] }
 0x1ce   :  { %v2996_v55 = vrot.slane %v2995_v36, 2  ;;  %v2714_v34 = vadd.f32 %v2713_v57, %v2712_v5  ;;  %v1377_v52 = vmax.f32 %v1195_v54, 0.0  ;;  %v2345_v32 = vmul.f32 %v6019_v2, %v1195_v54 }
 0x1cf   :  { %v1316_v12 = vmax.f32 %v890_v58, 0.0  ;;  %v2284_v29 = vmul.f32 %v7052_v62, %v890_v58  ;;  %v3494_v33 = vrot.slane %v3322_v37, 5  ;;  %v3001_v22 = vsel %vm173_vm0, %v2474_v4, 0.0  ;;  %v6472_v62 = vpop.permute.xlu0 %2181 }
 0x1d0   :  { %v2715_v18 = vrot.slane %v2714_v34, 4  ;;  %v2997_v53 = vadd.f32 %v2996_v55, %v2995_v36  ;;  %1505 = vst.msk [vmem:[%s6868_s7 + $0x390] sm:$0xff] %vm173_vm0, %v1377_v52  ;;  %v2473_v2 = vmul.f32 %v2345_v32, %v6016_v16  ;;  %v1210_v24 = vadd.f32 %v6178_v45, %v7053_v49  ;;  %v6458_v36 = vpop.permute.xlu1 %2185  ;;  %v7055_v52 = vld [vmem:[#allocation33_spill] sm:$0xff] }
 0x1d1   :  { %1444 = vst.msk [vmem:[%s6868_s7 + $0x1a8] sm:$0xff] %vm173_vm0, %v1316_v12  ;;  %v885_v57 = vadd.f32 %v6178_v45, %v7054_v27  ;;  %v6449_v4 = vadd.f32 %v2875_v19, %v2874_v6  ;;  %v6453_v20 = vsel %vm3406_vm3, %v3494_v33, %v6377_v23  ;;  %v2412_v40 = vmul.f32 %v2284_v29, %v5883_v8 }
 0x1d2   :  { %v2716_v21 = vadd.f32 %v2715_v18, %v2714_v34  ;;  %v3000_v5 = vsel %vm173_vm0, %v2473_v2, 0.0  ;;  %v1380_v54 = vmax.f32 %v1210_v24, 0.0  ;;  %v2348_v3 = vmul.f32 %v6145_v60, %v1210_v24 }
 0x1d3   :  { %v2711_v19 = vadd.f32 %v2710_v44, %v2709_v43  ;;  %v6463_v58 = vmax.f32 %v3130_v10, 0.0  ;;  %v3002_v23 = vadd.f32 %v3001_v22, %v3000_v5  ;;  %v6465_v37 = vmax.f32 %v3134_v61, 0.0  ;;  %v7056_v43 = vld [vmem:[#allocation7_spill] sm:$0xff] }
 0x1d4   :  { %v2717_v6 = vrot.slane %v2716_v21, 2  ;;  %v2998_v55 = vrot.slane %v2997_v53, 1  ;;  %1508 = vst.msk [vmem:[%s6868_s7 + $0x3a8] sm:$0xff] %vm173_vm0, %v1380_v54  ;;  %v1315_v34 = vmax.f32 %v885_v57, 0.0  ;;  %v2283_v32 = vmul.f32 %v7055_v52, %v885_v57  ;;  %v2021_v27 = vpop.permute.xlu1 %2020 }
 0x1d5   :  { %v3003_v12 = vrot.slane %v3002_v23, 4  ;;  %v2476_v60 = vmul.f32 %v2348_v3, %v5987_v41  ;;  %v1205_v29 = vadd.f32 %v6178_v45, %v7056_v43  ;;  %v2877_v33 = vrot.slane %v6449_v4, 4 }
 0x1d6   :  { %v2718_v8 = vadd.f32 %v2717_v6, %v2716_v21  ;;  %v3172_v44 = vrot.slane %v6463_v58, 1  ;;  %v2722_v22 = vsel %vm173_vm0, %v2412_v40, 0.0  ;;  %1443 = vst.msk [vmem:[%s6868_s7 + $0x1a0] sm:$0xff] %vm173_vm0, %v1315_v34  ;;  %v2411_v18 = vmul.f32 %v2283_v32, %v5922_v38  ;;  %v2017_v32 = vpop.permute.xlu0 %2016 }
 0x1d7   :  { %v3087_v10 = vmax.f32 %v2711_v19, 0.0  ;;  %v3004_v49 = vadd.f32 %v3003_v12, %v3002_v23  ;;  %v1379_v24 = vmax.f32 %v1205_v29, 0.0  ;;  %v2999_v57 = vadd.f32 %v2998_v55, %v2997_v53 }
 0x1d8   :  { %v2719_v2 = vrot.slane %v2718_v8, 1  ;;  %v3200_v61 = vrot.slane %v6465_v37, 1  ;;  %v2721_v21 = vsel %vm173_vm0, %v2411_v18, 0.0  ;;  %v2347_v5 = vmul.f32 %v6152_v39, %v1205_v29 }
 0x1d9   :  { %v3005_v54 = vrot.slane %v3004_v49, 2  ;;  %v3010_v3 = vsel %vm173_vm0, %v2476_v60, 0.0  ;;  %v2723_v6 = vadd.f32 %v2722_v22, %v2721_v21  ;;  %1507 = vst.msk [vmem:[%s6868_s7 + $0x3a0] sm:$0xff] %vm173_vm0, %v1379_v24  ;;  %v2320_v53 = vmul.f32 %v2021_v27, %v5775_v28  ;;  %v7057_v60 = vld [vmem:[#allocation34_spill] sm:$0xff] }
 0x1da   :  { %v2720_v40 = vadd.f32 %v2719_v2, %v2718_v8  ;;  %v2475_v38 = vmul.f32 %v2347_v5, %v6016_v16  ;;  %v900_v19 = vadd.f32 %v6178_v45, %v5784_v48  ;;  %v1220_v39 = vadd.f32 %v6178_v45, %v5786_v11  ;;  %v6505_v11 = vld [vmem:[%s6862_s1 + $0x28] sm:$0xff] }
 0x1db   :  { %v3295_v23 = vadd.f32 %v6463_v58, %v3087_v10  ;;  %v3006_v34 = vadd.f32 %v3005_v54, %v3004_v49  ;;  %v2724_v52 = vrot.slane %v2723_v6, 4  ;;  %v3119_v48 = vmax.f32 %v2999_v57, 0.0 }
 0x1dc   :  { %v3088_v55 = vmax.f32 %v2720_v40, 0.0  ;;  %v3009_v8 = vsel %vm173_vm0, %v2475_v38, 0.0  ;;  %v1318_v12 = vmax.f32 %v900_v19, 0.0  ;;  %v2286_v43 = vmul.f32 %v7057_v60, %v900_v19  ;;  %v2109_v19 = vpop.permute.xlu1 %2108 }
 0x1dd   :  { %v1382_v29 = vmax.f32 %v1220_v39, 0.0  ;;  %v3007_v28 = vrot.slane %v3006_v34, 1  ;;  %v2725_v18 = vadd.f32 %v2724_v52, %v2723_v6  ;;  %v3011_v2 = vadd.f32 %v3010_v3, %v3009_v8  ;;  %v6533_v52 = vld [vmem:[%s6862_s1 + $0x20] sm:$0xff] }
 0x1de   :  { %v3296_v22 = vadd.f32 %v3172_v44, %v3088_v55  ;;  %v2448_v10 = vmul.f32 %v6505_v11, %v2320_v53  ;;  %v2319_v49 = vmul.f32 %v2017_v32, %v5779_v0  ;;  %1446 = vst.msk [vmem:[%s6868_s7 + $0x1b8] sm:$0xff] %vm173_vm0, %v1318_v12  ;;  %v895_v44 = vadd.f32 %v6178_v45, %v5796_v35  ;;  %v6523_v0 = vld [vmem:[%s6862_s1 + $0x18] sm:$0xff] }
 0x1df   :  { %1510 = vst.msk [vmem:[%s6868_s7 + $0x3b8] sm:$0xff] %vm173_vm0, %v1382_v29  ;;  %v3008_v27 = vadd.f32 %v3007_v28, %v3006_v34  ;;  %v2726_v57 = vrot.slane %v2725_v18, 2  ;;  %v3012_v21 = vrot.slane %v3011_v2, 4  ;;  %v3173_v5 = vrot.slane %v6463_v58, 2 }
 0x1e0   :  { %v3448_v24 = vrot.slane %v3296_v22, 7  ;;  %v2414_v40 = vmul.f32 %v6523_v0, %v2286_v43  ;;  %v2350_v54 = vmul.f32 %v6458_v36, %v1220_v39  ;;  %v1317_v3 = vmax.f32 %v895_v44, 0.0  ;;  %v7058_v36 = vld [vmem:[#allocation35_spill] sm:$0xff] }
 0x1e1   :  { %v3120_v38 = vmax.f32 %v3008_v27, 0.0  ;;  %v2727_v35 = vadd.f32 %v2726_v57, %v2725_v18  ;;  %v3013_v53 = vadd.f32 %v3012_v21, %v3011_v2  ;;  %v3327_v55 = vadd.f32 %v6465_v37, %v3119_v48  ;;  %v6548_v22 = vld [vmem:[%s6862_s1 + $0x10] sm:$0xff]  ;;  %v2105_v27 = vpop.permute.xlu0 %2104 }
 0x1e2   :  { %v3449_v6 = vsel %vm3400_vm1, %v3448_v24, %v3295_v23  ;;  %v2884_v34 = vsel %vm173_vm0, %v2448_v10, 0.0  ;;  %v2447_v32 = vmul.f32 %v6533_v52, %v2319_v49  ;;  %1445 = vst.msk [vmem:[%s6868_s7 + $0x1b0] sm:$0xff] %vm173_vm0, %v1317_v3  ;;  %v2285_v39 = vmul.f32 %v7058_v36, %v895_v44 }
 0x1e3   :  { %v3328_v23 = vadd.f32 %v3200_v61, %v3120_v38  ;;  %v2728_v8 = vrot.slane %v2727_v35, 1  ;;  %v3014_v12 = vrot.slane %v3013_v53, 2  ;;  %v1215_v60 = vadd.f32 %v6178_v45, %v5815_v42 }
 0x1e4   :  { %v2731_v43 = vsel %vm173_vm0, %v2414_v40, 0.0  ;;  %v2478_v29 = vmul.f32 %v2350_v54, %v5987_v41  ;;  %v2413_v28 = vmul.f32 %v6548_v22, %v2285_v39  ;;  %v2336_v18 = vmul.f32 %v2109_v19, %v6224_v51  ;;  %v6558_v41 = vld [vmem:[%s6862_s1 + $0x38] sm:$0xff] }
 0x1e5   :  { %v3504_v2 = vrot.slane %v3328_v23, 7  ;;  %v2729_v61 = vadd.f32 %v2728_v8, %v2727_v35  ;;  %v3015_v48 = vadd.f32 %v3014_v12, %v3013_v53  ;;  %v1381_v10 = vmax.f32 %v1215_v60, 0.0 }
 0x1e6   :  { %v2883_v49 = vsel %vm173_vm0, %v2447_v32, 0.0  ;;  %v2730_v42 = vsel %vm173_vm0, %v2413_v28, 0.0  ;;  %v2349_v44 = vmul.f32 %v6472_v62, %v1215_v60  ;;  %v2464_v24 = vmul.f32 %v6558_v41, %v2336_v18 }
 0x1e7   :  { %v3505_v51 = vsel %vm3400_vm1, %v3504_v2, %v3327_v55  ;;  %v3089_v57 = vmax.f32 %v2729_v61, 0.0  ;;  %v3016_v21 = vrot.slane %v3015_v48, 1  ;;  %v2732_v40 = vadd.f32 %v2731_v43, %v2730_v42  ;;  %1509 = vst.msk [vmem:[%s6868_s7 + $0x3b0] sm:$0xff] %vm173_vm0, %v1381_v10 }
 0x1e8   :  { %v6569_v62 = vadd.f32 %v2877_v33, %v6449_v4  ;;  %v3201_v54 = vrot.slane %v6465_v37, 2  ;;  %v3019_v3 = vsel %vm173_vm0, %v2478_v29, 0.0  ;;  %v2477_v38 = vmul.f32 %v2349_v44, %v6016_v16  ;;  %v6584_v16 = vld [vmem:[%s6862_s1 + $0x30] sm:$0xff] }
 0x1e9   :  { %v3297_v35 = vadd.f32 %v3173_v5, %v3089_v57  ;;  %v3017_v53 = vadd.f32 %v3016_v21, %v3015_v48  ;;  %v2733_v19 = vrot.slane %v2732_v40, 4  ;;  %v2335_v55 = vmul.f32 %v2105_v27, %v6228_v25  ;;  %v7060_v27 = vld [vmem:[#allocation37_spill] sm:$0xff] }
 0x1ea   :  { %v6575_v32 = vadd.f32 %v2884_v34, %v2883_v49  ;;  %v3018_v36 = vsel %vm173_vm0, %v2477_v38, 0.0  ;;  %v2956_v39 = vsel %vm173_vm0, %v2464_v24, 0.0  ;;  %v910_v4 = vadd.f32 %v6178_v45, %v5877_v14  ;;  %v7059_v34 = vld [vmem:[#allocation36_spill] sm:$0xff] }
 0x1eb   :  { %v3450_v33 = vrot.slane %v3297_v35, 6  ;;  %v3121_v23 = vmax.f32 %v3017_v53, 0.0  ;;  %v2734_v8 = vadd.f32 %v2733_v19, %v2732_v40  ;;  %v3020_v12 = vadd.f32 %v3019_v3, %v3018_v36 }
 0x1ec   :  { %v2463_v25 = vmul.f32 %v6584_v16, %v2335_v55  ;;  %v1320_v5 = vmax.f32 %v910_v4, 0.0  ;;  %v2288_v60 = vmul.f32 %v7059_v34, %v910_v4  ;;  %v905_v43 = vadd.f32 %v6178_v45, %v5885_v31 }
 0x1ed   :  { %v6591_v29 = vsel %vm3403_vm2, %v3450_v33, %v3449_v6  ;;  %v3329_v14 = vadd.f32 %v3201_v54, %v3121_v23  ;;  %v2735_v28 = vrot.slane %v2734_v8, 2  ;;  %v3021_v18 = vrot.slane %v3020_v12, 4  ;;  %v2193_v33 = vpop.permute.xlu0 %2192 }
 0x1ee   :  { %v2955_v2 = vsel %vm173_vm0, %v2463_v25, 0.0  ;;  %1448 = vst.msk [vmem:[%s6868_s7 + $0x1c8] sm:$0xff] %vm173_vm0, %v1320_v5  ;;  %v2416_v61 = vmul.f32 %v6523_v0, %v2288_v60  ;;  %v1319_v48 = vmax.f32 %v905_v43, 0.0  ;;  %v2879_v6 = vrot.slane %v6569_v62, 2 }
 0x1ef   :  { %v3506_v10 = vrot.slane %v3329_v14, 6  ;;  %v2736_v49 = vadd.f32 %v2735_v28, %v2734_v8  ;;  %v3022_v42 = vadd.f32 %v3021_v18, %v3020_v12  ;;  %v2957_v31 = vadd.f32 %v2956_v39, %v2955_v2 }
 0x1f0   :  { %v2886_v44 = vrot.slane %v6575_v32, 4  ;;  %v3174_v24 = vrot.slane %v6463_v58, 3  ;;  %1447 = vst.msk [vmem:[%s6868_s7 + $0x1c0] sm:$0xff] %vm173_vm0, %v1319_v48  ;;  %v2287_v57 = vmul.f32 %v7060_v27, %v905_v43  ;;  %v2740_v38 = vsel %vm173_vm0, %v2416_v61, 0.0 }
 0x1f1   :  { %v6608_v21 = vsel %vm3403_vm2, %v3506_v10, %v3505_v51  ;;  %v2737_v40 = vrot.slane %v2736_v49, 1  ;;  %v3023_v54 = vrot.slane %v3022_v42, 2  ;;  %v2958_v3 = vrot.slane %v2957_v31, 4  ;;  %v2197_v51 = vpop.permute.xlu1 %2196 }
 0x1f2   :  { %v2415_v35 = vmul.f32 %v6548_v22, %v2287_v57  ;;  %v1230_v53 = vadd.f32 %v6178_v45, %v5917_v47  ;;  %v1225_v19 = vadd.f32 %v6178_v45, %v5950_v56  ;;  %v3202_v39 = vrot.slane %v6465_v37, 3 }
 0x1f3   :  { %v2738_v55 = vadd.f32 %v2737_v40, %v2736_v49  ;;  %v3024_v36 = vadd.f32 %v3023_v54, %v3022_v42  ;;  %v2959_v4 = vadd.f32 %v2958_v3, %v2957_v31  ;;  %v3196_v23 = vrot.slane %v6150_v26, 4  ;;  %v7061_v31 = vld [vmem:[#allocation38_spill] sm:$0xff] }
 0x1f4   :  { %v2739_v8 = vsel %vm173_vm0, %v2415_v35, 0.0  ;;  %v1384_v12 = vmax.f32 %v1230_v53, 0.0  ;;  %v1383_v25 = vmax.f32 %v1225_v19, 0.0  ;;  %v2352_v56 = vmul.f32 %v2197_v51, %v1230_v53 }
 0x1f5   :  { %v3090_v5 = vmax.f32 %v2738_v55, 0.0  ;;  %v3025_v34 = vrot.slane %v3024_v36, 1  ;;  %v2960_v60 = vrot.slane %v2959_v4, 2  ;;  %v2741_v47 = vadd.f32 %v2740_v38, %v2739_v8  ;;  %v2032_v35 = vpop.permute.xlu1 %2031 }
 0x1f6   :  { %1512 = vst.msk [vmem:[%s6868_s7 + $0x3c8] sm:$0xff] %vm173_vm0, %v1384_v12  ;;  %1511 = vst.msk [vmem:[%s6868_s7 + $0x3c0] sm:$0xff] %vm173_vm0, %v1383_v25  ;;  %v2351_v43 = vmul.f32 %v2193_v33, %v1225_v19  ;;  %v920_v14 = vadd.f32 %v6178_v45, %v5989_v50  ;;  %v915_v28 = vadd.f32 %v6178_v45, %v5996_v13  ;;  %v3175_v33 = vrot.slane %v6463_v58, 4  ;;  %v7062_v12 = vld [vmem:[#allocation39_spill] sm:$0xff] }
 0x1f7   :  { %v3298_v18 = vadd.f32 %v3174_v24, %v3090_v5  ;;  %v3026_v2 = vadd.f32 %v3025_v34, %v3024_v36  ;;  %v2961_v61 = vadd.f32 %v2960_v60, %v2959_v4  ;;  %v2742_v48 = vrot.slane %v2741_v47, 4  ;;  %v2028_v4 = vpop.permute.xlu0 %2027 }
 0x1f8   :  { %v2480_v10 = vmul.f32 %v6558_v41, %v2352_v56  ;;  %v2479_v49 = vmul.f32 %v6584_v16, %v2351_v43  ;;  %v1322_v42 = vmax.f32 %v920_v14, 0.0  ;;  %v2290_v27 = vmul.f32 %v7061_v31, %v920_v14 }
 0x1f9   :  { %v3452_v57 = vrot.slane %v3298_v18, 5  ;;  %v3122_v40 = vmax.f32 %v3026_v2, 0.0  ;;  %v2962_v54 = vrot.slane %v2961_v61, 1  ;;  %v2743_v3 = vadd.f32 %v2742_v48, %v2741_v47  ;;  %v2120_v48 = vpop.permute.xlu1 %2119 }
 0x1fa   :  { %v3028_v50 = vsel %vm173_vm0, %v2480_v10, 0.0  ;;  %v3027_v38 = vsel %vm173_vm0, %v2479_v49, 0.0  ;;  %1450 = vst.msk [vmem:[%s6868_s7 + $0x1d8] sm:$0xff] %vm173_vm0, %v1322_v42  ;;  %v2418_v13 = vmul.f32 %v6523_v0, %v2290_v27  ;;  %v1321_v24 = vmax.f32 %v915_v28, 0.0  ;;  %v7063_v27 = vld [vmem:[#allocation40_spill] sm:$0xff] }
 0x1fb   :  { %v3453_v53 = vsel %vm3406_vm3, %v3452_v57, %v6591_v29  ;;  %v3330_v19 = vadd.f32 %v3202_v39, %v3122_v40  ;;  %v2963_v55 = vadd.f32 %v2962_v54, %v2961_v61  ;;  %v2744_v36 = vrot.slane %v2743_v3, 2 }
 0x1fc   :  { %v2887_v51 = vadd.f32 %v2886_v44, %v6575_v32  ;;  %v3029_v8 = vadd.f32 %v3028_v50, %v3027_v38  ;;  %1449 = vst.msk [vmem:[%s6868_s7 + $0x1d0] sm:$0xff] %vm173_vm0, %v1321_v24  ;;  %v2289_v25 = vmul.f32 %v7062_v12, %v915_v28  ;;  %v2322_v29 = vmul.f32 %v2032_v35, %v5819_v59  ;;  %v2116_v50 = vpop.permute.xlu0 %2115  ;;  %v7064_v35 = vld [vmem:[#allocation10_spill] sm:$0xff] }
 0x1fd   :  { %v3508_v5 = vrot.slane %v3330_v19, 5  ;;  %v3115_v34 = vmax.f32 %v2963_v55, 0.0  ;;  %v2745_v60 = vadd.f32 %v2744_v36, %v2743_v3  ;;  %v2749_v47 = vsel %vm173_vm0, %v2418_v13, 0.0  ;;  %v6681_v12 = vpop.permute.xlu1 %2207 }
 0x1fe   :  { %v3030_v39 = vrot.slane %v3029_v8, 4  ;;  %v2417_v32 = vmul.f32 %v6548_v22, %v2289_v25  ;;  %v2321_v44 = vmul.f32 %v2028_v4, %v5846_v17  ;;  %v2450_v28 = vmul.f32 %v6505_v11, %v2322_v29  ;;  %v7065_v4 = vld [vmem:[#allocation41_spill] sm:$0xff] }
 0x1ff   :  { %v6656_v56 = vsel %vm3406_vm3, %v3508_v5, %v6608_v21  ;;  %v3323_v43 = vadd.f32 %v3196_v23, %v3115_v34  ;;  %v2746_v14 = vrot.slane %v2745_v60, 1  ;;  %v930_v61 = vadd.f32 %v6178_v45, %v6034_v1 }
 0x200   :  { %v3031_v18 = vadd.f32 %v3030_v39, %v3029_v8  ;;  %v2748_v2 = vsel %vm173_vm0, %v2417_v32, 0.0  ;;  %v2449_v59 = vmul.f32 %v6533_v52, %v2321_v44  ;;  %v2893_v42 = vsel %vm173_vm0, %v2450_v28, 0.0 }
 0x201   :  { %v3496_v10 = vrot.slane %v3323_v43, 4  ;;  %v2747_v49 = vadd.f32 %v2746_v14, %v2745_v60  ;;  %v2750_v17 = vadd.f32 %v2749_v47, %v2748_v2  ;;  %v1324_v31 = vmax.f32 %v930_v61, 0.0  ;;  %v7066_v43 = vld [vmem:[#allocation54_spill] sm:$0xff] }
 0x202   :  { %v3032_v21 = vrot.slane %v3031_v18, 2  ;;  %v2892_v23 = vsel %vm173_vm0, %v2449_v59, 0.0  ;;  %v2292_v57 = vmul.f32 %v7063_v27, %v930_v61  ;;  %v2880_v40 = vadd.f32 %v2879_v6, %v6569_v62 }
 0x203   :  { %v6671_v54 = vsel %vm3409_vm4, %v3496_v10, %v6453_v20  ;;  %v3091_v1 = vmax.f32 %v2747_v49, 0.0  ;;  %v2751_v3 = vrot.slane %v2750_v17, 4  ;;  %v2894_v13 = vadd.f32 %v2893_v42, %v2892_v23  ;;  %1452 = vst.msk [vmem:[%s6868_s7 + $0x1e8] sm:$0xff] %vm173_vm0, %v1324_v31  ;;  %v7067_v10 = vld [vmem:[#allocation11_spill] sm:$0xff] }
 0x204   :  { %v3033_v38 = vadd.f32 %v3032_v21, %v3031_v18  ;;  %v2420_v24 = vmul.f32 %v6523_v0, %v2292_v57  ;;  %v925_v19 = vadd.f32 %v6178_v45, %v7064_v35  ;;  %v2888_v55 = vrot.slane %v2887_v51, 2  ;;  %v2204_v18 = vpop.permute.xlu0 %2203  ;;  %v7068_v23 = vld [vmem:[#allocation51_spill] sm:$0xff]  ;;  %v7069_v57 = vld [vmem:[#allocation42_spill] sm:$0xff] }
 0x205   :  { %v3299_v62 = vadd.f32 %v3175_v33, %v3091_v1  ;;  %v2752_v6 = vadd.f32 %v2751_v3, %v2750_v17  ;;  %v2881_v25 = vrot.slane %v2880_v40, 1  ;;  %v3203_v34 = vrot.slane %v6465_v37, 4  ;;  %v2043_v1 = vpop.permute.xlu1 %2042 }
 0x206   :  { %v3034_v20 = vrot.slane %v3033_v38, 1  ;;  %v1323_v36 = vmax.f32 %v925_v19, 0.0  ;;  %v2291_v8 = vmul.f32 %v7065_v4, %v925_v19  ;;  %v2895_v39 = vrot.slane %v2894_v13, 4  ;;  %v7071_v4 = vld [vmem:[#allocation50_spill] sm:$0xff] }
 0x207   :  { %v3454_v5 = vrot.slane %v3299_v62, 4  ;;  %v2753_v60 = vrot.slane %v2752_v6, 2  ;;  %v2758_v47 = vsel %vm173_vm0, %v2420_v24, 0.0  ;;  %v2338_v14 = vmul.f32 %v2120_v48, %v7066_v43  ;;  %v7073_v43 = vld [vmem:[#allocation12_spill] sm:$0xff] }
 0x208   :  { %v3035_v29 = vadd.f32 %v3034_v20, %v3033_v38  ;;  %1451 = vst.msk [vmem:[%s6868_s7 + $0x1e0] sm:$0xff] %vm173_vm0, %v1323_v36  ;;  %v2419_v33 = vmul.f32 %v6548_v22, %v2291_v8  ;;  %v2337_v28 = vmul.f32 %v2116_v50, %v6263_v30  ;;  %v2889_v2 = vadd.f32 %v2888_v55, %v2887_v51  ;;  %v2039_v36 = vpop.permute.xlu0 %2038 }
 0x209   :  { %v3455_v32 = vsel %vm3409_vm4, %v3454_v5, %v3453_v53  ;;  %v2754_v44 = vadd.f32 %v2753_v60, %v2752_v6  ;;  %v940_v49 = vadd.f32 %v6178_v45, %v7067_v10  ;;  %v3176_v42 = vrot.slane %v6463_v58, 5 }
 0x20a   :  { %v3123_v59 = vmax.f32 %v3035_v29, 0.0  ;;  %v2757_v61 = vsel %vm173_vm0, %v2419_v33, 0.0  ;;  %v935_v53 = vadd.f32 %v6178_v45, %v7068_v23  ;;  %v2896_v27 = vadd.f32 %v2895_v39, %v2894_v13  ;;  %v7070_v13 = vld [vmem:[#allocation43_spill] sm:$0xff]  ;;  %v7072_v33 = vld [vmem:[#allocation52_spill] sm:$0xff] }
 0x20b   :  { %v2755_v17 = vrot.slane %v2754_v44, 1  ;;  %v2759_v21 = vadd.f32 %v2758_v47, %v2757_v61  ;;  %v1326_v48 = vmax.f32 %v940_v49, 0.0  ;;  %v2294_v30 = vmul.f32 %v7069_v57, %v940_v49 }
 0x20c   :  { %v3331_v31 = vadd.f32 %v3203_v34, %v3123_v59  ;;  %v2466_v50 = vmul.f32 %v6558_v41, %v2338_v14  ;;  %v2465_v38 = vmul.f32 %v6584_v16, %v2337_v28  ;;  %v1325_v35 = vmax.f32 %v935_v53, 0.0  ;;  %v2131_v14 = vpop.permute.xlu1 %2130  ;;  %v2127_v57 = vpop.permute.xlu0 %2126 }
 0x20d   :  { %v2756_v51 = vadd.f32 %v2755_v17, %v2754_v44  ;;  %v2760_v3 = vrot.slane %v2759_v21, 4  ;;  %1454 = vst.msk [vmem:[%s6868_s7 + $0x1f8] sm:$0xff] %vm173_vm0, %v1326_v48  ;;  %v2422_v45 = vmul.f32 %v6523_v0, %v2294_v30  ;;  %v2293_v19 = vmul.f32 %v7070_v13, %v935_v53 }
 0x20e   :  { %v3510_v24 = vrot.slane %v3331_v31, 4  ;;  %v2882_v62 = vadd.f32 %v2881_v25, %v2880_v40  ;;  %v2890_v6 = vrot.slane %v2889_v2, 1  ;;  %v3188_v8 = vrot.slane %v7071_v4, 3  ;;  %1453 = vst.msk [vmem:[%s6868_s7 + $0x1f0] sm:$0xff] %vm173_vm0, %v1325_v35 }
 0x20f   :  { %v3092_v55 = vmax.f32 %v2756_v51, 0.0  ;;  %v2761_v20 = vadd.f32 %v2760_v3, %v2759_v21  ;;  %v2897_v34 = vrot.slane %v2896_v27, 2  ;;  %v2421_v0 = vmul.f32 %v6548_v22, %v2293_v19  ;;  %v7074_v51 = vld [vmem:[#allocation48_spill] sm:$0xff] }
 0x210   :  { %v6711_v5 = vsel %vm3409_vm4, %v3510_v24, %v6656_v56  ;;  %v2965_v25 = vsel %vm173_vm0, %v2466_v50, 0.0  ;;  %v2767_v29 = vsel %vm173_vm0, %v2422_v45, 0.0  ;;  %v2964_v39 = vsel %vm173_vm0, %v2465_v38, 0.0  ;;  %v6725_v56 = vld [vmem:[%s6866_s5] ss:$0 sm:$0xff]  ;;  %v2219_v19 = vpop.permute.xlu1 %2218 }
 0x211   :  { %v3300_v60 = vadd.f32 %v3176_v42, %v3092_v55  ;;  %v2762_v40 = vrot.slane %v2761_v20, 2  ;;  %v2766_v47 = vsel %vm173_vm0, %v2421_v0, 0.0  ;;  %v1240_v44 = vadd.f32 %v6725_v56, %v7072_v33 }
 0x212   :  { %v1235_v22 = vadd.f32 %v6725_v56, %v7073_v43  ;;  %v3106_v28 = vmax.f32 %v2882_v62, 0.0  ;;  %v6731_v59 = vadd.f32 %v2890_v6, %v2889_v2  ;;  %v2768_v49 = vadd.f32 %v2767_v29, %v2766_v47  ;;  %v7075_v6 = vld [vmem:[#allocation8_spill] sm:$0xff] }
 0x213   :  { %v3456_v61 = vrot.slane %v3300_v60, 3  ;;  %v2763_v10 = vadd.f32 %v2762_v40, %v2761_v20  ;;  %v1386_v17 = vmax.f32 %v1240_v44, 0.0  ;;  %v2354_v21 = vmul.f32 %v6681_v12, %v1240_v44 }
 0x214   :  { %v1385_v42 = vmax.f32 %v1235_v22, 0.0  ;;  %v2898_v53 = vadd.f32 %v2897_v34, %v2896_v27  ;;  %v2966_v48 = vadd.f32 %v2965_v25, %v2964_v39  ;;  %v2769_v30 = vrot.slane %v2768_v49, 4  ;;  %v2215_v39 = vpop.permute.xlu0 %2214 }
 0x215   :  { %v3457_v23 = vsel %vm3412_vm5, %v3456_v61, %v3455_v32  ;;  %v2764_v31 = vrot.slane %v2763_v10, 1  ;;  %1514 = vst.msk [vmem:[%s6868_s7 + $0x3d8] sm:$0xff] %vm173_vm0, %v1386_v17  ;;  %v2482_v2 = vmul.f32 %v6558_v41, %v2354_v21  ;;  %v2353_v12 = vmul.f32 %v2204_v18, %v1235_v22 }
 0x216   :  { %1513 = vst.msk [vmem:[%s6868_s7 + $0x3d0] sm:$0xff] %vm173_vm0, %v1385_v42  ;;  %v2324_v32 = vmul.f32 %v2043_v1, %v7074_v51  ;;  %v6745_v27 = vadd.f32 %v3188_v8, %v3106_v28  ;;  %v3189_v3 = vrot.slane %v7071_v4, 4  ;;  %v3177_v38 = vrot.slane %v6463_v58, 6  ;;  %v2054_v42 = vpop.permute.xlu1 %2053 }
 0x217   :  { %v2765_v50 = vadd.f32 %v2764_v31, %v2763_v10  ;;  %v2770_v24 = vadd.f32 %v2769_v30, %v2768_v49  ;;  %v3037_v45 = vsel %vm173_vm0, %v2482_v2, 0.0  ;;  %v2481_v35 = vmul.f32 %v6584_v16, %v2353_v12  ;;  %v7077_v12 = vld [vmem:[#allocation14_spill] sm:$0xff] }
 0x218   :  { %v2452_v13 = vmul.f32 %v6505_v11, %v2324_v32  ;;  %v3107_v62 = vmax.f32 %v6731_v59, 0.0  ;;  %v2323_v1 = vmul.f32 %v2039_v36, %v7075_v6  ;;  %v2340_v55 = vmul.f32 %v2131_v14, %v6289_v9  ;;  %v7076_v14 = vld [vmem:[#allocation53_spill] sm:$0xff] }
 0x219   :  { %v3093_v18 = vmax.f32 %v2765_v50, 0.0  ;;  %v2899_v20 = vrot.slane %v2898_v53, 1  ;;  %v2967_v8 = vrot.slane %v2966_v48, 4  ;;  %v2771_v34 = vrot.slane %v2770_v24, 2 }
 0x21a   :  { %v3036_v0 = vsel %vm173_vm0, %v2481_v35, 0.0  ;;  %v2902_v25 = vsel %vm173_vm0, %v2452_v13, 0.0  ;;  %v2451_v29 = vmul.f32 %v6533_v52, %v2323_v1  ;;  %v3178_v33 = vrot.slane %v6463_v58, 7 }
 0x21b   :  { %v3301_v60 = vadd.f32 %v3177_v38, %v3093_v18  ;;  %v3038_v40 = vadd.f32 %v3037_v45, %v3036_v0  ;;  %v2772_v47 = vadd.f32 %v2771_v34, %v2770_v24  ;;  %v2468_v44 = vmul.f32 %v6558_v41, %v2340_v55  ;;  %v2142_v0 = vpop.permute.xlu1 %2141 }
 0x21c   :  { %v2339_v36 = vmul.f32 %v2127_v57, %v6302_v15  ;;  %v2901_v22 = vsel %vm173_vm0, %v2451_v29, 0.0  ;;  %v1250_v28 = vadd.f32 %v6725_v56, %v7076_v14  ;;  %v2968_v21 = vadd.f32 %v2967_v8, %v2966_v48  ;;  %v2050_v48 = vpop.permute.xlu0 %2049 }
 0x21d   :  { %v3458_v9 = vrot.slane %v3301_v60, 2  ;;  %v3039_v43 = vrot.slane %v3038_v40, 4  ;;  %v2773_v61 = vrot.slane %v2772_v47, 1  ;;  %v2903_v10 = vadd.f32 %v2902_v25, %v2901_v22 }
 0x21e   :  { %v2974_v49 = vsel %vm173_vm0, %v2468_v44, 0.0  ;;  %v2467_v17 = vmul.f32 %v6584_v16, %v2339_v36  ;;  %v1388_v30 = vmax.f32 %v1250_v28, 0.0  ;;  %v1245_v51 = vadd.f32 %v6725_v56, %v7077_v12 }
 0x21f   :  { %v3459_v58 = vsel %vm3415_vm6, %v3458_v9, %v3457_v23  ;;  %v3040_v31 = vadd.f32 %v3039_v43, %v3038_v40  ;;  %v2774_v15 = vadd.f32 %v2773_v61, %v2772_v47  ;;  %v2904_v57 = vrot.slane %v2903_v10, 4 }
 0x220   :  { %v2973_v2 = vsel %vm173_vm0, %v2467_v17, 0.0  ;;  %v6770_v32 = vadd.f32 %v2899_v20, %v2898_v53  ;;  %1516 = vst.msk [vmem:[%s6868_s7 + $0x3e8] sm:$0xff] %vm173_vm0, %v1388_v30  ;;  %v2356_v23 = vmul.f32 %v2219_v19, %v1250_v28  ;;  %v3204_v45 = vrot.slane %v6465_v37, 5  ;;  %v7078_v19 = vld [vmem:[#allocation49_spill] sm:$0xff]  ;;  %v2138_v28 = vpop.permute.xlu0 %2137 }
 0x221   :  { %v3041_v50 = vrot.slane %v3040_v31, 2  ;;  %v2975_v38 = vadd.f32 %v2974_v49, %v2973_v2  ;;  %v3094_v24 = vmax.f32 %v2774_v15, 0.0  ;;  %v2905_v35 = vadd.f32 %v2904_v57, %v2903_v10 }
 0x222   :  { %v1387_v13 = vmax.f32 %v1245_v51, 0.0  ;;  %v2484_v1 = vmul.f32 %v6558_v41, %v2356_v23  ;;  %v2355_v53 = vmul.f32 %v2215_v39, %v1245_v51  ;;  %v2969_v55 = vrot.slane %v2968_v21, 2  ;;  %v7080_v23 = vld [vmem:[#allocation15_spill] sm:$0xff] }
 0x223   :  { %v3042_v18 = vadd.f32 %v3041_v50, %v3040_v31  ;;  %v2976_v6 = vrot.slane %v2975_v38, 4  ;;  %v3302_v20 = vadd.f32 %v3178_v33, %v3094_v24  ;;  %v2906_v8 = vrot.slane %v2905_v35, 2  ;;  %v7079_v33 = vld [vmem:[#allocation9_spill] sm:$0xff] }
 0x224   :  { %1515 = vst.msk [vmem:[%s6868_s7 + $0x3e0] sm:$0xff] %vm173_vm0, %v1387_v13  ;;  %v2326_v34 = vmul.f32 %v2054_v42, %v7078_v19  ;;  %v3046_v25 = vsel %vm173_vm0, %v2484_v1, 0.0  ;;  %v2483_v29 = vmul.f32 %v6584_v16, %v2355_v53  ;;  %v2325_v36 = vmul.f32 %v2050_v48, %v7079_v33  ;;  %v2230_v13 = vpop.permute.xlu1 %2229 }
 0x225   :  { %v3043_v60 = vrot.slane %v3042_v18, 1  ;;  %v2977_v40 = vadd.f32 %v2976_v6, %v2975_v38  ;;  %v3460_v47 = vrot.slane %v3302_v20, 1  ;;  %v2907_v44 = vadd.f32 %v2906_v8, %v2905_v35 }
 0x226   :  { %v2454_v39 = vmul.f32 %v6505_v11, %v2326_v34  ;;  %v3045_v22 = vsel %vm173_vm0, %v2483_v29, 0.0  ;;  %v2342_v14 = vmul.f32 %v2142_v0, %v6306_v63  ;;  %v6793_v61 = vadd.f32 %v3189_v3, %v3107_v62 }
 0x227   :  { %v3044_v9 = vadd.f32 %v3043_v60, %v3042_v18  ;;  %v2978_v43 = vrot.slane %v2977_v40, 2  ;;  %v2970_v10 = vadd.f32 %v2969_v55, %v2968_v21  ;;  %v3461_v49 = vsel %vm3418_vm7, %v3460_v47, %v3459_v58  ;;  %v2226_v55 = vpop.permute.xlu0 %2225 }
 0x228   :  { %v3047_v17 = vadd.f32 %v3046_v25, %v3045_v22  ;;  %3529 = vst.msk [vmem:[#allocation2 + $0x18] sm:$0xff] %vm173_vm0, %v3461_v49  ;;  %v2911_v42 = vsel %vm173_vm0, %v2454_v39, 0.0  ;;  %v2453_v31 = vmul.f32 %v6533_v52, %v2325_v36  ;;  %v2470_v63 = vmul.f32 %v6558_v41, %v2342_v14 }
 0x229   :  { %v3124_v11 = vmax.f32 %v3044_v9, 0.0  ;;  %v3190_v30 = vrot.slane %v7071_v4, 5  ;;  %v2979_v59 = vadd.f32 %v2978_v43, %v2977_v40  ;;  %v2341_v3 = vmul.f32 %v2138_v28, %v6342_v7 }
 0x22a   :  { %v3048_v15 = vrot.slane %v3047_v17, 4  ;;  %v3108_v62 = vmax.f32 %v6770_v32, 0.0  ;;  %v2908_v58 = vrot.slane %v2907_v44, 1  ;;  %v2910_v57 = vsel %vm173_vm0, %v2453_v31, 0.0 }
 0x22b   :  { %v3332_v21 = vadd.f32 %v3204_v45, %v3124_v11  ;;  %v2912_v12 = vadd.f32 %v2911_v42, %v2910_v57  ;;  %v2983_v51 = vsel %vm173_vm0, %v2470_v63, 0.0  ;;  %v2469_v52 = vmul.f32 %v6584_v16, %v2341_v3 }
 0x22c   :  { %v3049_v2 = vadd.f32 %v3048_v15, %v3047_v17  ;;  %v2971_v50 = vrot.slane %v2970_v10, 1  ;;  %v1260_v48 = vadd.f32 %v6725_v56, %v7080_v23  ;;  %v1255_v7 = vadd.f32 %v6725_v56, %v6265_v46 }
 0x22d   :  { %v3512_v38 = vrot.slane %v3332_v21, 3  ;;  %v2980_v24 = vrot.slane %v2979_v59, 1  ;;  %v2913_v45 = vrot.slane %v2912_v12, 4  ;;  %v2982_v35 = vsel %vm173_vm0, %v2469_v52, 0.0 }
 0x22e   :  { %v3050_v32 = vrot.slane %v3049_v2, 2  ;;  %v2909_v6 = vadd.f32 %v2908_v58, %v2907_v44  ;;  %v2984_v1 = vadd.f32 %v2983_v51, %v2982_v35  ;;  %v1390_v53 = vmax.f32 %v1260_v48, 0.0 }
 0x22f   :  { %v3513_v18 = vsel %vm3412_vm5, %v3512_v38, %v6711_v5  ;;  %v3197_v20 = vrot.slane %v6150_v26, 5  ;;  %v2914_v19 = vadd.f32 %v2913_v45, %v2912_v12  ;;  %v1389_v34 = vmax.f32 %v1255_v7, 0.0 }
 0x230   :  { %v3051_v8 = vadd.f32 %v3050_v32, %v3049_v2  ;;  %v3316_v0 = vadd.f32 %v3190_v30, %v3108_v62  ;;  %v2972_v46 = vadd.f32 %v2971_v50, %v2970_v10  ;;  %v2985_v56 = vrot.slane %v2984_v1, 4  ;;  %1518 = vst.msk [vmem:[%s6868_s7 + $0x3f8] sm:$0xff] %vm173_vm0, %v1390_v53 }
 0x231   :  { %v2358_v60 = vmul.f32 %v2230_v13, %v1260_v48  ;;  %v2981_v40 = vadd.f32 %v2980_v24, %v2979_v59  ;;  %v2915_v25 = vrot.slane %v2914_v19, 2  ;;  %1517 = vst.msk [vmem:[%s6868_s7 + $0x3f0] sm:$0xff] %vm173_vm0, %v1389_v34  ;;  %v2357_v29 = vmul.f32 %v2226_v55, %v1255_v7  ;;  %v7081_v7 = vld [vmem:[#allocation13_spill] sm:$0xff]  ;;  %s4067_s7 = smov [#allocation2]  }
 0x232   :  { %v3052_v5 = vrot.slane %v3051_v8, 1  ;;  %v3191_v47 = vrot.slane %v7071_v4, 6  ;;  %v3109_v44 = vmax.f32 %v2909_v6, 0.0  ;;  %v2986_v39 = vadd.f32 %v2985_v56, %v2984_v1  ;;  %s3539_s14 = sshll.u32 %s4067_s7, 4  ;;  %s3540_s14 = int_to_ptr.vmem [resolvable:$true] %s3539_s14 }
 0x233   :  { %v2486_v33 = vmul.f32 %v6558_v41, %v2358_v60  ;;  %v3205_v36 = vrot.slane %v6465_v37, 6  ;;  %v2916_v43 = vadd.f32 %v2915_v25, %v2914_v19  ;;  %v2485_v22 = vmul.f32 %v6584_v16, %v2357_v29  ;;  %s4043_s4 = scalar_lea.vmem %s3540_s14, 1024  ;;  %p4048_p1 = scmp.lt.s32.totalorder %s3540_s14, %s3540_s14 }
 0x234   :  { %v3053_v9 = vadd.f32 %v3052_v5, %v3051_v8  ;;  %v3116_v14 = vmax.f32 %v2972_v46, 0.0  ;;  %v3198_v28 = vrot.slane %v6150_v26, 6  ;;  %v2987_v10 = vrot.slane %v2986_v39, 2  ;;  %p4044_p0 = scmp.ne.s32.totalorder %s3540_s14, %s4043_s4  ;;  %p4049_p2 = scmp.lt.s32.totalorder %s4043_s4, %s4043_s4 }
 0x235   :  { %v3055_v49 = vsel %vm173_vm0, %v2486_v33, 0.0  ;;  %v3117_v17 = vmax.f32 %v2981_v40, 0.0  ;;  %v2917_v42 = vrot.slane %v2916_v43, 1  ;;  %v3054_v31 = vsel %vm173_vm0, %v2485_v22, 0.0 }
 0x236   :  { %v3125_v11 = vmax.f32 %v3053_v9, 0.0  ;;  %v3317_v63 = vadd.f32 %v3191_v47, %v3109_v44  ;;  %v2988_v30 = vadd.f32 %v2987_v10, %v2986_v39  ;;  %v3056_v41 = vadd.f32 %v3055_v49, %v3054_v31  ;;  %p4050_p3 = por %p4049_p2, %p4048_p1 }
 0x237   :  { %v3480_v59 = vrot.slane %v6745_v27, 5  ;;  %v3192_v3 = vrot.slane %v7071_v4, 7  ;;  %v2918_v16 = vadd.f32 %v2917_v42, %v2916_v43  ;;  %v3482_v62 = vrot.slane %v6793_v61, 4 }
 0x238   :  { %v3333_v15 = vadd.f32 %v3205_v36, %v3125_v11  ;;  %v3324_v21 = vadd.f32 %v3197_v20, %v3116_v14  ;;  %v2989_v58 = vrot.slane %v2988_v30, 1  ;;  %v3057_v57 = vrot.slane %v3056_v41, 4  ;;  %p4051_p4 = pnand %p4050_p3, %p4044_p0 }
 0x239   :  { %v3484_v2 = vrot.slane %v3316_v0, 3  ;;  %v3325_v12 = vadd.f32 %v3198_v28, %v3117_v17  ;;  %v3110_v52 = vmax.f32 %v2918_v16, 0.0  ;;  %v3486_v50 = vrot.slane %v3317_v63, 2 }
 0x23a   :  { %v3514_v51 = vrot.slane %v3333_v15, 2  ;;  %v3199_v38 = vrot.slane %v6150_v26, 7  ;;  %v2990_v23 = vadd.f32 %v2989_v58, %v2988_v30  ;;  %v3058_v48 = vadd.f32 %v3057_v57, %v3056_v41 }
 0x23b   :  { %v3481_v27 = vsel %vm3406_vm3, %v3480_v59, %v7081_v7  ;;  %v3318_v24 = vadd.f32 %v3192_v3, %v3110_v52  ;;  %v3498_v32 = vrot.slane %v3324_v21, 3  ;;  %v3500_v6 = vrot.slane %v3325_v12, 2 }
 0x23c   :  { %v3515_v4 = vsel %vm3415_vm6, %v3514_v51, %v3513_v18  ;;  %v3483_v61 = vsel %vm3409_vm4, %v3482_v62, %v3481_v27  ;;  %v3118_v45 = vmax.f32 %v2990_v23, 0.0  ;;  %v3059_v35 = vrot.slane %v3058_v48, 2 }
 0x23d   :  { %v3485_v13 = vsel %vm3412_vm5, %v3484_v2, %v3483_v61  ;;  %v3488_v1 = vrot.slane %v3318_v24, 1  ;;  %v3499_v8 = vsel %vm3412_vm5, %v3498_v32, %v6671_v54  ;;  %v3206_v46 = vrot.slane %v6465_v37, 7 }
 0x23e   :  { %v3487_v53 = vsel %vm3415_vm6, %v3486_v50, %v3485_v13  ;;  %v3326_v26 = vadd.f32 %v3199_v38, %v3118_v45  ;;  %v3060_v55 = vadd.f32 %v3059_v35, %v3058_v48  ;;  %v3501_v34 = vsel %vm3415_vm6, %v3500_v6, %v3499_v8 }
 0x23f   :  { %v3489_v20 = vsel %vm3418_vm7, %v3488_v1, %v3487_v53 }
 0x240   :  { %3531 = vst.msk [vmem:[#allocation2 + $0x28] sm:$0xff] %vm173_vm0, %v3489_v20  ;;  %v3502_v18 = vrot.slane %v3326_v26, 1  ;;  %v3061_v19 = vrot.slane %v3060_v55, 1 }
 0x242   :  { %v3503_v0 = vsel %vm3418_vm7, %v3502_v18, %v3501_v34  ;;  %v3062_v56 = vadd.f32 %v3061_v19, %v3060_v55 }
 0x243   :  { %3532 = vst.msk [vmem:[#allocation2 + $0x30] sm:$0xff] %vm173_vm0, %v3503_v0 }
 0x244   :  { %v3126_v60 = vmax.f32 %v3062_v56, 0.0 }
 0x246   :  { %v3334_v40 = vadd.f32 %v3206_v46, %v3126_v60 }
 0x248   :  { %v3516_v5 = vrot.slane %v3334_v40, 1 }
 0x24a   :  { %v3517_v54 = vsel %vm3418_vm7, %v3516_v5, %v3515_v4 }
 0x24b   :  { %3533 = vst.msk [vmem:[#allocation2 + $0x38] sm:$0xff] %vm173_vm0, %v3517_v54 }
 0x24c   :  { %4054 = shalt.err (!%p4051_p4)
}
 0x24d   :  { %s4055_s16 = scalar_lea.hbm %s6867_s6, 1024 }
 0x24e   :  { %p4056_p5 = scmp.ne.s32.totalorder %s6867_s6, %s4055_s16  ;;  %p4059_p6 = scmp.lt.u32.totalorder %s4055_s16, %s6867_s6 }
 0x250   :  { %p4061_p7 = pnand %p4059_p6, %p4056_p5 }
 0x252   :  { %4064 = shalt.err (!%p4061_p7)
}
 0x253   :  { %s4068_s21 = smov 128   ;;  %s4069_s22 = smov 8  }
 0x254   :  { %3545 = dma.vmem_to_hbm [thread:$0]  %s3540_s14, 1024, %s6867_s6, [#allocation3], %s4068_s21, %s4068_s21, %s4069_s22  }
 0x255   :  { %4065 = dma.done.wait [#allocation3], 1024  }
 0x256   :  { %4066 = vsyncadd [#allocation3], 4294966272 }
 0x257   :  { %3553 = vsyncpa [#allocation3], 1 }

</bundles_post_ra>
